<compile_context>
chip_gen: v6e
topology: v6e:2x2x1
jax: 0.10.0
libtpu: 0.0.40
codegen_flags: <defaults>
</compile_context>

<pallas_src>
import functools

import numpy as np

import jax
import jax.numpy as jnp
from jax.experimental import pallas as pl
from jax.experimental.pallas import tpu as pltpu

_EPS = 1e-5  # PyTorch BatchNorm default eps


def _round_up(x, m):
    return (x + m - 1) // m * m


def _pick_tile(m, target=512):
    """Row tile: single tile for small M (no padding when M % 8 == 0), else 512-ish."""
    if m <= target:
        return _round_up(m, 8)
    for t in (512, 256, 128):
        if m % t == 0:
            return t
    return target


# ---------------------------------------------------------------------------
# Pallas kernels
# ---------------------------------------------------------------------------

def _matmul_bias_kernel(a_ref, w_ref, b_ref, o_ref):
    """y = a @ w + bias (bf16 operands, f32 accumulate)."""
    o_ref[...] = jnp.dot(a_ref[...].astype(jnp.bfloat16), w_ref[...],
                         preferred_element_type=jnp.float32) + b_ref[...]


def _make_mm_stats_kernel(m_valid, padded):
    """y = a @ w + bias (bf16 operands, f32 accumulate) + per-column sum/sumsq."""

    def kern(a_ref, w_ref, b_ref, o_ref, st_ref):
        y = jnp.dot(a_ref[...].astype(jnp.bfloat16), w_ref[...],
                    preferred_element_type=jnp.float32) + b_ref[...]
        o_ref[...] = y
        if padded:
            tm = y.shape[0]
            rows = (jax.lax.broadcasted_iota(jnp.int32, (tm, 1), 0)
                    + pl.program_id(0) * tm)
            ym = jnp.where(rows < m_valid, y, 0.0)
        else:
            ym = y
        ssum = jnp.sum(ym, axis=0, keepdims=True)
        ssq = jnp.sum(ym * y, axis=0, keepdims=True)
        st_ref[0] = jnp.concatenate([ssum, ssq], axis=0)

    return kern


def _tcn_kernel(z_ref, s1_ref, b1_ref, sel_ref, wt_ref, bt_ref, o_ref, st_ref):
    """Per-sample temporal conv.

    Prologue: BN1 affine + ReLU on the graph-conv output (fused, never hits HBM).
    Body: out = sum_dt (S_dt @ h) @ Wt_dt  -- S_dt is a 0/1 time-selection matrix
    that realises stride + zero padding without strided loads or im2col.  Both
    matmuls run in bf16 with f32 accumulation (row selection is exact in bf16).
    Epilogue: per-column sum / sumsq for BN2.
    """
    h = jnp.maximum(z_ref[0] * s1_ref[...] + b1_ref[...], 0.0)           # (T, VC) f32
    hb = h.astype(jnp.bfloat16)
    kt = sel_ref.shape[0]
    acc = None
    for dt in range(kt):
        g = jnp.dot(sel_ref[dt], hb, preferred_element_type=jnp.float32)  # (T_out, VC)
        part = jnp.dot(g.astype(jnp.bfloat16), wt_ref[dt],
                       preferred_element_type=jnp.float32)                # (T_out, VC)
        acc = part if acc is None else acc + part
    y = acc + bt_ref[...]
    o_ref[0] = y
    ssum = jnp.sum(y, axis=0, keepdims=True)
    ssq = jnp.sum(y * y, axis=0, keepdims=True)
    st_ref[0] = jnp.concatenate([ssum, ssq], axis=0)


def _bn_relu_kernel(t_ref, s_ref, b_ref, o_ref):
    o_ref[...] = jnp.maximum(t_ref[...] * s_ref[...] + b_ref[...], 0.0)


def _bn_addres_relu_kernel(t_ref, s_ref, b_ref, r_ref, o_ref):
    """Identity residual: relu(t*s + b + r)."""
    o_ref[...] = jnp.maximum(t_ref[...] * s_ref[...] + b_ref[...] + r_ref[...], 0.0)


def _bn_res_relu_kernel(t_ref, s_ref, b_ref, r_ref, sr_ref, br_ref, o_ref):
    """Conv+BN residual: relu(t*s + b + r*sr + br)."""
    o_ref[...] = jnp.maximum(t_ref[...] * s_ref[...] + b_ref[...]
                             + r_ref[...] * sr_ref[...] + br_ref[...], 0.0)


def _make_pool_fc_kernel(inv_tv):
    def kern(h_ref, w_ref, b_ref, o_ref):
        # avg-pool over (T, V): the T reduction first in f32, V folded in w.
        pooled = jnp.sum(h_ref[0], axis=0, keepdims=True) * inv_tv        # (1, VC)
        o_ref[0] = jnp.dot(pooled.astype(jnp.bfloat16), w_ref[...],
                           preferred_element_type=jnp.float32) + b_ref[...]
    return kern


# ---------------------------------------------------------------------------
# Pallas-call wrappers
# ---------------------------------------------------------------------------

def _row_tiling(M):
    tm = _pick_tile(M)
    Mp = _round_up(M, tm)
    return tm, Mp, Mp != M


def matmul_bias(a, w_bf16, bias):
    """(M, K) @ (K, Ncols) + bias.  No statistics side-output."""
    M, K = a.shape
    Kw, Ncols = w_bf16.shape
    tm, Mp, padded = _row_tiling(M)
    if padded:
        a = jnp.pad(a, ((0, Mp - M), (0, 0)))
    ntiles = Mp // tm

    out = pl.pallas_call(
        _matmul_bias_kernel,
        out_shape=jax.ShapeDtypeStruct((Mp, Ncols), jnp.float32),
        grid=(ntiles,),
        in_specs=[pl.BlockSpec((tm, K), lambda i: (i, 0)),
                  pl.BlockSpec((Kw, Ncols), lambda i: (0, 0)),
                  pl.BlockSpec((1, Ncols), lambda i: (0, 0))],
        out_specs=pl.BlockSpec((tm, Ncols), lambda i: (i, 0)),
        compiler_params=pltpu.CompilerParams(
            dimension_semantics=("parallel",)),
    )(a, w_bf16, bias.reshape(1, Ncols).astype(jnp.float32))
    return out[:M] if padded else out


def matmul_stats(a, w_bf16, bias):
    """(M, K) @ (K, Ncols) + bias, also returns (2, Ncols) column [sum, sumsq]."""
    M, K = a.shape
    Kw, Ncols = w_bf16.shape
    tm, Mp, padded = _row_tiling(M)
    if padded:
        a = jnp.pad(a, ((0, Mp - M), (0, 0)))
    ntiles = Mp // tm

    out, stats = pl.pallas_call(
        _make_mm_stats_kernel(M, padded),
        out_shape=(jax.ShapeDtypeStruct((Mp, Ncols), jnp.float32),
                   jax.ShapeDtypeStruct((ntiles, 2, Ncols), jnp.float32)),
        grid=(ntiles,),
        in_specs=[pl.BlockSpec((tm, K), lambda i: (i, 0)),
                  pl.BlockSpec((Kw, Ncols), lambda i: (0, 0)),
                  pl.BlockSpec((1, Ncols), lambda i: (0, 0))],
        out_specs=(pl.BlockSpec((tm, Ncols), lambda i: (i, 0)),
                   pl.BlockSpec((1, 2, Ncols), lambda i: (i, 0, 0))),
        compiler_params=pltpu.CompilerParams(
            dimension_semantics=("parallel",)),
    )(a, w_bf16, bias.reshape(1, Ncols).astype(jnp.float32))

    if padded:
        out = out[:M]
    return out, jnp.sum(stats, axis=0)


def tcn_conv(z3, s1, b1, sel, wt_big, bt_col):
    """Fused BN1-apply+ReLU + (kt,1)-strided temporal conv + BN2 statistics."""
    N, T, VC = z3.shape
    kt, T_out, _ = sel.shape

    out, stats = pl.pallas_call(
        _tcn_kernel,
        out_shape=(jax.ShapeDtypeStruct((N, T_out, VC), jnp.float32),
                   jax.ShapeDtypeStruct((N, 2, VC), jnp.float32)),
        grid=(N,),
        in_specs=[pl.BlockSpec((1, T, VC), lambda n: (n, 0, 0)),
                  pl.BlockSpec((1, VC), lambda n: (0, 0)),
                  pl.BlockSpec((1, VC), lambda n: (0, 0)),
                  pl.BlockSpec((kt, T_out, T), lambda n: (0, 0, 0)),
                  pl.BlockSpec((kt, VC, VC), lambda n: (0, 0, 0)),
                  pl.BlockSpec((1, VC), lambda n: (0, 0))],
        out_specs=(pl.BlockSpec((1, T_out, VC), lambda n: (n, 0, 0)),
                   pl.BlockSpec((1, 2, VC), lambda n: (n, 0, 0))),
        compiler_params=pltpu.CompilerParams(
            dimension_semantics=("parallel",)),
    )(z3, s1.reshape(1, VC), b1.reshape(1, VC), sel, wt_big,
      bt_col.reshape(1, VC))
    return out, jnp.sum(stats, axis=0)


def fused_bn_residual_relu(t2d, s, b, r2d=None, sr=None, br=None):
    """relu(t*s + b [+ r] or [+ r*sr + br]).

    r2d=None          -> no residual.
    r2d set, sr=None  -> identity residual (no dummy scale/shift operands).
    r2d, sr, br set   -> conv+BN residual.
    """
    M, Ncols = t2d.shape
    tm, Mp, padded = _row_tiling(M)
    if padded:
        t2d = jnp.pad(t2d, ((0, Mp - M), (0, 0)))
        if r2d is not None:
            r2d = jnp.pad(r2d, ((0, Mp - M), (0, 0)))
    grid = (Mp // tm,)
    row_spec = pl.BlockSpec((tm, Ncols), lambda i: (i, 0))
    vec_spec = pl.BlockSpec((1, Ncols), lambda i: (0, 0))
    cp = pltpu.CompilerParams(dimension_semantics=("parallel",))
    s2 = s.reshape(1, Ncols)
    b2 = b.reshape(1, Ncols)

    if r2d is None:
        out = pl.pallas_call(
            _bn_relu_kernel,
            out_shape=jax.ShapeDtypeStruct((Mp, Ncols), jnp.float32),
            grid=grid,
            in_specs=[row_spec, vec_spec, vec_spec],
            out_specs=row_spec,
            compiler_params=cp,
        )(t2d, s2, b2)
    elif sr is None:
        out = pl.pallas_call(
            _bn_addres_relu_kernel,
            out_shape=jax.ShapeDtypeStruct((Mp, Ncols), jnp.float32),
            grid=grid,
            in_specs=[row_spec, vec_spec, vec_spec, row_spec],
            out_specs=row_spec,
            compiler_params=cp,
        )(t2d, s2, b2, r2d)
    else:
        out = pl.pallas_call(
            _bn_res_relu_kernel,
            out_shape=jax.ShapeDtypeStruct((Mp, Ncols), jnp.float32),
            grid=grid,
            in_specs=[row_spec, vec_spec, vec_spec, row_spec, vec_spec, vec_spec],
            out_specs=row_spec,
            compiler_params=cp,
        )(t2d, s2, b2, r2d, sr.reshape(1, Ncols), br.reshape(1, Ncols))
    return out[:M] if padded else out


def pool_classifier(h3, w_col_bf16, bias_pad, V):
    """Fused global avg-pool over (T, V) + 1x1 classifier; logits padded to >=128 lanes."""
    N, T, VC = h3.shape
    Kp = w_col_bf16.shape[1]
    inv_tv = 1.0 / float(T * V)

    out = pl.pallas_call(
        _make_pool_fc_kernel(inv_tv),
        out_shape=jax.ShapeDtypeStruct((N, 1, Kp), jnp.float32),
        grid=(N,),
        in_specs=[pl.BlockSpec((1, T, VC), lambda n: (n, 0, 0)),
                  pl.BlockSpec((VC, Kp), lambda n: (0, 0)),
                  pl.BlockSpec((1, Kp), lambda n: (0, 0))],
        out_specs=pl.BlockSpec((1, 1, Kp), lambda n: (n, 0, 0)),
        compiler_params=pltpu.CompilerParams(
            dimension_semantics=("parallel",)),
    )(h3, w_col_bf16, bias_pad.reshape(1, Kp).astype(jnp.float32))
    return out[:, 0, :]


# ---------------------------------------------------------------------------
# Model glue (tiny per-forward folds / BN statistics stay in plain JAX)
# ---------------------------------------------------------------------------

def _bn_affine_from_stats(stats, n_rows, V, C, gamma, beta):
    """Per-channel BN scale/shift from per-(v,c)-column [sum, sumsq] statistics."""
    cnt = float(n_rows * V)
    csum = stats[0].reshape(V, C).sum(axis=0)
    csq = stats[1].reshape(V, C).sum(axis=0)
    mean = csum / cnt
    var = jnp.maximum(csq / cnt - mean * mean, 0.0)       # biased variance
    scale = gamma * jax.lax.rsqrt(var + _EPS)
    shift = beta - mean * scale
    return jnp.tile(scale, V), jnp.tile(shift, V)          # broadcast to (v, c) columns


def _make_selector(T, T_out, kt, pad, stride):
    """0/1 matrices S[dt, t_out, t_in] realising stride + zero temporal padding.

    Built with numpy (shapes are static under jit) so they are baked constants.
    0/1 values are exact in bf16.
    """
    t_in = np.arange(T)[None, None, :]
    t_out = np.arange(T_out)[None, :, None]
    dt = np.arange(kt)[:, None, None]
    sel = (t_in == (stride * t_out + dt - pad)).astype(np.float32)
    return jnp.asarray(sel, dtype=jnp.bfloat16)


def st_gcn_block(x3, A_eff, p, *, kt, V, stride, residual):
    """One st_gcn block.  x3: (N, T, V*Cin) -> (N, T_out, V*Cout)."""
    N, T, VCin = x3.shape
    Cin = VCin // V
    Cout = p["bn1_gamma"].shape[0]
    VCout = V * Cout
    pad = (kt - 1) // 2
    T_out = (T + 2 * pad - kt) // stride + 1

    # --- graph conv folded with A_eff into one lane-dense matmul (+ BN1 stats) ---
    Wbig = jnp.einsum('kvw,kcf->vfwc', A_eff, p["Wg3"]).reshape(VCin, VCout)
    bbig = jnp.einsum('kvw,kc->wc', A_eff, p["bg2"]).reshape(VCout)
    z2d, gstats = matmul_stats(x3.reshape(N * T, VCin),
                               Wbig.astype(jnp.bfloat16), bbig)
    s1, b1 = _bn_affine_from_stats(gstats, N * T, V, Cout,
                                   p["bn1_gamma"], p["bn1_beta"])

    # --- temporal conv with BN1-apply + ReLU fused in the prologue (+ BN2 stats) ---
    # TODO(synk): dropout is identity (rate 0 / eval); quant stubs are float no-ops.
    sel = _make_selector(T, T_out, kt, pad, stride)
    t3, tstats = tcn_conv(z2d.reshape(N, T, VCout), s1, b1, sel,
                          p["Wt_big"], p["bt_col"])
    s2, b2 = _bn_affine_from_stats(tstats, N * T_out, V, Cout,
                                   p["bn2_gamma"], p["bn2_beta"])
    t2d = t3.reshape(N * T_out, VCout)

    # --- BN2-apply + residual + ReLU, fused into a single elementwise kernel ---
    if not residual:
        out2d = fused_bn_residual_relu(t2d, s2, b2)
    elif Cin == Cout and stride == 1:
        out2d = fused_bn_residual_relu(t2d, s2, b2, r2d=x3.reshape(N * T, VCout))
    else:
        xs = x3[:, ::stride]                               # (N, T_out, V*Cin)
        r2d, rstats = matmul_stats(xs.reshape(N * T_out, VCin),
                                   p["Wr_big"], p["br_col"])
        sr, br = _bn_affine_from_stats(rstats, N * T_out, V, Cout,
                                       p["bnr_gamma"], p["bnr_beta"])
        out2d = fused_bn_residual_relu(t2d, s2, b2, r2d=r2d, sr=sr, br=br)

    return out2d.reshape(N, T_out, VCout)


def model_forward(x, params, A, *, layer_cfg, kt, V, num_classes):
    """x: (N, C, T, V) float32 (PyTorch NCHW).  Returns (N, num_classes, 1, 1)."""
    N, C, T, _ = x.shape

    # channel-last, columns ordered (v, c) to match data_bn's V*C channel index
    xc = jnp.transpose(x, (0, 2, 3, 1)).reshape(N, T, V * C)
    u2d = xc.reshape(N * T, V * C)

    # data_bn (training-mode batch statistics, see header note); the affine is
    # folded into the fcn_in weight so data_bn + fcn_in is ONE matmul call.
    mean = jnp.mean(u2d, axis=0)
    var = jnp.var(u2d, axis=0)
    s_d = params["data_bn_gamma"] * jax.lax.rsqrt(var + _EPS)
    b_d = params["data_bn_beta"] - mean * s_d
    W_in_eff = (s_d[:, None] * params["Win_big"]).astype(jnp.bfloat16)
    b_in_eff = b_d @ params["Win_big"] + params["bin_col"]
    h2d = matmul_bias(u2d, W_in_eff, b_in_eff)
    h3 = h2d.reshape(N, T, -1)

    for lp, cfg in zip(params["layers"], layer_cfg):
        A_eff = A * lp["importance"]                        # learnable edge importance
        h3 = st_gcn_block(h3, A_eff, lp, kt=kt, V=V,
                          stride=cfg["stride"], residual=bool(cfg["residual"]))

    logits_pad = pool_classifier(h3, params["Wfc_col"], params["bfc_pad"], V)
    return logits_pad[:, :num_classes].reshape(N, num_classes, 1, 1)


# ---------------------------------------------------------------------------
# Deterministic parameter / graph construction
# ---------------------------------------------------------------------------

def build_adjacency(V, K):
    """Deterministic (K, V, V) adjacency: self-links, forward chain, backward chain."""
    eye = jnp.eye(V, dtype=jnp.float32)
    up = jnp.zeros((V, V), jnp.float32).at[jnp.arange(V - 1), jnp.arange(1, V)].set(1.0)
    down = up.T

    def norm(a):
        d = jnp.maximum(a.sum(axis=0, keepdims=True), 1.0)
        return a / d

    A = jnp.stack([eye, norm(up), norm(down)], axis=0)
    assert A.shape[0] == K
    return A


def init_params(key, *, in_feat, V, K, kt, layer_cfg, num_classes):
    """All weights pre-folded / pre-transposed once (block-diagonal per-node forms)."""
    keys = iter(jax.random.split(key, 128))
    eyeV = jnp.eye(V, dtype=jnp.float32)

    def lin(cout, cin):
        w = jax.random.normal(next(keys), (cout, cin), jnp.float32) / jnp.sqrt(cin)
        b = jax.random.normal(next(keys), (cout,), jnp.float32) * 0.01
        return w, b

    params = {}
    C0 = layer_cfg[0]["cin"]
    params["data_bn_gamma"] = jnp.ones((V * in_feat,), jnp.float32)
    params["data_bn_beta"] = jnp.zeros((V * in_feat,), jnp.float32)
    Win, bin_ = lin(C0, in_feat)
    params["Win_big"] = jnp.einsum('vw,of->vfwo', eyeV, Win).reshape(V * in_feat, V * C0)
    params["bin_col"] = jnp.tile(bin_, V)

    layers = []
    for cfg in layer_cfg:
        cin, cout = cfg["cin"], cfg["cout"]
        lp = {}
        Wg, bg = lin(K * cout, cin)
        lp["Wg3"] = Wg.reshape(K, cout, cin)                # folded with A per forward
        lp["bg2"] = bg.reshape(K, cout)
        lp["bn1_gamma"] = jnp.ones((cout,), jnp.float32)
        lp["bn1_beta"] = jnp.zeros((cout,), jnp.float32)
        Wt = jax.random.normal(next(keys), (cout, cout, kt), jnp.float32) / jnp.sqrt(cout * kt)
        bt = jax.random.normal(next(keys), (cout,), jnp.float32) * 0.01
        lp["Wt_big"] = jnp.einsum('vw,oik->kviwo', eyeV, Wt).reshape(
            kt, V * cout, V * cout).astype(jnp.bfloat16)    # block-diag per node
        lp["bt_col"] = jnp.tile(bt, V)
        lp["bn2_gamma"] = jnp.ones((cout,), jnp.float32)
        lp["bn2_beta"] = jnp.zeros((cout,), jnp.float32)
        if cfg["residual"] and not (cin == cout and cfg["stride"] == 1):
            Wr, br = lin(cout, cin)
            lp["Wr_big"] = jnp.einsum('vw,oi->viwo', eyeV, Wr).reshape(
                V * cin, V * cout).astype(jnp.bfloat16)
            lp["br_col"] = jnp.tile(br, V)
            lp["bnr_gamma"] = jnp.ones((cout,), jnp.float32)
            lp["bnr_beta"] = jnp.zeros((cout,), jnp.float32)
        lp["importance"] = jnp.ones((K, V, V), jnp.float32)  # torch.ones init
        layers.append(lp)
    params["layers"] = layers

    C_last = layer_cfg[-1]["cout"]
    Wfc, bfc = lin(num_classes, C_last)
    Kp = max(128, _round_up(num_classes, 128))
    Wfc_col = jnp.tile(Wfc.T, (V, 1))                        # (V*C_last, num_classes)
    params["Wfc_col"] = jnp.pad(Wfc_col, ((0, 0), (0, Kp - num_classes))).astype(jnp.bfloat16)
    params["bfc_pad"] = jnp.pad(bfc, (0, Kp - num_classes))
    return params


# ---------------------------------------------------------------------------

if __name__ == "__main__":
    N, C, T, V, K, kt = 2, 4, 8, 16, 3, 3
    num_classes = 10
    layer_cfg = [
        {"cin": 16, "cout": 16, "stride": 1, "residual": True},   # identity residual
        {"cin": 16, "cout": 32, "stride": 2, "residual": True},   # conv+BN residual
    ]

    key = jax.random.PRNGKey(0)
    kx, kp = jax.random.split(key)
    x = jax.random.normal(kx, (N, C, T, V), jnp.float32)
    A = build_adjacency(V, K)
    params = init_params(kp, in_feat=C, V=V, K=K, kt=kt,
                         layer_cfg=layer_cfg, num_classes=num_classes)

    fwd = jax.jit(functools.partial(model_forward, layer_cfg=layer_cfg,
                                    kt=kt, V=V, num_classes=num_classes))
    out = fwd(x, params, A)
    out = jax.block_until_ready(out)
    assert out.shape == (N, num_classes, 1, 1), out.shape
    assert bool(jnp.all(jnp.isfinite(out)))
    print("KERNEL_OK")
</pallas_src>

<mosaic_0001>
module attributes {stable_mosaic.version = 11 : i64} {
  func.func @_matmul_bias_kernel(%arg0: i32, %arg1: memref<16x64xf32, #tpu.memory_space<vmem>>, %arg2: memref<64x256xbf16, #tpu.memory_space<vmem>>, %arg3: memref<1x256xf32, #tpu.memory_space<vmem>>, %arg4: memref<16x256xf32, #tpu.memory_space<vmem>>) attributes {dimension_semantics = [#tpu.dimension_semantics<parallel>], iteration_bounds = array<i64: 1>, scalar_prefetch = 0 : i64, scratch_operands = 0 : i64, tpu.core_type = #tpu.core_type<tc>, window_params = [{transform_indices = @transform_0, window_bounds = array<i64: 16, 64>}, {pipeline_mode = #tpu.pipeline_mode<synchronous>, transform_indices = @transform_1, window_bounds = array<i64: 64, 256>}, {pipeline_mode = #tpu.pipeline_mode<synchronous>, transform_indices = @transform_2, window_bounds = array<i64: 1, 256>}, {transform_indices = @transform_3, window_bounds = array<i64: 16, 256>}]} {
    %c0 = arith.constant 0 : index
    %c0_0 = arith.constant 0 : index
    %0 = vector.load %arg1[%c0, %c0_0] : memref<16x64xf32, #tpu.memory_space<vmem>>, vector<16x64xf32>
    %1 = arith.truncf %0 : vector<16x64xf32> to vector<16x64xbf16>
    %c0_1 = arith.constant 0 : index
    %c0_2 = arith.constant 0 : index
    %2 = vector.load %arg2[%c0_1, %c0_2] : memref<64x256xbf16, #tpu.memory_space<vmem>>, vector<64x256xbf16>
    %cst = arith.constant dense<0.000000e+00> : vector<16x256xf32>
    %3 = tpu.matmul %1, %2, %cst {dimension_numbers = #tpu.dot_dimension_numbers<[1], [0], [0], [1], [0, 0, 1, 1], [], []>} : vector<16x64xbf16>, vector<64x256xbf16>, vector<16x256xf32> -> vector<16x256xf32>
    %c0_3 = arith.constant 0 : index
    %c0_4 = arith.constant 0 : index
    %4 = vector.load %arg3[%c0_3, %c0_4] : memref<1x256xf32, #tpu.memory_space<vmem>>, vector<1x256xf32>
    %5 = vector.broadcast %4 : vector<1x256xf32> to vector<16x256xf32>
    %6 = arith.addf %3, %5 : vector<16x256xf32>
    %c0_5 = arith.constant 0 : index
    %c0_6 = arith.constant 0 : index
    %7 = vector.load %arg4[%c0_5, %c0_6] : memref<16x256xf32, #tpu.memory_space<vmem>>, vector<16x256xf32>
    tpu.vector_store %arg4[%c0_5, %c0_6], %6 {strides = array<i32>} : memref<16x256xf32, #tpu.memory_space<vmem>>, vector<16x256xf32>,
    return
  }
  func.func @transform_0(%arg0: i32) -> (i32, i32) {
    %c0_i32 = arith.constant 0 : i32
    %c0_i32_0 = arith.constant 0 : i32
    return %arg0, %c0_i32 : i32, i32
  }
  func.func @transform_1(%arg0: i32) -> (i32, i32) {
    %c0_i32 = arith.constant 0 : i32
    %c0_i32_0 = arith.constant 0 : i32
    %c0_i32_1 = arith.constant 0 : i32
    return %c0_i32, %c0_i32_0 : i32, i32
  }
  func.func @transform_2(%arg0: i32) -> (i32, i32) {
    %c0_i32 = arith.constant 0 : i32
    %c0_i32_0 = arith.constant 0 : i32
    %c0_i32_1 = arith.constant 0 : i32
    return %c0_i32, %c0_i32_0 : i32, i32
  }
  func.func @transform_3(%arg0: i32) -> (i32, i32) {
    %c0_i32 = arith.constant 0 : i32
    %c0_i32_0 = arith.constant 0 : i32
    return %arg0, %c0_i32 : i32, i32
  }
}

module attributes {stable_mosaic.version = 11 : i64} {
  func.func @kern(%arg0: i32, %arg1: memref<16x256xf32, #tpu.memory_space<vmem>>, %arg2: memref<256x256xbf16, #tpu.memory_space<vmem>>, %arg3: memref<1x256xf32, #tpu.memory_space<vmem>>, %arg4: memref<16x256xf32, #tpu.memory_space<vmem>>, %arg5: memref<1x2x256xf32, #tpu.memory_space<vmem>>) attributes {dimension_semantics = [#tpu.dimension_semantics<parallel>], iteration_bounds = array<i64: 1>, scalar_prefetch = 0 : i64, scratch_operands = 0 : i64, tpu.core_type = #tpu.core_type<tc>, window_params = [{transform_indices = @transform_0, window_bounds = array<i64: 16, 256>}, {pipeline_mode = #tpu.pipeline_mode<synchronous>, transform_indices = @transform_1, window_bounds = array<i64: 256, 256>}, {pipeline_mode = #tpu.pipeline_mode<synchronous>, transform_indices = @transform_2, window_bounds = array<i64: 1, 256>}, {transform_indices = @transform_3, window_bounds = array<i64: 16, 256>}, {transform_indices = @transform_4, window_bounds = array<i64: 1, 2, 256>}]} {
    %c0 = arith.constant 0 : index
    %c0_0 = arith.constant 0 : index
    %0 = vector.load %arg1[%c0, %c0_0] : memref<16x256xf32, #tpu.memory_space<vmem>>, vector<16x256xf32>
    %1 = arith.truncf %0 : vector<16x256xf32> to vector<16x256xbf16>
    %c0_1 = arith.constant 0 : index
    %c0_2 = arith.constant 0 : index
    %2 = vector.load %arg2[%c0_1, %c0_2] : memref<256x256xbf16, #tpu.memory_space<vmem>>, vector<256x256xbf16>
    %cst = arith.constant dense<0.000000e+00> : vector<16x256xf32>
    %3 = tpu.matmul %1, %2, %cst {dimension_numbers = #tpu.dot_dimension_numbers<[1], [0], [0], [1], [0, 0, 1, 1], [], []>} : vector<16x256xbf16>, vector<256x256xbf16>, vector<16x256xf32> -> vector<16x256xf32>
    %c0_3 = arith.constant 0 : index
    %c0_4 = arith.constant 0 : index
    %4 = vector.load %arg3[%c0_3, %c0_4] : memref<1x256xf32, #tpu.memory_space<vmem>>, vector<1x256xf32>
    %5 = vector.broadcast %4 : vector<1x256xf32> to vector<16x256xf32>
    %6 = arith.addf %3, %5 : vector<16x256xf32>
    %c0_5 = arith.constant 0 : index
    %c0_6 = arith.constant 0 : index
    %7 = vector.load %arg4[%c0_5, %c0_6] : memref<16x256xf32, #tpu.memory_space<vmem>>, vector<16x256xf32>
    tpu.vector_store %arg4[%c0_5, %c0_6], %6 {strides = array<i32>} : memref<16x256xf32, #tpu.memory_space<vmem>>, vector<16x256xf32>,
    %cst_7 = arith.constant dense<0.000000e+00> : vector<256xf32>
    %8 = vector.multi_reduction <add>, %6, %cst_7 [0] : vector<16x256xf32> to vector<256xf32>
    %9 = vector.shape_cast %8 : vector<256xf32> to vector<1x256xf32>
    %10 = arith.mulf %6, %6 : vector<16x256xf32>
    %cst_8 = arith.constant dense<0.000000e+00> : vector<256xf32>
    %11 = vector.multi_reduction <add>, %10, %cst_8 [0] : vector<16x256xf32> to vector<256xf32>
    %12 = vector.shape_cast %11 : vector<256xf32> to vector<1x256xf32>
    %13 = tpu.concatenate %9, %12 in 0 : vector<1x256xf32>, vector<1x256xf32> -> vector<2x256xf32>
    %c0_9 = arith.constant 0 : index
    %c0_10 = arith.constant 0 : index
    %c0_11 = arith.constant 0 : index
    %14 = vector.load %arg5[%c0_9, %c0_10, %c0_11] : memref<1x2x256xf32, #tpu.memory_space<vmem>>, vector<1x2x256xf32>
    %15 = vector.shape_cast %14 : vector<1x2x256xf32> to vector<2x256xf32>
    %16 = vector.shape_cast %13 : vector<2x256xf32> to vector<1x2x256xf32>
    tpu.vector_store %arg5[%c0_9, %c0_10, %c0_11], %16 {strides = array<i32>} : memref<1x2x256xf32, #tpu.memory_space<vmem>>, vector<1x2x256xf32>,
    return
  }
  func.func @transform_0(%arg0: i32) -> (i32, i32) {
    %c0_i32 = arith.constant 0 : i32
    %c0_i32_0 = arith.constant 0 : i32
    return %arg0, %c0_i32 : i32, i32
  }
  func.func @transform_1(%arg0: i32) -> (i32, i32) {
    %c0_i32 = arith.constant 0 : i32
    %c0_i32_0 = arith.constant 0 : i32
    %c0_i32_1 = arith.constant 0 : i32
    return %c0_i32, %c0_i32_0 : i32, i32
  }
  func.func @transform_2(%arg0: i32) -> (i32, i32) {
    %c0_i32 = arith.constant 0 : i32
    %c0_i32_0 = arith.constant 0 : i32
    %c0_i32_1 = arith.constant 0 : i32
    return %c0_i32, %c0_i32_0 : i32, i32
  }
  func.func @transform_3(%arg0: i32) -> (i32, i32) {
    %c0_i32 = arith.constant 0 : i32
    %c0_i32_0 = arith.constant 0 : i32
    return %arg0, %c0_i32 : i32, i32
  }
  func.func @transform_4(%arg0: i32) -> (i32, i32, i32) {
    %c0_i32 = arith.constant 0 : i32
    %c0_i32_0 = arith.constant 0 : i32
    %c0_i32_1 = arith.constant 0 : i32
    return %arg0, %c0_i32, %c0_i32_0 : i32, i32, i32
  }
}

module attributes {stable_mosaic.version = 11 : i64} {
  func.func @_tcn_kernel(%arg0: i32, %arg1: memref<1x8x256xf32, #tpu.memory_space<vmem>>, %arg2: memref<1x256xf32, #tpu.memory_space<vmem>>, %arg3: memref<1x256xf32, #tpu.memory_space<vmem>>, %arg4: memref<3x8x8xbf16, #tpu.memory_space<vmem>>, %arg5: memref<3x256x256xbf16, #tpu.memory_space<vmem>>, %arg6: memref<1x256xf32, #tpu.memory_space<vmem>>, %arg7: memref<1x8x256xf32, #tpu.memory_space<vmem>>, %arg8: memref<1x2x256xf32, #tpu.memory_space<vmem>>) attributes {dimension_semantics = [#tpu.dimension_semantics<parallel>], iteration_bounds = array<i64: 2>, scalar_prefetch = 0 : i64, scratch_operands = 0 : i64, tpu.core_type = #tpu.core_type<tc>, window_params = [{transform_indices = @transform_0, window_bounds = array<i64: 1, 8, 256>}, {pipeline_mode = #tpu.pipeline_mode<synchronous>, transform_indices = @transform_1, window_bounds = array<i64: 1, 256>}, {pipeline_mode = #tpu.pipeline_mode<synchronous>, transform_indices = @transform_2, window_bounds = array<i64: 1, 256>}, {pipeline_mode = #tpu.pipeline_mode<synchronous>, transform_indices = @transform_3, window_bounds = array<i64: 3, 8, 8>}, {pipeline_mode = #tpu.pipeline_mode<synchronous>, transform_indices = @transform_4, window_bounds = array<i64: 3, 256, 256>}, {pipeline_mode = #tpu.pipeline_mode<synchronous>, transform_indices = @transform_5, window_bounds = array<i64: 1, 256>}, {transform_indices = @transform_6, window_bounds = array<i64: 1, 8, 256>}, {transform_indices = @transform_7, window_bounds = array<i64: 1, 2, 256>}]} {
    %c0 = arith.constant 0 : index
    %c0_0 = arith.constant 0 : index
    %c0_1 = arith.constant 0 : index
    %0 = vector.load %arg1[%c0, %c0_0, %c0_1] : memref<1x8x256xf32, #tpu.memory_space<vmem>>, vector<1x8x256xf32>
    %1 = vector.shape_cast %0 : vector<1x8x256xf32> to vector<8x256xf32>
    %c0_2 = arith.constant 0 : index
    %c0_3 = arith.constant 0 : index
    %2 = vector.load %arg2[%c0_2, %c0_3] : memref<1x256xf32, #tpu.memory_space<vmem>>, vector<1x256xf32>
    %3 = vector.broadcast %2 : vector<1x256xf32> to vector<8x256xf32>
    %4 = arith.mulf %1, %3 : vector<8x256xf32>
    %c0_4 = arith.constant 0 : index
    %c0_5 = arith.constant 0 : index
    %5 = vector.load %arg3[%c0_4, %c0_5] : memref<1x256xf32, #tpu.memory_space<vmem>>, vector<1x256xf32>
    %6 = vector.broadcast %5 : vector<1x256xf32> to vector<8x256xf32>
    %7 = arith.addf %4, %6 : vector<8x256xf32>
    %cst = arith.constant 0.000000e+00 : f32
    %8 = vector.broadcast %cst : f32 to vector<8x256xf32>
    %9 = arith.maximumf %7, %8 : vector<8x256xf32>
    %10 = arith.truncf %9 : vector<8x256xf32> to vector<8x256xbf16>
    %c0_6 = arith.constant 0 : index
    %c0_7 = arith.constant 0 : index
    %c0_8 = arith.constant 0 : index
    %11 = vector.load %arg4[%c0_6, %c0_7, %c0_8] : memref<3x8x8xbf16, #tpu.memory_space<vmem>>, vector<1x8x8xbf16>
    %12 = vector.shape_cast %11 : vector<1x8x8xbf16> to vector<8x8xbf16>
    %cst_9 = arith.constant dense<0.000000e+00> : vector<8x256xf32>
    %13 = tpu.matmul %12, %10, %cst_9 {dimension_numbers = #tpu.dot_dimension_numbers<[1], [0], [0], [1], [0, 0, 1, 1], [], []>} : vector<8x8xbf16>, vector<8x256xbf16>, vector<8x256xf32> -> vector<8x256xf32>
    %14 = arith.truncf %13 : vector<8x256xf32> to vector<8x256xbf16>
    %c0_10 = arith.constant 0 : index
    %c0_11 = arith.constant 0 : index
    %c0_12 = arith.constant 0 : index
    %15 = vector.load %arg5[%c0_10, %c0_11, %c0_12] : memref<3x256x256xbf16, #tpu.memory_space<vmem>>, vector<1x256x256xbf16>
    %16 = vector.shape_cast %15 : vector<1x256x256xbf16> to vector<256x256xbf16>
    %cst_13 = arith.constant dense<0.000000e+00> : vector<8x256xf32>
    %17 = tpu.matmul %14, %16, %cst_13 {dimension_numbers = #tpu.dot_dimension_numbers<[1], [0], [0], [1], [0, 0, 1, 1], [], []>} : vector<8x256xbf16>, vector<256x256xbf16>, vector<8x256xf32> -> vector<8x256xf32>
    %c1 = arith.constant 1 : index
    %c0_14 = arith.constant 0 : index
    %c0_15 = arith.constant 0 : index
    %18 = vector.load %arg4[%c1, %c0_14, %c0_15] : memref<3x8x8xbf16, #tpu.memory_space<vmem>>, vector<1x8x8xbf16>
    %19 = vector.shape_cast %18 : vector<1x8x8xbf16> to vector<8x8xbf16>
    %cst_16 = arith.constant dense<0.000000e+00> : vector<8x256xf32>
    %20 = tpu.matmul %19, %10, %cst_16 {dimension_numbers = #tpu.dot_dimension_numbers<[1], [0], [0], [1], [0, 0, 1, 1], [], []>} : vector<8x8xbf16>, vector<8x256xbf16>, vector<8x256xf32> -> vector<8x256xf32>
    %21 = arith.truncf %20 : vector<8x256xf32> to vector<8x256xbf16>
    %c1_17 = arith.constant 1 : index
    %c0_18 = arith.constant 0 : index
    %c0_19 = arith.constant 0 : index
    %22 = vector.load %arg5[%c1_17, %c0_18, %c0_19] : memref<3x256x256xbf16, #tpu.memory_space<vmem>>, vector<1x256x256xbf16>
    %23 = vector.shape_cast %22 : vector<1x256x256xbf16> to vector<256x256xbf16>
    %cst_20 = arith.constant dense<0.000000e+00> : vector<8x256xf32>
    %24 = tpu.matmul %21, %23, %cst_20 {dimension_numbers = #tpu.dot_dimension_numbers<[1], [0], [0], [1], [0, 0, 1, 1], [], []>} : vector<8x256xbf16>, vector<256x256xbf16>, vector<8x256xf32> -> vector<8x256xf32>
    %25 = arith.addf %17, %24 : vector<8x256xf32>
    %c2 = arith.constant 2 : index
    %c0_21 = arith.constant 0 : index
    %c0_22 = arith.constant 0 : index
    %26 = vector.load %arg4[%c2, %c0_21, %c0_22] : memref<3x8x8xbf16, #tpu.memory_space<vmem>>, vector<1x8x8xbf16>
    %27 = vector.shape_cast %26 : vector<1x8x8xbf16> to vector<8x8xbf16>
    %cst_23 = arith.constant dense<0.000000e+00> : vector<8x256xf32>
    %28 = tpu.matmul %27, %10, %cst_23 {dimension_numbers = #tpu.dot_dimension_numbers<[1], [0], [0], [1], [0, 0, 1, 1], [], []>} : vector<8x8xbf16>, vector<8x256xbf16>, vector<8x256xf32> -> vector<8x256xf32>
    %29 = arith.truncf %28 : vector<8x256xf32> to vector<8x256xbf16>
    %c2_24 = arith.constant 2 : index
    %c0_25 = arith.constant 0 : index
    %c0_26 = arith.constant 0 : index
    %30 = vector.load %arg5[%c2_24, %c0_25, %c0_26] : memref<3x256x256xbf16, #tpu.memory_space<vmem>>, vector<1x256x256xbf16>
    %31 = vector.shape_cast %30 : vector<1x256x256xbf16> to vector<256x256xbf16>
    %cst_27 = arith.constant dense<0.000000e+00> : vector<8x256xf32>
    %32 = tpu.matmul %29, %31, %cst_27 {dimension_numbers = #tpu.dot_dimension_numbers<[1], [0], [0], [1], [0, 0, 1, 1], [], []>} : vector<8x256xbf16>, vector<256x256xbf16>, vector<8x256xf32> -> vector<8x256xf32>
    %33 = arith.addf %25, %32 : vector<8x256xf32>
    %c0_28 = arith.constant 0 : index
    %c0_29 = arith.constant 0 : index
    %34 = vector.load %arg6[%c0_28, %c0_29] : memref<1x256xf32, #tpu.memory_space<vmem>>, vector<1x256xf32>
    %35 = vector.broadcast %34 : vector<1x256xf32> to vector<8x256xf32>
    %36 = arith.addf %33, %35 : vector<8x256xf32>
    %c0_30 = arith.constant 0 : index
    %c0_31 = arith.constant 0 : index
    %c0_32 = arith.constant 0 : index
    %37 = vector.load %arg7[%c0_30, %c0_31, %c0_32] : memref<1x8x256xf32, #tpu.memory_space<vmem>>, vector<1x8x256xf32>
    %38 = vector.shape_cast %37 : vector<1x8x256xf32> to vector<8x256xf32>
    %39 = vector.shape_cast %36 : vector<8x256xf32> to vector<1x8x256xf32>
    tpu.vector_store %arg7[%c0_30, %c0_31, %c0_32], %39 {strides = array<i32>} : memref<1x8x256xf32, #tpu.memory_space<vmem>>, vector<1x8x256xf32>,
    %cst_33 = arith.constant dense<0.000000e+00> : vector<256xf32>
    %40 = vector.multi_reduction <add>, %36, %cst_33 [0] : vector<8x256xf32> to vector<256xf32>
    %41 = vector.shape_cast %40 : vector<256xf32> to vector<1x256xf32>
    %42 = arith.mulf %36, %36 : vector<8x256xf32>
    %cst_34 = arith.constant dense<0.000000e+00> : vector<256xf32>
    %43 = vector.multi_reduction <add>, %42, %cst_34 [0] : vector<8x256xf32> to vector<256xf32>
    %44 = vector.shape_cast %43 : vector<256xf32> to vector<1x256xf32>
    %45 = tpu.concatenate %41, %44 in 0 : vector<1x256xf32>, vector<1x256xf32> -> vector<2x256xf32>
    %c0_35 = arith.constant 0 : index
    %c0_36 = arith.constant 0 : index
    %c0_37 = arith.constant 0 : index
    %46 = vector.load %arg8[%c0_35, %c0_36, %c0_37] : memref<1x2x256xf32, #tpu.memory_space<vmem>>, vector<1x2x256xf32>
    %47 = vector.shape_cast %46 : vector<1x2x256xf32> to vector<2x256xf32>
    %48 = vector.shape_cast %45 : vector<2x256xf32> to vector<1x2x256xf32>
    tpu.vector_store %arg8[%c0_35, %c0_36, %c0_37], %48 {strides = array<i32>} : memref<1x2x256xf32, #tpu.memory_space<vmem>>, vector<1x2x256xf32>,
    return
  }
  func.func @transform_0(%arg0: i32) -> (i32, i32, i32) {
    %c0_i32 = arith.constant 0 : i32
    %c0_i32_0 = arith.constant 0 : i32
    %c0_i32_1 = arith.constant 0 : i32
    return %arg0, %c0_i32, %c0_i32_0 : i32, i32, i32
  }
  func.func @transform_1(%arg0: i32) -> (i32, i32) {
    %c0_i32 = arith.constant 0 : i32
    %c0_i32_0 = arith.constant 0 : i32
    %c0_i32_1 = arith.constant 0 : i32
    return %c0_i32, %c0_i32_0 : i32, i32
  }
  func.func @transform_2(%arg0: i32) -> (i32, i32) {
    %c0_i32 = arith.constant 0 : i32
    %c0_i32_0 = arith.constant 0 : i32
    %c0_i32_1 = arith.constant 0 : i32
    return %c0_i32, %c0_i32_0 : i32, i32
  }
  func.func @transform_3(%arg0: i32) -> (i32, i32, i32) {
    %c0_i32 = arith.constant 0 : i32
    %c0_i32_0 = arith.constant 0 : i32
    %c0_i32_1 = arith.constant 0 : i32
    %c0_i32_2 = arith.constant 0 : i32
    return %c0_i32, %c0_i32_0, %c0_i32_1 : i32, i32, i32
  }
  func.func @transform_4(%arg0: i32) -> (i32, i32, i32) {
    %c0_i32 = arith.constant 0 : i32
    %c0_i32_0 = arith.constant 0 : i32
    %c0_i32_1 = arith.constant 0 : i32
    %c0_i32_2 = arith.constant 0 : i32
    return %c0_i32, %c0_i32_0, %c0_i32_1 : i32, i32, i32
  }
  func.func @transform_5(%arg0: i32) -> (i32, i32) {
    %c0_i32 = arith.constant 0 : i32
    %c0_i32_0 = arith.constant 0 : i32
    %c0_i32_1 = arith.constant 0 : i32
    return %c0_i32, %c0_i32_0 : i32, i32
  }
  func.func @transform_6(%arg0: i32) -> (i32, i32, i32) {
    %c0_i32 = arith.constant 0 : i32
    %c0_i32_0 = arith.constant 0 : i32
    %c0_i32_1 = arith.constant 0 : i32
    return %arg0, %c0_i32, %c0_i32_0 : i32, i32, i32
  }
  func.func @transform_7(%arg0: i32) -> (i32, i32, i32) {
    %c0_i32 = arith.constant 0 : i32
    %c0_i32_0 = arith.constant 0 : i32
    %c0_i32_1 = arith.constant 0 : i32
    return %arg0, %c0_i32, %c0_i32_0 : i32, i32, i32
  }
}

module attributes {stable_mosaic.version = 11 : i64} {
  func.func @_bn_addres_relu_kernel(%arg0: i32, %arg1: memref<16x256xf32, #tpu.memory_space<vmem>>, %arg2: memref<1x256xf32, #tpu.memory_space<vmem>>, %arg3: memref<1x256xf32, #tpu.memory_space<vmem>>, %arg4: memref<16x256xf32, #tpu.memory_space<vmem>>, %arg5: memref<16x256xf32, #tpu.memory_space<vmem>>) attributes {dimension_semantics = [#tpu.dimension_semantics<parallel>], iteration_bounds = array<i64: 1>, scalar_prefetch = 0 : i64, scratch_operands = 0 : i64, tpu.core_type = #tpu.core_type<tc>, window_params = [{transform_indices = @transform_0, window_bounds = array<i64: 16, 256>}, {pipeline_mode = #tpu.pipeline_mode<synchronous>, transform_indices = @transform_1, window_bounds = array<i64: 1, 256>}, {pipeline_mode = #tpu.pipeline_mode<synchronous>, transform_indices = @transform_2, window_bounds = array<i64: 1, 256>}, {transform_indices = @transform_3, window_bounds = array<i64: 16, 256>}, {transform_indices = @transform_4, window_bounds = array<i64: 16, 256>}]} {
    %c0 = arith.constant 0 : index
    %c0_0 = arith.constant 0 : index
    %0 = vector.load %arg1[%c0, %c0_0] : memref<16x256xf32, #tpu.memory_space<vmem>>, vector<16x256xf32>
    %c0_1 = arith.constant 0 : index
    %c0_2 = arith.constant 0 : index
    %1 = vector.load %arg2[%c0_1, %c0_2] : memref<1x256xf32, #tpu.memory_space<vmem>>, vector<1x256xf32>
    %2 = vector.broadcast %1 : vector<1x256xf32> to vector<16x256xf32>
    %3 = arith.mulf %0, %2 : vector<16x256xf32>
    %c0_3 = arith.constant 0 : index
    %c0_4 = arith.constant 0 : index
    %4 = vector.load %arg3[%c0_3, %c0_4] : memref<1x256xf32, #tpu.memory_space<vmem>>, vector<1x256xf32>
    %5 = vector.broadcast %4 : vector<1x256xf32> to vector<16x256xf32>
    %6 = arith.addf %3, %5 : vector<16x256xf32>
    %c0_5 = arith.constant 0 : index
    %c0_6 = arith.constant 0 : index
    %7 = vector.load %arg4[%c0_5, %c0_6] : memref<16x256xf32, #tpu.memory_space<vmem>>, vector<16x256xf32>
    %8 = arith.addf %6, %7 : vector<16x256xf32>
    %cst = arith.constant 0.000000e+00 : f32
    %9 = vector.broadcast %cst : f32 to vector<16x256xf32>
    %10 = arith.maximumf %8, %9 : vector<16x256xf32>
    %c0_7 = arith.constant 0 : index
    %c0_8 = arith.constant 0 : index
    %11 = vector.load %arg5[%c0_7, %c0_8] : memref<16x256xf32, #tpu.memory_space<vmem>>, vector<16x256xf32>
    tpu.vector_store %arg5[%c0_7, %c0_8], %10 {strides = array<i32>} : memref<16x256xf32, #tpu.memory_space<vmem>>, vector<16x256xf32>,
    return
  }
  func.func @transform_0(%arg0: i32) -> (i32, i32) {
    %c0_i32 = arith.constant 0 : i32
    %c0_i32_0 = arith.constant 0 : i32
    return %arg0, %c0_i32 : i32, i32
  }
  func.func @transform_1(%arg0: i32) -> (i32, i32) {
    %c0_i32 = arith.constant 0 : i32
    %c0_i32_0 = arith.constant 0 : i32
    %c0_i32_1 = arith.constant 0 : i32
    return %c0_i32, %c0_i32_0 : i32, i32
  }
  func.func @transform_2(%arg0: i32) -> (i32, i32) {
    %c0_i32 = arith.constant 0 : i32
    %c0_i32_0 = arith.constant 0 : i32
    %c0_i32_1 = arith.constant 0 : i32
    return %c0_i32, %c0_i32_0 : i32, i32
  }
  func.func @transform_3(%arg0: i32) -> (i32, i32) {
    %c0_i32 = arith.constant 0 : i32
    %c0_i32_0 = arith.constant 0 : i32
    return %arg0, %c0_i32 : i32, i32
  }
  func.func @transform_4(%arg0: i32) -> (i32, i32) {
    %c0_i32 = arith.constant 0 : i32
    %c0_i32_0 = arith.constant 0 : i32
    return %arg0, %c0_i32 : i32, i32
  }
}

module attributes {stable_mosaic.version = 11 : i64} {
  func.func @kern(%arg0: i32, %arg1: memref<16x256xf32, #tpu.memory_space<vmem>>, %arg2: memref<256x512xbf16, #tpu.memory_space<vmem>>, %arg3: memref<1x512xf32, #tpu.memory_space<vmem>>, %arg4: memref<16x512xf32, #tpu.memory_space<vmem>>, %arg5: memref<1x2x512xf32, #tpu.memory_space<vmem>>) attributes {dimension_semantics = [#tpu.dimension_semantics<parallel>], iteration_bounds = array<i64: 1>, scalar_prefetch = 0 : i64, scratch_operands = 0 : i64, tpu.core_type = #tpu.core_type<tc>, window_params = [{transform_indices = @transform_0, window_bounds = array<i64: 16, 256>}, {pipeline_mode = #tpu.pipeline_mode<synchronous>, transform_indices = @transform_1, window_bounds = array<i64: 256, 512>}, {pipeline_mode = #tpu.pipeline_mode<synchronous>, transform_indices = @transform_2, window_bounds = array<i64: 1, 512>}, {transform_indices = @transform_3, window_bounds = array<i64: 16, 512>}, {transform_indices = @transform_4, window_bounds = array<i64: 1, 2, 512>}]} {
    %c0 = arith.constant 0 : index
    %c0_0 = arith.constant 0 : index
    %0 = vector.load %arg1[%c0, %c0_0] : memref<16x256xf32, #tpu.memory_space<vmem>>, vector<16x256xf32>
    %1 = arith.truncf %0 : vector<16x256xf32> to vector<16x256xbf16>
    %c0_1 = arith.constant 0 : index
    %c0_2 = arith.constant 0 : index
    %2 = vector.load %arg2[%c0_1, %c0_2] : memref<256x512xbf16, #tpu.memory_space<vmem>>, vector<256x512xbf16>
    %cst = arith.constant dense<0.000000e+00> : vector<16x512xf32>
    %3 = tpu.matmul %1, %2, %cst {dimension_numbers = #tpu.dot_dimension_numbers<[1], [0], [0], [1], [0, 0, 1, 1], [], []>} : vector<16x256xbf16>, vector<256x512xbf16>, vector<16x512xf32> -> vector<16x512xf32>
    %c0_3 = arith.constant 0 : index
    %c0_4 = arith.constant 0 : index
    %4 = vector.load %arg3[%c0_3, %c0_4] : memref<1x512xf32, #tpu.memory_space<vmem>>, vector<1x512xf32>
    %5 = vector.broadcast %4 : vector<1x512xf32> to vector<16x512xf32>
    %6 = arith.addf %3, %5 : vector<16x512xf32>
    %c0_5 = arith.constant 0 : index
    %c0_6 = arith.constant 0 : index
    %7 = vector.load %arg4[%c0_5, %c0_6] : memref<16x512xf32, #tpu.memory_space<vmem>>, vector<16x512xf32>
    tpu.vector_store %arg4[%c0_5, %c0_6], %6 {strides = array<i32>} : memref<16x512xf32, #tpu.memory_space<vmem>>, vector<16x512xf32>,
    %cst_7 = arith.constant dense<0.000000e+00> : vector<512xf32>
    %8 = vector.multi_reduction <add>, %6, %cst_7 [0] : vector<16x512xf32> to vector<512xf32>
    %9 = vector.shape_cast %8 : vector<512xf32> to vector<1x512xf32>
    %10 = arith.mulf %6, %6 : vector<16x512xf32>
    %cst_8 = arith.constant dense<0.000000e+00> : vector<512xf32>
    %11 = vector.multi_reduction <add>, %10, %cst_8 [0] : vector<16x512xf32> to vector<512xf32>
    %12 = vector.shape_cast %11 : vector<512xf32> to vector<1x512xf32>
    %13 = tpu.concatenate %9, %12 in 0 : vector<1x512xf32>, vector<1x512xf32> -> vector<2x512xf32>
    %c0_9 = arith.constant 0 : index
    %c0_10 = arith.constant 0 : index
    %c0_11 = arith.constant 0 : index
    %14 = vector.load %arg5[%c0_9, %c0_10, %c0_11] : memref<1x2x512xf32, #tpu.memory_space<vmem>>, vector<1x2x512xf32>
    %15 = vector.shape_cast %14 : vector<1x2x512xf32> to vector<2x512xf32>
    %16 = vector.shape_cast %13 : vector<2x512xf32> to vector<1x2x512xf32>
    tpu.vector_store %arg5[%c0_9, %c0_10, %c0_11], %16 {strides = array<i32>} : memref<1x2x512xf32, #tpu.memory_space<vmem>>, vector<1x2x512xf32>,
    return
  }
  func.func @transform_0(%arg0: i32) -> (i32, i32) {
    %c0_i32 = arith.constant 0 : i32
    %c0_i32_0 = arith.constant 0 : i32
    return %arg0, %c0_i32 : i32, i32
  }
  func.func @transform_1(%arg0: i32) -> (i32, i32) {
    %c0_i32 = arith.constant 0 : i32
    %c0_i32_0 = arith.constant 0 : i32
    %c0_i32_1 = arith.constant 0 : i32
    return %c0_i32, %c0_i32_0 : i32, i32
  }
  func.func @transform_2(%arg0: i32) -> (i32, i32) {
    %c0_i32 = arith.constant 0 : i32
    %c0_i32_0 = arith.constant 0 : i32
    %c0_i32_1 = arith.constant 0 : i32
    return %c0_i32, %c0_i32_0 : i32, i32
  }
  func.func @transform_3(%arg0: i32) -> (i32, i32) {
    %c0_i32 = arith.constant 0 : i32
    %c0_i32_0 = arith.constant 0 : i32
    return %arg0, %c0_i32 : i32, i32
  }
  func.func @transform_4(%arg0: i32) -> (i32, i32, i32) {
    %c0_i32 = arith.constant 0 : i32
    %c0_i32_0 = arith.constant 0 : i32
    %c0_i32_1 = arith.constant 0 : i32
    return %arg0, %c0_i32, %c0_i32_0 : i32, i32, i32
  }
}

module attributes {stable_mosaic.version = 11 : i64} {
  func.func @_tcn_kernel(%arg0: i32, %arg1: memref<1x8x512xf32, #tpu.memory_space<vmem>>, %arg2: memref<1x512xf32, #tpu.memory_space<vmem>>, %arg3: memref<1x512xf32, #tpu.memory_space<vmem>>, %arg4: memref<3x4x8xbf16, #tpu.memory_space<vmem>>, %arg5: memref<3x512x512xbf16, #tpu.memory_space<vmem>>, %arg6: memref<1x512xf32, #tpu.memory_space<vmem>>, %arg7: memref<1x4x512xf32, #tpu.memory_space<vmem>>, %arg8: memref<1x2x512xf32, #tpu.memory_space<vmem>>) attributes {dimension_semantics = [#tpu.dimension_semantics<parallel>], iteration_bounds = array<i64: 2>, scalar_prefetch = 0 : i64, scratch_operands = 0 : i64, tpu.core_type = #tpu.core_type<tc>, window_params = [{transform_indices = @transform_0, window_bounds = array<i64: 1, 8, 512>}, {pipeline_mode = #tpu.pipeline_mode<synchronous>, transform_indices = @transform_1, window_bounds = array<i64: 1, 512>}, {pipeline_mode = #tpu.pipeline_mode<synchronous>, transform_indices = @transform_2, window_bounds = array<i64: 1, 512>}, {pipeline_mode = #tpu.pipeline_mode<synchronous>, transform_indices = @transform_3, window_bounds = array<i64: 3, 4, 8>}, {pipeline_mode = #tpu.pipeline_mode<synchronous>, transform_indices = @transform_4, window_bounds = array<i64: 3, 512, 512>}, {pipeline_mode = #tpu.pipeline_mode<synchronous>, transform_indices = @transform_5, window_bounds = array<i64: 1, 512>}, {transform_indices = @transform_6, window_bounds = array<i64: 1, 4, 512>}, {transform_indices = @transform_7, window_bounds = array<i64: 1, 2, 512>}]} {
    %c0 = arith.constant 0 : index
    %c0_0 = arith.constant 0 : index
    %c0_1 = arith.constant 0 : index
    %0 = vector.load %arg1[%c0, %c0_0, %c0_1] : memref<1x8x512xf32, #tpu.memory_space<vmem>>, vector<1x8x512xf32>
    %1 = vector.shape_cast %0 : vector<1x8x512xf32> to vector<8x512xf32>
    %c0_2 = arith.constant 0 : index
    %c0_3 = arith.constant 0 : index
    %2 = vector.load %arg2[%c0_2, %c0_3] : memref<1x512xf32, #tpu.memory_space<vmem>>, vector<1x512xf32>
    %3 = vector.broadcast %2 : vector<1x512xf32> to vector<8x512xf32>
    %4 = arith.mulf %1, %3 : vector<8x512xf32>
    %c0_4 = arith.constant 0 : index
    %c0_5 = arith.constant 0 : index
    %5 = vector.load %arg3[%c0_4, %c0_5] : memref<1x512xf32, #tpu.memory_space<vmem>>, vector<1x512xf32>
    %6 = vector.broadcast %5 : vector<1x512xf32> to vector<8x512xf32>
    %7 = arith.addf %4, %6 : vector<8x512xf32>
    %cst = arith.constant 0.000000e+00 : f32
    %8 = vector.broadcast %cst : f32 to vector<8x512xf32>
    %9 = arith.maximumf %7, %8 : vector<8x512xf32>
    %10 = arith.truncf %9 : vector<8x512xf32> to vector<8x512xbf16>
    %c0_6 = arith.constant 0 : index
    %c0_7 = arith.constant 0 : index
    %c0_8 = arith.constant 0 : index
    %11 = vector.load %arg4[%c0_6, %c0_7, %c0_8] : memref<3x4x8xbf16, #tpu.memory_space<vmem>>, vector<1x4x8xbf16>
    %12 = vector.shape_cast %11 : vector<1x4x8xbf16> to vector<4x8xbf16>
    %cst_9 = arith.constant dense<0.000000e+00> : vector<4x512xf32>
    %13 = tpu.matmul %12, %10, %cst_9 {dimension_numbers = #tpu.dot_dimension_numbers<[1], [0], [0], [1], [0, 0, 1, 1], [], []>} : vector<4x8xbf16>, vector<8x512xbf16>, vector<4x512xf32> -> vector<4x512xf32>
    %14 = arith.truncf %13 : vector<4x512xf32> to vector<4x512xbf16>
    %c0_10 = arith.constant 0 : index
    %c0_11 = arith.constant 0 : index
    %c0_12 = arith.constant 0 : index
    %15 = vector.load %arg5[%c0_10, %c0_11, %c0_12] : memref<3x512x512xbf16, #tpu.memory_space<vmem>>, vector<1x512x512xbf16>
    %16 = vector.shape_cast %15 : vector<1x512x512xbf16> to vector<512x512xbf16>
    %cst_13 = arith.constant dense<0.000000e+00> : vector<4x512xf32>
    %17 = tpu.matmul %14, %16, %cst_13 {dimension_numbers = #tpu.dot_dimension_numbers<[1], [0], [0], [1], [0, 0, 1, 1], [], []>} : vector<4x512xbf16>, vector<512x512xbf16>, vector<4x512xf32> -> vector<4x512xf32>
    %c1 = arith.constant 1 : index
    %c0_14 = arith.constant 0 : index
    %c0_15 = arith.constant 0 : index
    %18 = vector.load %arg4[%c1, %c0_14, %c0_15] : memref<3x4x8xbf16, #tpu.memory_space<vmem>>, vector<1x4x8xbf16>
    %19 = vector.shape_cast %18 : vector<1x4x8xbf16> to vector<4x8xbf16>
    %cst_16 = arith.constant dense<0.000000e+00> : vector<4x512xf32>
    %20 = tpu.matmul %19, %10, %cst_16 {dimension_numbers = #tpu.dot_dimension_numbers<[1], [0], [0], [1], [0, 0, 1, 1], [], []>} : vector<4x8xbf16>, vector<8x512xbf16>, vector<4x512xf32> -> vector<4x512xf32>
    %21 = arith.truncf %20 : vector<4x512xf32> to vector<4x512xbf16>
    %c1_17 = arith.constant 1 : index
    %c0_18 = arith.constant 0 : index
    %c0_19 = arith.constant 0 : index
    %22 = vector.load %arg5[%c1_17, %c0_18, %c0_19] : memref<3x512x512xbf16, #tpu.memory_space<vmem>>, vector<1x512x512xbf16>
    %23 = vector.shape_cast %22 : vector<1x512x512xbf16> to vector<512x512xbf16>
    %cst_20 = arith.constant dense<0.000000e+00> : vector<4x512xf32>
    %24 = tpu.matmul %21, %23, %cst_20 {dimension_numbers = #tpu.dot_dimension_numbers<[1], [0], [0], [1], [0, 0, 1, 1], [], []>} : vector<4x512xbf16>, vector<512x512xbf16>, vector<4x512xf32> -> vector<4x512xf32>
    %25 = arith.addf %17, %24 : vector<4x512xf32>
    %c2 = arith.constant 2 : index
    %c0_21 = arith.constant 0 : index
    %c0_22 = arith.constant 0 : index
    %26 = vector.load %arg4[%c2, %c0_21, %c0_22] : memref<3x4x8xbf16, #tpu.memory_space<vmem>>, vector<1x4x8xbf16>
    %27 = vector.shape_cast %26 : vector<1x4x8xbf16> to vector<4x8xbf16>
    %cst_23 = arith.constant dense<0.000000e+00> : vector<4x512xf32>
    %28 = tpu.matmul %27, %10, %cst_23 {dimension_numbers = #tpu.dot_dimension_numbers<[1], [0], [0], [1], [0, 0, 1, 1], [], []>} : vector<4x8xbf16>, vector<8x512xbf16>, vector<4x512xf32> -> vector<4x512xf32>
    %29 = arith.truncf %28 : vector<4x512xf32> to vector<4x512xbf16>
    %c2_24 = arith.constant 2 : index
    %c0_25 = arith.constant 0 : index
    %c0_26 = arith.constant 0 : index
    %30 = vector.load %arg5[%c2_24, %c0_25, %c0_26] : memref<3x512x512xbf16, #tpu.memory_space<vmem>>, vector<1x512x512xbf16>
    %31 = vector.shape_cast %30 : vector<1x512x512xbf16> to vector<512x512xbf16>
    %cst_27 = arith.constant dense<0.000000e+00> : vector<4x512xf32>
    %32 = tpu.matmul %29, %31, %cst_27 {dimension_numbers = #tpu.dot_dimension_numbers<[1], [0], [0], [1], [0, 0, 1, 1], [], []>} : vector<4x512xbf16>, vector<512x512xbf16>, vector<4x512xf32> -> vector<4x512xf32>
    %33 = arith.addf %25, %32 : vector<4x512xf32>
    %c0_28 = arith.constant 0 : index
    %c0_29 = arith.constant 0 : index
    %34 = vector.load %arg6[%c0_28, %c0_29] : memref<1x512xf32, #tpu.memory_space<vmem>>, vector<1x512xf32>
    %35 = vector.broadcast %34 : vector<1x512xf32> to vector<4x512xf32>
    %36 = arith.addf %33, %35 : vector<4x512xf32>
    %c0_30 = arith.constant 0 : index
    %c0_31 = arith.constant 0 : index
    %c0_32 = arith.constant 0 : index
    %37 = vector.load %arg7[%c0_30, %c0_31, %c0_32] : memref<1x4x512xf32, #tpu.memory_space<vmem>>, vector<1x4x512xf32>
    %38 = vector.shape_cast %37 : vector<1x4x512xf32> to vector<4x512xf32>
    %39 = vector.shape_cast %36 : vector<4x512xf32> to vector<1x4x512xf32>
    tpu.vector_store %arg7[%c0_30, %c0_31, %c0_32], %39 {strides = array<i32>} : memref<1x4x512xf32, #tpu.memory_space<vmem>>, vector<1x4x512xf32>,
    %cst_33 = arith.constant dense<0.000000e+00> : vector<512xf32>
    %40 = vector.multi_reduction <add>, %36, %cst_33 [0] : vector<4x512xf32> to vector<512xf32>
    %41 = vector.shape_cast %40 : vector<512xf32> to vector<1x512xf32>
    %42 = arith.mulf %36, %36 : vector<4x512xf32>
    %cst_34 = arith.constant dense<0.000000e+00> : vector<512xf32>
    %43 = vector.multi_reduction <add>, %42, %cst_34 [0] : vector<4x512xf32> to vector<512xf32>
    %44 = vector.shape_cast %43 : vector<512xf32> to vector<1x512xf32>
    %45 = tpu.concatenate %41, %44 in 0 : vector<1x512xf32>, vector<1x512xf32> -> vector<2x512xf32>
    %c0_35 = arith.constant 0 : index
    %c0_36 = arith.constant 0 : index
    %c0_37 = arith.constant 0 : index
    %46 = vector.load %arg8[%c0_35, %c0_36, %c0_37] : memref<1x2x512xf32, #tpu.memory_space<vmem>>, vector<1x2x512xf32>
    %47 = vector.shape_cast %46 : vector<1x2x512xf32> to vector<2x512xf32>
    %48 = vector.shape_cast %45 : vector<2x512xf32> to vector<1x2x512xf32>
    tpu.vector_store %arg8[%c0_35, %c0_36, %c0_37], %48 {strides = array<i32>} : memref<1x2x512xf32, #tpu.memory_space<vmem>>, vector<1x2x512xf32>,
    return
  }
  func.func @transform_0(%arg0: i32) -> (i32, i32, i32) {
    %c0_i32 = arith.constant 0 : i32
    %c0_i32_0 = arith.constant 0 : i32
    %c0_i32_1 = arith.constant 0 : i32
    return %arg0, %c0_i32, %c0_i32_0 : i32, i32, i32
  }
  func.func @transform_1(%arg0: i32) -> (i32, i32) {
    %c0_i32 = arith.constant 0 : i32
    %c0_i32_0 = arith.constant 0 : i32
    %c0_i32_1 = arith.constant 0 : i32
    return %c0_i32, %c0_i32_0 : i32, i32
  }
  func.func @transform_2(%arg0: i32) -> (i32, i32) {
    %c0_i32 = arith.constant 0 : i32
    %c0_i32_0 = arith.constant 0 : i32
    %c0_i32_1 = arith.constant 0 : i32
    return %c0_i32, %c0_i32_0 : i32, i32
  }
  func.func @transform_3(%arg0: i32) -> (i32, i32, i32) {
    %c0_i32 = arith.constant 0 : i32
    %c0_i32_0 = arith.constant 0 : i32
    %c0_i32_1 = arith.constant 0 : i32
    %c0_i32_2 = arith.constant 0 : i32
    return %c0_i32, %c0_i32_0, %c0_i32_1 : i32, i32, i32
  }
  func.func @transform_4(%arg0: i32) -> (i32, i32, i32) {
    %c0_i32 = arith.constant 0 : i32
    %c0_i32_0 = arith.constant 0 : i32
    %c0_i32_1 = arith.constant 0 : i32
    %c0_i32_2 = arith.constant 0 : i32
    return %c0_i32, %c0_i32_0, %c0_i32_1 : i32, i32, i32
  }
  func.func @transform_5(%arg0: i32) -> (i32, i32) {
    %c0_i32 = arith.constant 0 : i32
    %c0_i32_0 = arith.constant 0 : i32
    %c0_i32_1 = arith.constant 0 : i32
    return %c0_i32, %c0_i32_0 : i32, i32
  }
  func.func @transform_6(%arg0: i32) -> (i32, i32, i32) {
    %c0_i32 = arith.constant 0 : i32
    %c0_i32_0 = arith.constant 0 : i32
    %c0_i32_1 = arith.constant 0 : i32
    return %arg0, %c0_i32, %c0_i32_0 : i32, i32, i32
  }
  func.func @transform_7(%arg0: i32) -> (i32, i32, i32) {
    %c0_i32 = arith.constant 0 : i32
    %c0_i32_0 = arith.constant 0 : i32
    %c0_i32_1 = arith.constant 0 : i32
    return %arg0, %c0_i32, %c0_i32_0 : i32, i32, i32
  }
}

module attributes {stable_mosaic.version = 11 : i64} {
  func.func @kern(%arg0: i32, %arg1: memref<8x256xf32, #tpu.memory_space<vmem>>, %arg2: memref<256x512xbf16, #tpu.memory_space<vmem>>, %arg3: memref<1x512xf32, #tpu.memory_space<vmem>>, %arg4: memref<8x512xf32, #tpu.memory_space<vmem>>, %arg5: memref<1x2x512xf32, #tpu.memory_space<vmem>>) attributes {dimension_semantics = [#tpu.dimension_semantics<parallel>], iteration_bounds = array<i64: 1>, scalar_prefetch = 0 : i64, scratch_operands = 0 : i64, tpu.core_type = #tpu.core_type<tc>, window_params = [{transform_indices = @transform_0, window_bounds = array<i64: 8, 256>}, {pipeline_mode = #tpu.pipeline_mode<synchronous>, transform_indices = @transform_1, window_bounds = array<i64: 256, 512>}, {pipeline_mode = #tpu.pipeline_mode<synchronous>, transform_indices = @transform_2, window_bounds = array<i64: 1, 512>}, {transform_indices = @transform_3, window_bounds = array<i64: 8, 512>}, {transform_indices = @transform_4, window_bounds = array<i64: 1, 2, 512>}]} {
    %c0 = arith.constant 0 : index
    %c0_0 = arith.constant 0 : index
    %0 = vector.load %arg1[%c0, %c0_0] : memref<8x256xf32, #tpu.memory_space<vmem>>, vector<8x256xf32>
    %1 = arith.truncf %0 : vector<8x256xf32> to vector<8x256xbf16>
    %c0_1 = arith.constant 0 : index
    %c0_2 = arith.constant 0 : index
    %2 = vector.load %arg2[%c0_1, %c0_2] : memref<256x512xbf16, #tpu.memory_space<vmem>>, vector<256x512xbf16>
    %cst = arith.constant dense<0.000000e+00> : vector<8x512xf32>
    %3 = tpu.matmul %1, %2, %cst {dimension_numbers = #tpu.dot_dimension_numbers<[1], [0], [0], [1], [0, 0, 1, 1], [], []>} : vector<8x256xbf16>, vector<256x512xbf16>, vector<8x512xf32> -> vector<8x512xf32>
    %c0_3 = arith.constant 0 : index
    %c0_4 = arith.constant 0 : index
    %4 = vector.load %arg3[%c0_3, %c0_4] : memref<1x512xf32, #tpu.memory_space<vmem>>, vector<1x512xf32>
    %5 = vector.broadcast %4 : vector<1x512xf32> to vector<8x512xf32>
    %6 = arith.addf %3, %5 : vector<8x512xf32>
    %c0_5 = arith.constant 0 : index
    %c0_6 = arith.constant 0 : index
    %7 = vector.load %arg4[%c0_5, %c0_6] : memref<8x512xf32, #tpu.memory_space<vmem>>, vector<8x512xf32>
    tpu.vector_store %arg4[%c0_5, %c0_6], %6 {strides = array<i32>} : memref<8x512xf32, #tpu.memory_space<vmem>>, vector<8x512xf32>,
    %cst_7 = arith.constant dense<0.000000e+00> : vector<512xf32>
    %8 = vector.multi_reduction <add>, %6, %cst_7 [0] : vector<8x512xf32> to vector<512xf32>
    %9 = vector.shape_cast %8 : vector<512xf32> to vector<1x512xf32>
    %10 = arith.mulf %6, %6 : vector<8x512xf32>
    %cst_8 = arith.constant dense<0.000000e+00> : vector<512xf32>
    %11 = vector.multi_reduction <add>, %10, %cst_8 [0] : vector<8x512xf32> to vector<512xf32>
    %12 = vector.shape_cast %11 : vector<512xf32> to vector<1x512xf32>
    %13 = tpu.concatenate %9, %12 in 0 : vector<1x512xf32>, vector<1x512xf32> -> vector<2x512xf32>
    %c0_9 = arith.constant 0 : index
    %c0_10 = arith.constant 0 : index
    %c0_11 = arith.constant 0 : index
    %14 = vector.load %arg5[%c0_9, %c0_10, %c0_11] : memref<1x2x512xf32, #tpu.memory_space<vmem>>, vector<1x2x512xf32>
    %15 = vector.shape_cast %14 : vector<1x2x512xf32> to vector<2x512xf32>
    %16 = vector.shape_cast %13 : vector<2x512xf32> to vector<1x2x512xf32>
    tpu.vector_store %arg5[%c0_9, %c0_10, %c0_11], %16 {strides = array<i32>} : memref<1x2x512xf32, #tpu.memory_space<vmem>>, vector<1x2x512xf32>,
    return
  }
  func.func @transform_0(%arg0: i32) -> (i32, i32) {
    %c0_i32 = arith.constant 0 : i32
    %c0_i32_0 = arith.constant 0 : i32
    return %arg0, %c0_i32 : i32, i32
  }
  func.func @transform_1(%arg0: i32) -> (i32, i32) {
    %c0_i32 = arith.constant 0 : i32
    %c0_i32_0 = arith.constant 0 : i32
    %c0_i32_1 = arith.constant 0 : i32
    return %c0_i32, %c0_i32_0 : i32, i32
  }
  func.func @transform_2(%arg0: i32) -> (i32, i32) {
    %c0_i32 = arith.constant 0 : i32
    %c0_i32_0 = arith.constant 0 : i32
    %c0_i32_1 = arith.constant 0 : i32
    return %c0_i32, %c0_i32_0 : i32, i32
  }
  func.func @transform_3(%arg0: i32) -> (i32, i32) {
    %c0_i32 = arith.constant 0 : i32
    %c0_i32_0 = arith.constant 0 : i32
    return %arg0, %c0_i32 : i32, i32
  }
  func.func @transform_4(%arg0: i32) -> (i32, i32, i32) {
    %c0_i32 = arith.constant 0 : i32
    %c0_i32_0 = arith.constant 0 : i32
    %c0_i32_1 = arith.constant 0 : i32
    return %arg0, %c0_i32, %c0_i32_0 : i32, i32, i32
  }
}

module attributes {stable_mosaic.version = 11 : i64} {
  func.func @_bn_res_relu_kernel(%arg0: i32, %arg1: memref<8x512xf32, #tpu.memory_space<vmem>>, %arg2: memref<1x512xf32, #tpu.memory_space<vmem>>, %arg3: memref<1x512xf32, #tpu.memory_space<vmem>>, %arg4: memref<8x512xf32, #tpu.memory_space<vmem>>, %arg5: memref<1x512xf32, #tpu.memory_space<vmem>>, %arg6: memref<1x512xf32, #tpu.memory_space<vmem>>, %arg7: memref<8x512xf32, #tpu.memory_space<vmem>>) attributes {dimension_semantics = [#tpu.dimension_semantics<parallel>], iteration_bounds = array<i64: 1>, scalar_prefetch = 0 : i64, scratch_operands = 0 : i64, tpu.core_type = #tpu.core_type<tc>, window_params = [{transform_indices = @transform_0, window_bounds = array<i64: 8, 512>}, {pipeline_mode = #tpu.pipeline_mode<synchronous>, transform_indices = @transform_1, window_bounds = array<i64: 1, 512>}, {pipeline_mode = #tpu.pipeline_mode<synchronous>, transform_indices = @transform_2, window_bounds = array<i64: 1, 512>}, {transform_indices = @transform_3, window_bounds = array<i64: 8, 512>}, {pipeline_mode = #tpu.pipeline_mode<synchronous>, transform_indices = @transform_4, window_bounds = array<i64: 1, 512>}, {pipeline_mode = #tpu.pipeline_mode<synchronous>, transform_indices = @transform_5, window_bounds = array<i64: 1, 512>}, {transform_indices = @transform_6, window_bounds = array<i64: 8, 512>}]} {
    %c0 = arith.constant 0 : index
    %c0_0 = arith.constant 0 : index
    %0 = vector.load %arg1[%c0, %c0_0] : memref<8x512xf32, #tpu.memory_space<vmem>>, vector<8x512xf32>
    %c0_1 = arith.constant 0 : index
    %c0_2 = arith.constant 0 : index
    %1 = vector.load %arg2[%c0_1, %c0_2] : memref<1x512xf32, #tpu.memory_space<vmem>>, vector<1x512xf32>
    %2 = vector.broadcast %1 : vector<1x512xf32> to vector<8x512xf32>
    %3 = arith.mulf %0, %2 : vector<8x512xf32>
    %c0_3 = arith.constant 0 : index
    %c0_4 = arith.constant 0 : index
    %4 = vector.load %arg3[%c0_3, %c0_4] : memref<1x512xf32, #tpu.memory_space<vmem>>, vector<1x512xf32>
    %5 = vector.broadcast %4 : vector<1x512xf32> to vector<8x512xf32>
    %6 = arith.addf %3, %5 : vector<8x512xf32>
    %c0_5 = arith.constant 0 : index
    %c0_6 = arith.constant 0 : index
    %7 = vector.load %arg4[%c0_5, %c0_6] : memref<8x512xf32, #tpu.memory_space<vmem>>, vector<8x512xf32>
    %c0_7 = arith.constant 0 : index
    %c0_8 = arith.constant 0 : index
    %8 = vector.load %arg5[%c0_7, %c0_8] : memref<1x512xf32, #tpu.memory_space<vmem>>, vector<1x512xf32>
    %9 = vector.broadcast %8 : vector<1x512xf32> to vector<8x512xf32>
    %10 = arith.mulf %7, %9 : vector<8x512xf32>
    %11 = arith.addf %6, %10 : vector<8x512xf32>
    %c0_9 = arith.constant 0 : index
    %c0_10 = arith.constant 0 : index
    %12 = vector.load %arg6[%c0_9, %c0_10] : memref<1x512xf32, #tpu.memory_space<vmem>>, vector<1x512xf32>
    %13 = vector.broadcast %12 : vector<1x512xf32> to vector<8x512xf32>
    %14 = arith.addf %11, %13 : vector<8x512xf32>
    %cst = arith.constant 0.000000e+00 : f32
    %15 = vector.broadcast %cst : f32 to vector<8x512xf32>
    %16 = arith.maximumf %14, %15 : vector<8x512xf32>
    %c0_11 = arith.constant 0 : index
    %c0_12 = arith.constant 0 : index
    %17 = vector.load %arg7[%c0_11, %c0_12] : memref<8x512xf32, #tpu.memory_space<vmem>>, vector<8x512xf32>
    tpu.vector_store %arg7[%c0_11, %c0_12], %16 {strides = array<i32>} : memref<8x512xf32, #tpu.memory_space<vmem>>, vector<8x512xf32>,
    return
  }
  func.func @transform_0(%arg0: i32) -> (i32, i32) {
    %c0_i32 = arith.constant 0 : i32
    %c0_i32_0 = arith.constant 0 : i32
    return %arg0, %c0_i32 : i32, i32
  }
  func.func @transform_1(%arg0: i32) -> (i32, i32) {
    %c0_i32 = arith.constant 0 : i32
    %c0_i32_0 = arith.constant 0 : i32
    %c0_i32_1 = arith.constant 0 : i32
    return %c0_i32, %c0_i32_0 : i32, i32
  }
  func.func @transform_2(%arg0: i32) -> (i32, i32) {
    %c0_i32 = arith.constant 0 : i32
    %c0_i32_0 = arith.constant 0 : i32
    %c0_i32_1 = arith.constant 0 : i32
    return %c0_i32, %c0_i32_0 : i32, i32
  }
  func.func @transform_3(%arg0: i32) -> (i32, i32) {
    %c0_i32 = arith.constant 0 : i32
    %c0_i32_0 = arith.constant 0 : i32
    return %arg0, %c0_i32 : i32, i32
  }
  func.func @transform_4(%arg0: i32) -> (i32, i32) {
    %c0_i32 = arith.constant 0 : i32
    %c0_i32_0 = arith.constant 0 : i32
    %c0_i32_1 = arith.constant 0 : i32
    return %c0_i32, %c0_i32_0 : i32, i32
  }
  func.func @transform_5(%arg0: i32) -> (i32, i32) {
    %c0_i32 = arith.constant 0 : i32
    %c0_i32_0 = arith.constant 0 : i32
    %c0_i32_1 = arith.constant 0 : i32
    return %c0_i32, %c0_i32_0 : i32, i32
  }
  func.func @transform_6(%arg0: i32) -> (i32, i32) {
    %c0_i32 = arith.constant 0 : i32
    %c0_i32_0 = arith.constant 0 : i32
    return %arg0, %c0_i32 : i32, i32
  }
}

module attributes {stable_mosaic.version = 11 : i64} {
  func.func @kern(%arg0: i32, %arg1: memref<1x4x512xf32, #tpu.memory_space<vmem>>, %arg2: memref<512x128xbf16, #tpu.memory_space<vmem>>, %arg3: memref<1x128xf32, #tpu.memory_space<vmem>>, %arg4: memref<1x1x128xf32, #tpu.memory_space<vmem>>) attributes {dimension_semantics = [#tpu.dimension_semantics<parallel>], iteration_bounds = array<i64: 2>, scalar_prefetch = 0 : i64, scratch_operands = 0 : i64, tpu.core_type = #tpu.core_type<tc>, window_params = [{transform_indices = @transform_0, window_bounds = array<i64: 1, 4, 512>}, {pipeline_mode = #tpu.pipeline_mode<synchronous>, transform_indices = @transform_1, window_bounds = array<i64: 512, 128>}, {pipeline_mode = #tpu.pipeline_mode<synchronous>, transform_indices = @transform_2, window_bounds = array<i64: 1, 128>}, {transform_indices = @transform_3, window_bounds = array<i64: 1, 1, 128>}]} {
    %c0 = arith.constant 0 : index
    %c0_0 = arith.constant 0 : index
    %c0_1 = arith.constant 0 : index
    %0 = vector.load %arg1[%c0, %c0_0, %c0_1] : memref<1x4x512xf32, #tpu.memory_space<vmem>>, vector<1x4x512xf32>
    %1 = vector.shape_cast %0 : vector<1x4x512xf32> to vector<4x512xf32>
    %cst = arith.constant dense<0.000000e+00> : vector<512xf32>
    %2 = vector.multi_reduction <add>, %1, %cst [0] : vector<4x512xf32> to vector<512xf32>
    %3 = vector.shape_cast %2 : vector<512xf32> to vector<1x512xf32>
    %cst_2 = arith.constant 1.562500e-02 : f32
    %4 = vector.broadcast %cst_2 : f32 to vector<1x512xf32>
    %5 = arith.mulf %3, %4 : vector<1x512xf32>
    %6 = arith.truncf %5 : vector<1x512xf32> to vector<1x512xbf16>
    %c0_3 = arith.constant 0 : index
    %c0_4 = arith.constant 0 : index
    %7 = vector.load %arg2[%c0_3, %c0_4] : memref<512x128xbf16, #tpu.memory_space<vmem>>, vector<512x128xbf16>
    %cst_5 = arith.constant dense<0.000000e+00> : vector<1x128xf32>
    %8 = tpu.matmul %6, %7, %cst_5 {dimension_numbers = #tpu.dot_dimension_numbers<[1], [0], [0], [1], [0, 0, 1, 1], [], []>} : vector<1x512xbf16>, vector<512x128xbf16>, vector<1x128xf32> -> vector<1x128xf32>
    %c0_6 = arith.constant 0 : index
    %c0_7 = arith.constant 0 : index
    %9 = vector.load %arg3[%c0_6, %c0_7] : memref<1x128xf32, #tpu.memory_space<vmem>>, vector<1x128xf32>
    %10 = arith.addf %8, %9 : vector<1x128xf32>
    %c0_8 = arith.constant 0 : index
    %c0_9 = arith.constant 0 : index
    %c0_10 = arith.constant 0 : index
    %11 = vector.load %arg4[%c0_8, %c0_9, %c0_10] : memref<1x1x128xf32, #tpu.memory_space<vmem>>, vector<1x1x128xf32>
    %12 = vector.shape_cast %11 : vector<1x1x128xf32> to vector<1x128xf32>
    %13 = vector.shape_cast %10 : vector<1x128xf32> to vector<1x1x128xf32>
    tpu.vector_store %arg4[%c0_8, %c0_9, %c0_10], %13 {strides = array<i32>} : memref<1x1x128xf32, #tpu.memory_space<vmem>>, vector<1x1x128xf32>,
    return
  }
  func.func @transform_0(%arg0: i32) -> (i32, i32, i32) {
    %c0_i32 = arith.constant 0 : i32
    %c0_i32_0 = arith.constant 0 : i32
    %c0_i32_1 = arith.constant 0 : i32
    return %arg0, %c0_i32, %c0_i32_0 : i32, i32, i32
  }
  func.func @transform_1(%arg0: i32) -> (i32, i32) {
    %c0_i32 = arith.constant 0 : i32
    %c0_i32_0 = arith.constant 0 : i32
    %c0_i32_1 = arith.constant 0 : i32
    return %c0_i32, %c0_i32_0 : i32, i32
  }
  func.func @transform_2(%arg0: i32) -> (i32, i32) {
    %c0_i32 = arith.constant 0 : i32
    %c0_i32_0 = arith.constant 0 : i32
    %c0_i32_1 = arith.constant 0 : i32
    return %c0_i32, %c0_i32_0 : i32, i32
  }
  func.func @transform_3(%arg0: i32) -> (i32, i32, i32) {
    %c0_i32 = arith.constant 0 : i32
    %c0_i32_0 = arith.constant 0 : i32
    %c0_i32_1 = arith.constant 0 : i32
    return %arg0, %c0_i32, %c0_i32_0 : i32, i32, i32
  }
}

</mosaic_0001>

<bundles_post_ra>
// kernel: model_forward.9
= control target key start
LH: loop header
LB: loop body
LE: loop exit
PB: predicated region body
PF: predicated region fallthrough
CT: control target
= control target key end

     0   :  { %v155_v1 = vmov 0   ;;  %vm78_vm0 = vcmask 523264   ;;  %v28_v12 = vlaneseq  ;;  %s221_s1 = inlined_call_operand.vmem [shape: bf16[64,256], index: 1, kind: input, shape index: {}]   ;;  %s222_s0 = inlined_call_operand.vmem [shape: f32[16,64], index: 0, kind: input, shape index: {}]   ;;  %s223_s2 = inlined_call_operand.vmem [shape: f32[1,256], index: 2, kind: input, shape index: {}]   ;;  %s224_s3 = inlined_call_operand.vmem [shape: f32[16,256], index: 3, kind: output, shape index: {}]  }
   0x1   :  { %v143_v0 = vld [vmem:[%s221_s1 + $0x34] ss:$8 sps:$4 sm:$0xff]   ;;  %114 = vmatprep.mubr.bf16.mxu0 %v155_v1  ;;  %v145_v2 = vld [vmem:[%s221_s1 + $0x30] ss:$8 sps:$4 sm:$0xff]   ;;  %v146_v3 = vld [vmem:[%s221_s1 + $0x24] ss:$8 sps:$4 sm:$0xff]  }
   0x2   :  { %90 = vmatprep.subr.bf16.mxu0 %v143_v0  ;;  %v148_v4 = vld [vmem:[%s221_s1 + $0x20] ss:$8 sps:$4 sm:$0xff]   ;;  %v149_v5 = vld [vmem:[%s221_s1 + $0x14] ss:$8 sps:$4 sm:$0xff]   ;;  %v151_v6 = vld [vmem:[%s221_s1 + $0x10] ss:$8 sps:$4 sm:$0xff]  }
   0x3   :  { %91 = vmatpush1.bf16.msra.mxu0 %v145_v2  ;;  %v152_v7 = vld [vmem:[%s221_s1 + $0x4] ss:$8 sps:$4 sm:$0xff]   ;;  %v154_v8 = vld [vmem:[%s221_s1] ss:$8 sps:$4 sm:$0xff]   ;;  %v29_v13 = vshrl.u32 %v28_v12, 7 }
   0x4   :  { %92 = vmatprep.subr.bf16.mxu0 %v146_v3  ;;  %v15_v9 = vld [vmem:[%s222_s0] sm:$0xff]  ;;  %v16_v10 = vld [vmem:[%s222_s0 + $0x8] sm:$0xff] }
   0x5   :  { %v17_v11 = vpack.c.bf16 %v16_v10, %v15_v9  ;;  %v30_v14 = vsub.s32 0, %v29_v13  ;;  %v26_v15 = vld [vmem:[%s223_s2] sm:$0x3]  ;;  %v34_v16 = vsub.s32 1, %v29_v13 }
   0x7   :  { %93 = vmatpush1.bf16.msra.mxu0 %v148_v4  ;;  %v31_v17 = vrot.slane %v26_v15, %v30_v14  ;;  %v35_v18 = vrot.slane %v26_v15, %v34_v16 }
   0x8   :  { %94 = vmatprep.subr.bf16.mxu0 %v149_v5 }
   0xb   :  { %95 = vmatpush1.bf16.msra.mxu0 %v151_v6 }
   0xc   :  { %96 = vmatprep.subr.bf16.mxu0 %v152_v7 }
   0xf   :  { %97 = vmatpush1.bf16.msra.mxu0 %v154_v8 }
  0x12   :  { %141 = vmatmul.mubr.msk.bf16.vlgmr.msra.gmra.mxu0 %vm78_vm0, %v17_v11 }
  0xd2   :  { %v116_v19 = vpop.f32.mrf.mxu0 }
  0xd3   :  { %v117_v20 = vadd.f32 %v116_v19, %v31_v17 }
  0xd4   :  { %v118_v21 = vpop.f32.mrf.mxu0 }
  0xd5   :  { %125 = vst [vmem:[%s224_s3] sm:$0xff] %v117_v20  ;;  %v119_v22 = vadd.f32 %v118_v21, %v35_v18 }
  0xd6   :  { %v120_v23 = vpop.f32.mrf.mxu0 }
  0xd7   :  { %126 = vst [vmem:[%s224_s3 + $0x8] sm:$0xff] %v119_v22  ;;  %v121_v24 = vadd.f32 %v120_v23, %v31_v17 }
  0xd8   :  { %v122_v25 = vpop.f32.mrf.mxu0 }
  0xd9   :  { %127 = vst [vmem:[%s224_s3 + $0x10] sm:$0xff] %v121_v24  ;;  %v123_v26 = vadd.f32 %v122_v25, %v35_v18 }
  0xdb   :  { %128 = vst [vmem:[%s224_s3 + $0x18] sm:$0xff] %v123_v26 }

// kernel: squeeze.11
= control target key start
LH: loop header
LB: loop body
LE: loop exit
PB: predicated region body
PF: predicated region fallthrough
CT: control target
= control target key end

     0   :  { %s67_s8 = smov 80   ;;  %vm8_vm0 = vcmask 130048   ;;  %s68_s11 = smov 96   ;;  %s118_s0 = inlined_call_operand.vmem [shape: f32[256], index: 0, kind: input, shape index: {}]   ;;  %s119_s1 = inlined_call_operand.vmem [shape: f32[16,16], index: 1, kind: output, shape index: {}]  }
   0x1   :  { %v5_v0 = vld [vmem:[%s118_s0] sm:$0x3]  ;;  %s66_s0 = smov 112   ;;  %s69_s12 = smov 64  }
   0x2   :  { %6 = vst [vmem:[#allocation0] sm:$0x3] %v5_v0  ;;  %s70_s13 = smov 48   ;;  %s71_s14 = smov 32  }
   0x3   :  { %s72_s15 = smov 16  }
   0x9   :  { %v10_v1 = vld [vmem:[#allocation0] sm:$0x3]  }
   0xa   :  { %v22_v2 = vld [vmem:[#allocation0] sm:$0x3]   ;;  %11 = vrot.lane.b32.xlu0 %v10_v1, %s66_s0 }
   0xb   :  { %23 = vrot.lane.b32.xlu1 %v22_v2, %s67_s8  ;;  %v16_v3 = vld [vmem:[#allocation0] sm:$0x3]  }
   0xc   :  { %v28_v4 = vld [vmem:[#allocation0] sm:$0x3]  }
   0xd   :  { %v7_v5 = vld [vmem:[#allocation0] sm:$0x3]  }
   0xe   :  { %9 = vst.msk [vmem:[%s119_s1] ss:$8 sm:$0x3] %vm8_vm0, %v7_v5   ;;  %17 = vrot.lane.b32.xlu0 %v16_v3, %s68_s11  ;;  %v34_v6 = vld [vmem:[#allocation0] sm:$0x3]  }
   0xf   :  { %29 = vrot.lane.b32.xlu1 %v28_v4, %s69_s12  ;;  %v40_v7 = vld [vmem:[#allocation0] sm:$0x3]  }
  0x10   :  { %v46_v8 = vld [vmem:[#allocation0] sm:$0x3]  }
  0x12   :  { %35 = vrot.lane.b32.xlu0 %v34_v6, %s70_s13 }
  0x13   :  { %41 = vrot.lane.b32.xlu1 %v40_v7, %s71_s14 }
  0x16   :  { %47 = vrot.lane.b32.xlu0 %v46_v8, %s72_s15 }
  0x7c   :  { %v12_v9 = vpop.permute.xlu0 %11  }
  0x7d   :  { %v24_v10 = vpop.permute.xlu1 %23   ;;  %52 = vst.msk [vmem:[%s119_s1 + $0x1] ss:$8 sm:$0x3] %vm8_vm0, %v12_v9  }
  0x7e   :  { %54 = vst.msk [vmem:[%s119_s1 + $0x3] ss:$8 sm:$0x3] %vm8_vm0, %v24_v10  }
  0x80   :  { %v18_v11 = vpop.permute.xlu0 %17  }
  0x81   :  { %v30_v12 = vpop.permute.xlu1 %29   ;;  %53 = vst.msk [vmem:[%s119_s1 + $0x2] ss:$8 sm:$0x3] %vm8_vm0, %v18_v11  }
  0x82   :  { %55 = vst.msk [vmem:[%s119_s1 + $0x4] ss:$8 sm:$0x3] %vm8_vm0, %v30_v12  }
  0x84   :  { %v36_v13 = vpop.permute.xlu0 %35  }
  0x85   :  { %v42_v14 = vpop.permute.xlu1 %41   ;;  %56 = vst.msk [vmem:[%s119_s1 + $0x5] ss:$8 sm:$0x3] %vm8_vm0, %v36_v13  }
  0x86   :  { %57 = vst.msk [vmem:[%s119_s1 + $0x6] ss:$8 sm:$0x3] %vm8_vm0, %v42_v14  }
  0x88   :  { %v48_v15 = vpop.permute.xlu0 %47  }
  0x89   :  { %58 = vst.msk [vmem:[%s119_s1 + $0x7] ss:$8 sm:$0x3] %vm8_vm0, %v48_v15  }

// kernel: model_forward.10
= control target key start
LH: loop header
LB: loop body
LE: loop exit
PB: predicated region body
PF: predicated region fallthrough
CT: control target
= control target key end

     0   :  { %v56_v38 = vlaneseq  ;;  %vm305_vm0 = vcmask 1040384   ;;  %s560_s1 = inlined_call_operand.vmem [shape: bf16[256,256], index: 1, kind: input, shape index: {}]   ;;  %s561_s0 = inlined_call_operand.vmem [shape: f32[16,256], index: 0, kind: input, shape index: {}]   ;;  %s562_s2 = inlined_call_operand.vmem [shape: f32[1,256], index: 2, kind: input, shape index: {}]   ;;  %s563_s3 = inlined_call_operand.vmem [shape: f32[16,256], index: 3, kind: output, shape index: {0}]   ;;  %s564_s4 = inlined_call_operand.vmem [shape: f32[1,2,256], index: 4, kind: output, shape index: {1}]  }
   0x1   :  { %v361_v0 = vld [vmem:[%s560_s1 + $0x74] ss:$8 sps:$4 sm:$0xff]   ;;  %v363_v1 = vld [vmem:[%s560_s1 + $0x70] ss:$8 sps:$4 sm:$0xff]   ;;  %v364_v2 = vld [vmem:[%s560_s1 + $0x64] ss:$8 sps:$4 sm:$0xff]  }
   0x2   :  { %226 = vmatprep.subr.bf16.mxu0 %v361_v0  ;;  %v366_v3 = vld [vmem:[%s560_s1 + $0x60] ss:$8 sps:$4 sm:$0xff]   ;;  %v367_v4 = vld [vmem:[%s560_s1 + $0x54] ss:$8 sps:$4 sm:$0xff]   ;;  %v369_v5 = vld [vmem:[%s560_s1 + $0x50] ss:$8 sps:$4 sm:$0xff]  }
   0x3   :  { %227 = vmatpush1.bf16.msra.mxu0 %v363_v1  ;;  %v370_v6 = vld [vmem:[%s560_s1 + $0x44] ss:$8 sps:$4 sm:$0xff]   ;;  %v372_v7 = vld [vmem:[%s560_s1 + $0x40] ss:$8 sps:$4 sm:$0xff]   ;;  %v373_v8 = vld [vmem:[%s560_s1 + $0x34] ss:$8 sps:$4 sm:$0xff]  }
   0x4   :  { %228 = vmatprep.subr.bf16.mxu0 %v364_v2  ;;  %v375_v9 = vld [vmem:[%s560_s1 + $0x30] ss:$8 sps:$4 sm:$0xff]   ;;  %v376_v10 = vld [vmem:[%s560_s1 + $0x24] ss:$8 sps:$4 sm:$0xff]   ;;  %v378_v11 = vld [vmem:[%s560_s1 + $0x20] ss:$8 sps:$4 sm:$0xff]  }
   0x5   :  { %v379_v12 = vld [vmem:[%s560_s1 + $0x14] ss:$8 sps:$4 sm:$0xff]   ;;  %v17_v13 = vld [vmem:[%s561_s0 + $0x8] sm:$0xff]  ;;  %v381_v16 = vld [vmem:[%s560_s1 + $0x10] ss:$8 sps:$4 sm:$0xff]   ;;  %v57_v39 = vshrl.u32 %v56_v38, 7 }
   0x6   :  { %v19_v14 = vld [vmem:[%s561_s0 + $0x18] sm:$0xff]  ;;  %v382_v17 = vld [vmem:[%s560_s1 + $0x4] ss:$8 sps:$4 sm:$0xff]   ;;  %v384_v18 = vld [vmem:[%s560_s1] ss:$8 sps:$4 sm:$0xff]  }
   0x7   :  { %229 = vmatpush1.bf16.msra.mxu0 %v366_v3  ;;  %v21_v15 = vpack.c.bf16 %v19_v14, %v17_v13  ;;  %v385_v19 = vld [vmem:[%s560_s1 + $0xf4] ss:$8 sps:$4 sm:$0xff]   ;;  %v387_v20 = vld [vmem:[%s560_s1 + $0xf0] ss:$8 sps:$4 sm:$0xff]   ;;  %v388_v21 = vld [vmem:[%s560_s1 + $0xe4] ss:$8 sps:$4 sm:$0xff]  }
   0x8   :  { %230 = vmatprep.subr.bf16.mxu0 %v367_v4  ;;  %v390_v22 = vld [vmem:[%s560_s1 + $0xe0] ss:$8 sps:$4 sm:$0xff]   ;;  %v391_v23 = vld [vmem:[%s560_s1 + $0xd4] ss:$8 sps:$4 sm:$0xff]   ;;  %v393_v24 = vld [vmem:[%s560_s1 + $0xd0] ss:$8 sps:$4 sm:$0xff]  }
   0x9   :  { %258 = vmatprep.mubr.bf16.mxu0 %v21_v15  ;;  %v394_v25 = vld [vmem:[%s560_s1 + $0xc4] ss:$8 sps:$4 sm:$0xff]   ;;  %v396_v26 = vld [vmem:[%s560_s1 + $0xc0] ss:$8 sps:$4 sm:$0xff]   ;;  %v397_v27 = vld [vmem:[%s560_s1 + $0xb4] ss:$8 sps:$4 sm:$0xff]  }
   0xa   :  { %v399_v28 = vld [vmem:[%s560_s1 + $0xb0] ss:$8 sps:$4 sm:$0xff]   ;;  %v400_v29 = vld [vmem:[%s560_s1 + $0xa4] ss:$8 sps:$4 sm:$0xff]   ;;  %v402_v30 = vld [vmem:[%s560_s1 + $0xa0] ss:$8 sps:$4 sm:$0xff]  }
   0xb   :  { %231 = vmatpush1.bf16.msra.mxu0 %v369_v5  ;;  %v403_v31 = vld [vmem:[%s560_s1 + $0x94] ss:$8 sps:$4 sm:$0xff]   ;;  %v405_v32 = vld [vmem:[%s560_s1 + $0x90] ss:$8 sps:$4 sm:$0xff]   ;;  %v406_v33 = vld [vmem:[%s560_s1 + $0x84] ss:$8 sps:$4 sm:$0xff]  }
   0xc   :  { %232 = vmatprep.subr.bf16.mxu0 %v370_v6  ;;  %v408_v34 = vld [vmem:[%s560_s1 + $0x80] ss:$8 sps:$4 sm:$0xff]   ;;  %v18_v36 = vld [vmem:[%s561_s0 + $0x10] sm:$0xff]  ;;  %v58_v40 = vsub.s32 0, %v57_v39  ;;  %v62_v42 = vsub.s32 1, %v57_v39 }
   0xd   :  { %v16_v35 = vld [vmem:[%s561_s0] sm:$0xff] }
   0xe   :  { %v20_v37 = vpack.c.bf16 %v18_v36, %v16_v35  ;;  %v54_v41 = vld [vmem:[%s562_s2] sm:$0x3] }
   0xf   :  { %233 = vmatpush1.bf16.msra.mxu0 %v372_v7  ;;  %v59_v43 = vrot.slane %v54_v41, %v58_v40  ;;  %v63_v44 = vrot.slane %v54_v41, %v62_v42 }
  0x10   :  { %234 = vmatprep.subr.bf16.mxu0 %v373_v8 }
  0x13   :  { %235 = vmatpush1.bf16.msra.mxu0 %v375_v9 }
  0x14   :  { %236 = vmatprep.subr.bf16.mxu0 %v376_v10 }
  0x17   :  { %237 = vmatpush1.bf16.msra.mxu0 %v378_v11 }
  0x18   :  { %238 = vmatprep.subr.bf16.mxu0 %v379_v12 }
  0x1b   :  { %239 = vmatpush1.bf16.msra.mxu0 %v381_v16 }
  0x1c   :  { %240 = vmatprep.subr.bf16.mxu0 %v382_v17 }
  0x1f   :  { %241 = vmatpush1.bf16.msra.mxu0 %v384_v18 }
  0x20   :  { %242 = vmatprep.subr.bf16.mxu0 %v385_v19 }
  0x23   :  { %243 = vmatpush2.bf16.msra.mxu0 %v387_v20 }
  0x24   :  { %244 = vmatprep.subr.bf16.mxu0 %v388_v21 }
  0x27   :  { %245 = vmatpush2.bf16.msra.mxu0 %v390_v22 }
  0x28   :  { %246 = vmatprep.subr.bf16.mxu0 %v391_v23 }
  0x2b   :  { %247 = vmatpush2.bf16.msra.mxu0 %v393_v24 }
  0x2c   :  { %248 = vmatprep.subr.bf16.mxu0 %v394_v25 }
  0x2f   :  { %249 = vmatpush2.bf16.msra.mxu0 %v396_v26 }
  0x30   :  { %250 = vmatprep.subr.bf16.mxu0 %v397_v27 }
  0x33   :  { %251 = vmatpush2.bf16.msra.mxu0 %v399_v28 }
  0x34   :  { %252 = vmatprep.subr.bf16.mxu0 %v400_v29 }
  0x37   :  { %253 = vmatpush2.bf16.msra.mxu0 %v402_v30 }
  0x38   :  { %254 = vmatprep.subr.bf16.mxu0 %v403_v31 }
  0x3b   :  { %255 = vmatpush2.bf16.msra.mxu0 %v405_v32 }
  0x3c   :  { %256 = vmatprep.subr.bf16.mxu0 %v406_v33 }
  0x3f   :  { %257 = vmatpush2.bf16.msra.mxu0 %v408_v34 }
  0x42   :  { %259 = vmatmul.mubr.bf16.vlgmr.msra.gmra.mxu0 %v20_v37 }
 0x102   :  { %v260_v45 = vpop.f32.mrf.mxu0 }
 0x103   :  { %v261_v46 = vadd.f32 %v260_v45, %v59_v43 }
 0x104   :  { %v262_v47 = vpop.f32.mrf.mxu0 }
 0x105   :  { %269 = vst [vmem:[%s563_s3] sm:$0xff] %v261_v46  ;;  %v263_v48 = vadd.f32 %v262_v47, %v63_v44  ;;  %v287_v52 = vmul.f32 %v261_v46, %v261_v46 }
 0x106   :  { %v264_v49 = vpop.f32.mrf.mxu0 }
 0x107   :  { %270 = vst [vmem:[%s563_s3 + $0x8] sm:$0xff] %v263_v48  ;;  %v265_v50 = vadd.f32 %v264_v49, %v59_v43  ;;  %v288_v56 = vmul.f32 %v263_v48, %v263_v48 }
 0x108   :  { %v266_v51 = vpop.f32.mrf.mxu0 }
 0x109   :  { %271 = vst [vmem:[%s563_s3 + $0x10] sm:$0xff] %v265_v50  ;;  %v273_v53 = vadd.f32 %v265_v50, %v261_v46  ;;  %v289_v54 = vmul.f32 %v265_v50, %v265_v50  ;;  %v267_v55 = vadd.f32 %v266_v51, %v63_v44 }
 0x10b   :  { %v274_v57 = vrot.slane %v273_v53, 4  ;;  %v291_v58 = vadd.f32 %v289_v54, %v287_v52  ;;  %272 = vst [vmem:[%s563_s3 + $0x18] sm:$0xff] %v267_v55  ;;  %v280_v59 = vadd.f32 %v267_v55, %v263_v48  ;;  %v290_v60 = vmul.f32 %v267_v55, %v267_v55 }
 0x10d   :  { %v275_v61 = vadd.f32 %v274_v57, %v273_v53  ;;  %v292_v62 = vrot.slane %v291_v58, 4  ;;  %v281_v63 = vrot.slane %v280_v59, 4  ;;  %v298_v0 = vadd.f32 %v290_v60, %v288_v56 }
 0x10f   :  { %v276_v1 = vrot.slane %v275_v61, 2  ;;  %v293_v2 = vadd.f32 %v292_v62, %v291_v58  ;;  %v282_v3 = vadd.f32 %v281_v63, %v280_v59  ;;  %v299_v4 = vrot.slane %v298_v0, 4 }
 0x111   :  { %v277_v5 = vadd.f32 %v276_v1, %v275_v61  ;;  %v294_v6 = vrot.slane %v293_v2, 2  ;;  %v283_v7 = vrot.slane %v282_v3, 2  ;;  %v300_v8 = vadd.f32 %v299_v4, %v298_v0 }
 0x113   :  { %v295_v9 = vadd.f32 %v294_v6, %v293_v2  ;;  %v284_v10 = vadd.f32 %v283_v7, %v282_v3  ;;  %v301_v11 = vrot.slane %v300_v8, 2  ;;  %v278_v12 = vrot.slane %v277_v5, 1 }
 0x115   :  { %v296_v13 = vrot.slane %v295_v9, 1  ;;  %v285_v14 = vrot.slane %v284_v10, 1  ;;  %v302_v15 = vadd.f32 %v301_v11, %v300_v8  ;;  %v279_v18 = vadd.f32 %v278_v12, %v277_v5 }
 0x117   :  { %v297_v16 = vadd.f32 %v296_v13, %v295_v9  ;;  %v303_v17 = vrot.slane %v302_v15, 1  ;;  %v286_v19 = vadd.f32 %v285_v14, %v284_v10 }
 0x119   :  { %v304_v20 = vadd.f32 %v303_v17, %v302_v15  ;;  %v306_v21 = vsel %vm305_vm0, %v279_v18, %v297_v16 }
 0x11b   :  { %v307_v22 = vsel %vm305_vm0, %v286_v19, %v304_v20 }
 0x11c   :  { %v310_v23 = vcombine.low %v306_v21, %v307_v22 }
 0x11e   :  { %360 = vst.sshfl [vmem:[%s564_s4] sm:$0x33 pattern:$0x76325410] %v310_v23 }

// kernel: tile.53
= control target key start
LH: loop header
LB: loop body
LE: loop exit
PB: predicated region body
PF: predicated region fallthrough
CT: control target
= control target key end

     0   :  { %s28_s0 = inlined_call_operand.vmem [shape: f32[16], index: 0, kind: input, shape index: {}]   ;;  %s29_s1 = inlined_call_operand.vmem [shape: f32[16,16], index: 1, kind: output, shape index: {}]  }
   0x1   :  { %v4_v0 = vld [vmem:[%s28_s0] ss:$0 sm:$0xff] }
   0x2   :  { %5 = vst [vmem:[%s29_s1] sm:$0xff] %v4_v0  ;;  %8 = vst [vmem:[%s29_s1 + $0x8] sm:$0xff] %v4_v0 }

// kernel: model_forward.12
= control target key start
LH: loop header
LB: loop body
LE: loop exit
PB: predicated region body
PF: predicated region fallthrough
CT: control target
= control target key end

     0   :  { %v23_v0 = vlaneseq  ;;  %s140_s1 = inlined_call_operand.vmem [shape: f32[1,256], index: 1, kind: input, shape index: {}]   ;;  %s141_s2 = inlined_call_operand.vmem [shape: f32[1,256], index: 2, kind: input, shape index: {}]   ;;  %s142_s0 = inlined_call_operand.vmem [shape: f32[16,256], index: 0, kind: input, shape index: {}]   ;;  %s143_s3 = inlined_call_operand.vmem [shape: f32[16,256], index: 3, kind: input, shape index: {}]   ;;  %s144_s4 = inlined_call_operand.vmem [shape: f32[16,256], index: 4, kind: output, shape index: {}]  }
   0x1   :  { %v21_v2 = vld [vmem:[%s140_s1] sm:$0x3]  ;;  %v18_v7 = vld [vmem:[%s142_s0 + $0x8] sm:$0xff]  ;;  %v19_v8 = vld [vmem:[%s142_s0 + $0x10] sm:$0xff] }
   0x2   :  { %v24_v1 = vshrl.u32 %v23_v0, 7  ;;  %v37_v3 = vld [vmem:[%s141_s2] sm:$0x3]  ;;  %v20_v9 = vld [vmem:[%s142_s0 + $0x18] sm:$0xff]  ;;  %v54_v19 = vld [vmem:[%s143_s3 + $0x8] sm:$0xff] }
   0x3   :  { %v17_v4 = vld [vmem:[%s142_s0] sm:$0xff]  ;;  %v55_v20 = vld [vmem:[%s143_s3 + $0x10] sm:$0xff]  ;;  %v56_v21 = vld [vmem:[%s143_s3 + $0x18] sm:$0xff] }
   0x4   :  { %v25_v5 = vsub.s32 0, %v24_v1  ;;  %v29_v6 = vsub.s32 1, %v24_v1  ;;  %v53_v15 = vld [vmem:[%s143_s3] sm:$0xff] }
   0x6   :  { %v26_v10 = vrot.slane %v21_v2, %v25_v5  ;;  %v42_v11 = vrot.slane %v37_v3, %v25_v5  ;;  %v30_v12 = vrot.slane %v21_v2, %v29_v6  ;;  %v46_v13 = vrot.slane %v37_v3, %v29_v6 }
   0x8   :  { %v33_v14 = vmul.f32 %v26_v10, %v17_v4  ;;  %v34_v16 = vmul.f32 %v30_v12, %v18_v7  ;;  %v35_v17 = vmul.f32 %v26_v10, %v19_v8  ;;  %v36_v18 = vmul.f32 %v30_v12, %v20_v9 }
   0xa   :  { %v49_v22 = vadd.f32 %v42_v11, %v33_v14  ;;  %v50_v23 = vadd.f32 %v46_v13, %v34_v16  ;;  %v51_v24 = vadd.f32 %v42_v11, %v35_v17  ;;  %v52_v25 = vadd.f32 %v46_v13, %v36_v18 }
   0xc   :  { %v57_v26 = vadd.f32 %v53_v15, %v49_v22  ;;  %v58_v27 = vadd.f32 %v54_v19, %v50_v23  ;;  %v59_v28 = vadd.f32 %v55_v20, %v51_v24  ;;  %v60_v29 = vadd.f32 %v56_v21, %v52_v25 }
   0xe   :  { %v61_v30 = vmax.f32 %v57_v26, 0.0  ;;  %v62_v31 = vmax.f32 %v58_v27, 0.0  ;;  %v63_v32 = vmax.f32 %v59_v28, 0.0  ;;  %v64_v33 = vmax.f32 %v60_v29, 0.0 }
  0x10   :  { %65 = vst [vmem:[%s144_s4] sm:$0xff] %v61_v30  ;;  %66 = vst [vmem:[%s144_s4 + $0x8] sm:$0xff] %v62_v31 }
  0x11   :  { %67 = vst [vmem:[%s144_s4 + $0x10] sm:$0xff] %v63_v32  ;;  %68 = vst [vmem:[%s144_s4 + $0x18] sm:$0xff] %v64_v33 }

// kernel: model_forward.11
= control target key start
LH: loop header
LB: loop body
LE: loop exit
PB: predicated region body
PF: predicated region fallthrough
CT: control target
= control target key end

     0   :  { %s1713_s24 = smov 0   ;;  %s2077_s0 = inlined_call_operand.vmem [shape: f32[2,8,256], index: 0, kind: input, shape index: {}]   ;;  %s2078_s1 = inlined_call_operand.vmem [shape: f32[1,256], index: 1, kind: input, shape index: {}]   ;;  %s2079_s2 = inlined_call_operand.vmem [shape: f32[1,256], index: 2, kind: input, shape index: {}]   ;;  %s2080_s3 = inlined_call_operand.vmem [shape: bf16[3,8,8], index: 3, kind: input, shape index: {}]   ;;  %s2081_s4 = inlined_call_operand.vmem [shape: bf16[3,256,256], index: 4, kind: input, shape index: {}]   ;;  %s2082_s5 = inlined_call_operand.vmem [shape: f32[1,256], index: 5, kind: input, shape index: {}]   ;;  %s2083_s6 = inlined_call_operand.vmem [shape: f32[2,8,256], index: 6, kind: output, shape index: {0}]   ;;  %s2084_s7 = inlined_call_operand.vmem [shape: f32[2,2,256], index: 7, kind: output, shape index: {1}]  }
   0x1 LB: > { %s1326_s25 = sadd.s32 4294967295, %s1670_s24   ;;  %p1330_p0 = scmp.ge.s32.totalorder %s1670_s24, 1  ;;  %s1670_s24 = sphi %s1713_s24, %s18_s24  }
   0x2   : > { %p240_p1 = scmp.lt.s32.totalorder %s1670_s24, 3 }
   0x4   : > { %p241_p2 = pnand %p1330_p0, %p240_p1 }
   0x5   : > { %p277_p3 = scmp.lt.s32.totalorder (!%p241_p2), %s1326_s25, 1 }
   0x6   : > { %244 = sbr.rel (%p241_p2) target bundleno = 660 (0x294), region = 44 }
   0xb   : > { %v297_v0 = vlaneseq  ;;  %v295_v1 = vld [vmem:[%s2078_s1] sm:$0x3]  ;;  %s2086_s25 = smov (!%p277_p3, %s1326_s25), 1  ;;  %v1672_v4 = vmov 0   ;;  %v1520_v5 = vld [vmem:[%s2081_s4 + $0x74] ss:$8 sps:$4 sm:$0xff]  }
   0xc   : > { %v309_v2 = vld [vmem:[%s2079_s2] sm:$0x3]  ;;  %371 = vmatprep.mubr.bf16.mxu0 %v1672_v4  ;;  %v1522_v6 = vld [vmem:[%s2081_s4 + $0x70] ss:$8 sps:$4 sm:$0xff]   ;;  %s1508_s11 = sshll.u32 %s2086_s25, 4  ;;  %856 = vmatprep.subr.bf16.mxu1 %v1520_v5  ;;  %vm332_vm0 = vcmask 1043456  }
   0xd   : > { %v298_v3 = vshrl.u32 %v297_v0, 7  ;;  %v1523_v9 = vld [vmem:[%s2081_s4 + $0x64] ss:$8 sps:$4 sm:$0xff]   ;;  %s281_s16 = scalar_lea.vmem %s2077_s0, %s1508_s11  ;;  %857 = vmatpush1.bf16.msra.mxu1 %v1522_v6  ;;  %v1525_v10 = vld [vmem:[%s2081_s4 + $0x60] ss:$8 sps:$4 sm:$0xff]   ;;  %vm328_vm1 = vcmask 64512   ;;  %s286_s13 = scalar_lea.vmem %s2083_s6, %s1508_s11 }
   0xe   : > { %v294_v11 = vld [vmem:[%s281_s16 + $0x8] sm:$0xff]  ;;  %v293_v14 = vld [vmem:[%s281_s16] sm:$0xff]  ;;  %858 = vmatprep.subr.bf16.mxu1 %v1523_v9  ;;  %v1529_v19 = vld [vmem:[%s2081_s4 + $0x54] ss:$8 sps:$4 sm:$0xff]   ;;  %s1510_s11 = sshll.u32 %s2086_s25, 2  ;;  %vm1223_vm2 = vcmask 1040384  }
   0xf   : > { %v1737_v7 = vsub.s32 1, %v298_v3  ;;  %v1739_v8 = vsub.s32 0, %v298_v3  ;;  %v1531_v20 = vld [vmem:[%s2081_s4 + $0x50] ss:$8 sps:$4 sm:$0xff]   ;;  %v1535_v23 = vld [vmem:[%s2081_s4 + $0x44] ss:$8 sps:$4 sm:$0xff]   ;;  %s291_s16 = scalar_lea.vmem %s2084_s7, %s1510_s11 }
  0x10   : > { %v1537_v26 = vld [vmem:[%s2081_s4 + $0x40] ss:$8 sps:$4 sm:$0xff]   ;;  %v1541_v29 = vld [vmem:[%s2081_s4 + $0x34] ss:$8 sps:$4 sm:$0xff]   ;;  %v1543_v33 = vld [vmem:[%s2081_s4 + $0x30] ss:$8 sps:$4 sm:$0xff]  }
  0x11   : > { %v304_v12 = vrot.slane %v295_v1, %v1737_v7  ;;  %v318_v13 = vrot.slane %v309_v2, %v1737_v7  ;;  %v300_v15 = vrot.slane %v295_v1, %v1739_v8  ;;  %v314_v16 = vrot.slane %v309_v2, %v1739_v8  ;;  %859 = vmatpush1.bf16.msra.mxu1 %v1525_v10  ;;  %v327_v31 = vld [vmem:[%s2080_s3] sm:$0xf]  ;;  %v1528_v32 = vld [vmem:[%s2081_s4 + $0x174] ss:$8 sps:$4 sm:$0xff]   ;;  %v1547_v34 = vld [vmem:[%s2081_s4 + $0x24] ss:$8 sps:$4 sm:$0xff]  }
  0x12   : > { %860 = vmatprep.subr.bf16.mxu1 %v1529_v19  ;;  %v1549_v35 = vld [vmem:[%s2081_s4 + $0x20] ss:$8 sps:$4 sm:$0xff]   ;;  %v1553_v36 = vld [vmem:[%s2081_s4 + $0x14] ss:$8 sps:$4 sm:$0xff]   ;;  %v1339_v37 = vld [vmem:[%s2080_s3 + $0x4] sm:$0xf] }
  0x13   : > { %v308_v17 = vmul.f32 %v304_v12, %v294_v11  ;;  %v307_v18 = vmul.f32 %v300_v15, %v293_v14  ;;  %v1526_v38 = vld [vmem:[%s2081_s4 + $0x170] ss:$8 sps:$4 sm:$0xff]   ;;  %v1534_v39 = vld [vmem:[%s2081_s4 + $0x164] ss:$8 sps:$4 sm:$0xff]   ;;  %v1532_v42 = vld [vmem:[%s2081_s4 + $0x160] ss:$8 sps:$4 sm:$0xff]  }
  0x14   : > { %v1555_v40 = vld [vmem:[%s2081_s4 + $0x10] ss:$8 sps:$4 sm:$0xff]   ;;  %v1559_v41 = vld [vmem:[%s2081_s4 + $0x4] ss:$8 sps:$4 sm:$0xff]   ;;  %v1540_v43 = vld [vmem:[%s2081_s4 + $0x154] ss:$8 sps:$4 sm:$0xff]  }
  0x15   : > { %v322_v21 = vadd.f32 %v318_v13, %v308_v17  ;;  %v321_v22 = vadd.f32 %v314_v16, %v307_v18  ;;  %861 = vmatpush1.bf16.msra.mxu1 %v1531_v20  ;;  %v1561_v44 = vld [vmem:[%s2081_s4] ss:$8 sps:$4 sm:$0xff]   ;;  %v1565_v45 = vld [vmem:[%s2081_s4 + $0xf4] ss:$8 sps:$4 sm:$0xff]   ;;  %v1538_v46 = vld [vmem:[%s2081_s4 + $0x150] ss:$8 sps:$4 sm:$0xff]  }
  0x16   : > { %862 = vmatprep.subr.bf16.mxu1 %v1535_v23  ;;  %v1546_v47 = vld [vmem:[%s2081_s4 + $0x144] ss:$8 sps:$4 sm:$0xff]   ;;  %v1567_v48 = vld [vmem:[%s2081_s4 + $0xf0] ss:$8 sps:$4 sm:$0xff]   ;;  %v1544_v50 = vld [vmem:[%s2081_s4 + $0x140] ss:$8 sps:$4 sm:$0xff]  }
  0x17   : > { %v324_v24 = vmax.f32 %v322_v21, 0.0  ;;  %v323_v25 = vmax.f32 %v321_v22, 0.0  ;;  %v1571_v49 = vld [vmem:[%s2081_s4 + $0xe4] ss:$8 sps:$4 sm:$0xff]   ;;  %v1552_v51 = vld [vmem:[%s2081_s4 + $0x134] ss:$8 sps:$4 sm:$0xff]  }
  0x18   : > { %v1573_v52 = vld [vmem:[%s2081_s4 + $0xe0] ss:$8 sps:$4 sm:$0xff]   ;;  %v1550_v53 = vld [vmem:[%s2081_s4 + $0x130] ss:$8 sps:$4 sm:$0xff]   ;;  %v1577_v54 = vld [vmem:[%s2081_s4 + $0xd4] ss:$8 sps:$4 sm:$0xff]  }
  0x19   : > { %v1768_v27 = vpack.c.bf16 %v324_v24, %v324_v24  ;;  %v325_v28 = vpack.c.bf16 %v323_v25, %v323_v25  ;;  %863 = vmatpush1.bf16.msra.mxu1 %v1537_v26  ;;  %v1558_v55 = vld [vmem:[%s2081_s4 + $0x124] ss:$8 sps:$4 sm:$0xff]   ;;  %v1579_v56 = vld [vmem:[%s2081_s4 + $0xd0] ss:$8 sps:$4 sm:$0xff]   ;;  %v1556_v58 = vld [vmem:[%s2081_s4 + $0x120] ss:$8 sps:$4 sm:$0xff]  }
  0x1a   : > { %864 = vmatprep.subr.bf16.mxu1 %v1541_v29  ;;  %v1583_v57 = vld [vmem:[%s2081_s4 + $0xc4] ss:$8 sps:$4 sm:$0xff]   ;;  %v1564_v59 = vld [vmem:[%s2081_s4 + $0x114] ss:$8 sps:$4 sm:$0xff]   ;;  %v1585_v60 = vld [vmem:[%s2081_s4 + $0xc0] ss:$8 sps:$4 sm:$0xff]  }
  0x1b   : > { %1337 = vmatprep.subr.msk.bf16.mxu0 %vm332_vm0, %v1768_v27  ;;  %v1776_v30 = vsel %vm332_vm0, %v325_v28, 0  ;;  %v1589_v61 = vld [vmem:[%s2081_s4 + $0xb4] ss:$8 sps:$4 sm:$0xff]   ;;  %v1562_v62 = vld [vmem:[%s2081_s4 + $0x110] ss:$8 sps:$4 sm:$0xff]  }
  0x1c   : > { %354 = vmatpush1.bf16.msra.mxu0 %v1776_v30  ;;  %v1570_v63 = vld [vmem:[%s2081_s4 + $0x104] ss:$8 sps:$4 sm:$0xff]   ;;  %v1591_v0 = vld [vmem:[%s2081_s4 + $0xb0] ss:$8 sps:$4 sm:$0xff]   ;;  %v1568_v2 = vld [vmem:[%s2081_s4 + $0x100] ss:$8 sps:$4 sm:$0xff]  }
  0x1d   : > { %1340 = vmatprep.subr.msk.bf16.mxu0 %vm332_vm0, %v1768_v27  ;;  %865 = vmatpush1.bf16.msra.mxu1 %v1543_v33  ;;  %v1595_v1 = vld [vmem:[%s2081_s4 + $0xa4] ss:$8 sps:$4 sm:$0xff]   ;;  %v1576_v3 = vld [vmem:[%s2081_s4 + $0x1f4] ss:$8 sps:$4 sm:$0xff]   ;;  %v1597_v5 = vld [vmem:[%s2081_s4 + $0xa0] ss:$8 sps:$4 sm:$0xff]  }
  0x1e   : > { %866 = vmatprep.subr.bf16.mxu1 %v1547_v34  ;;  %v1601_v6 = vld [vmem:[%s2081_s4 + $0x94] ss:$8 sps:$4 sm:$0xff]   ;;  %v1574_v9 = vld [vmem:[%s2081_s4 + $0x1f0] ss:$8 sps:$4 sm:$0xff]   ;;  %v1582_v10 = vld [vmem:[%s2081_s4 + $0x1e4] ss:$8 sps:$4 sm:$0xff]  }
  0x1f   : > { %1338 = vmatmul.mubr.msk.bf16.vlgmr.msra.gmra.mxu0 %vm328_vm1, %v327_v31  ;;  %v1603_v11 = vld [vmem:[%s2081_s4 + $0x90] ss:$8 sps:$4 sm:$0xff]   ;;  %v1580_v12 = vld [vmem:[%s2081_s4 + $0x1e0] ss:$8 sps:$4 sm:$0xff]   ;;  %v1588_v13 = vld [vmem:[%s2081_s4 + $0x1d4] ss:$8 sps:$4 sm:$0xff]  }
  0x20   : > { %434 = vmatpush1.bf16.msra.mxu0 %v1776_v30  ;;  %451 = vmatprep.mubr.bf16.mxu0 %v1672_v4  ;;  %v1586_v14 = vld [vmem:[%s2081_s4 + $0x1d0] ss:$8 sps:$4 sm:$0xff]   ;;  %v1594_v15 = vld [vmem:[%s2081_s4 + $0x1c4] ss:$8 sps:$4 sm:$0xff]   ;;  %v1592_v16 = vld [vmem:[%s2081_s4 + $0x1c0] ss:$8 sps:$4 sm:$0xff]  }
  0x21   : > { %655 = vmatprep.subr.bf16.mxu0 %v1528_v32  ;;  %867 = vmatpush1.bf16.msra.mxu1 %v1549_v35  ;;  %v1600_v17 = vld [vmem:[%s2081_s4 + $0x1b4] ss:$8 sps:$4 sm:$0xff]   ;;  %v1598_v18 = vld [vmem:[%s2081_s4 + $0x1b0] ss:$8 sps:$4 sm:$0xff]   ;;  %v1606_v19 = vld [vmem:[%s2081_s4 + $0x1a4] ss:$8 sps:$4 sm:$0xff]  }
  0x22   : > { %868 = vmatprep.subr.bf16.mxu1 %v1553_v36  ;;  %v1607_v20 = vld [vmem:[%s2081_s4 + $0x84] ss:$8 sps:$4 sm:$0xff]   ;;  %v1604_v21 = vld [vmem:[%s2081_s4 + $0x1a0] ss:$8 sps:$4 sm:$0xff]   ;;  %v1612_v23 = vld [vmem:[%s2081_s4 + $0x194] ss:$8 sps:$4 sm:$0xff]  }
  0x23   : > { %v1609_v22 = vld [vmem:[%s2081_s4 + $0x80] ss:$8 sps:$4 sm:$0xff]   ;;  %v1610_v24 = vld [vmem:[%s2081_s4 + $0x190] ss:$8 sps:$4 sm:$0xff]   ;;  %v1615_v25 = vld [vmem:[%s2081_s4 + $0x184] ss:$8 sps:$4 sm:$0xff]  }
  0x24   : > { %v1613_v26 = vld [vmem:[%s2081_s4 + $0x180] ss:$8 sps:$4 sm:$0xff]   ;;  %v1618_v28 = vld [vmem:[%s2081_s4 + $0x274] ss:$8 sps:$4 sm:$0xff]   ;;  %v1616_v33 = vld [vmem:[%s2081_s4 + $0x270] ss:$8 sps:$4 sm:$0xff]  }
  0x25   : > { %869 = vmatpush1.bf16.msra.mxu1 %v1555_v40  ;;  %v1621_v36 = vld [vmem:[%s2081_s4 + $0x264] ss:$8 sps:$4 sm:$0xff]  }
  0x26   : > { %870 = vmatprep.subr.bf16.mxu1 %v1559_v41 }
  0x27   : > { %1341 = vmatmul.mubr.msk.bf16.vlgmr.msra.gmra.mxu0 %vm328_vm1, %v1339_v37  ;;  %v1619_v37 = vld [vmem:[%s2081_s4 + $0x260] ss:$8 sps:$4 sm:$0xff]  }
  0x28   : > { %656 = vmatpush1.bf16.msra.mxu0 %v1526_v38 }
  0x29   : > { %657 = vmatprep.subr.bf16.mxu0 %v1534_v39  ;;  %871 = vmatpush1.bf16.msra.mxu1 %v1561_v44  ;;  %v1624_v39 = vld [vmem:[%s2081_s4 + $0x254] ss:$8 sps:$4 sm:$0xff]   ;;  %v1622_v44 = vld [vmem:[%s2081_s4 + $0x250] ss:$8 sps:$4 sm:$0xff]  }
  0x2a   : > { %872 = vmatprep.subr.bf16.mxu1 %v1565_v45  ;;  %v1627_v45 = vld [vmem:[%s2081_s4 + $0x244] ss:$8 sps:$4 sm:$0xff]  }
  0x2c   : > { %658 = vmatpush1.bf16.msra.mxu0 %v1532_v42 }
  0x2d   : > { %659 = vmatprep.subr.bf16.mxu0 %v1540_v43  ;;  %873 = vmatpush2.bf16.msra.mxu1 %v1567_v48  ;;  %v1630_v48 = vld [vmem:[%s2081_s4 + $0x234] ss:$8 sps:$4 sm:$0xff]  }
  0x2e   : > { %874 = vmatprep.subr.bf16.mxu1 %v1571_v49  ;;  %v1438_v49 = vld [vmem:[%s2080_s3 + $0x8] sm:$0xf] }
  0x30   : > { %660 = vmatpush1.bf16.msra.mxu0 %v1538_v46 }
  0x31   : > { %661 = vmatprep.subr.bf16.mxu0 %v1546_v47  ;;  %875 = vmatpush2.bf16.msra.mxu1 %v1573_v52  ;;  %v1625_v47 = vld [vmem:[%s2081_s4 + $0x240] ss:$8 sps:$4 sm:$0xff]   ;;  %v1634_v52 = vld [vmem:[%s2081_s4 + $0x210] ss:$8 sps:$4 sm:$0xff]  }
  0x32   : > { %876 = vmatprep.subr.bf16.mxu1 %v1577_v54  ;;  %v1637_v54 = vld [vmem:[%s2081_s4 + $0x200] ss:$8 sps:$4 sm:$0xff]  }
  0x34   : > { %662 = vmatpush1.bf16.msra.mxu0 %v1544_v50  ;;  %v1631_v50 = vld [vmem:[%s2081_s4 + $0x220] ss:$8 sps:$4 sm:$0xff]  }
  0x35   : > { %663 = vmatprep.subr.bf16.mxu0 %v1552_v51  ;;  %877 = vmatpush2.bf16.msra.mxu1 %v1579_v56  ;;  %v1636_v51 = vld [vmem:[%s2081_s4 + $0x214] ss:$8 sps:$4 sm:$0xff]   ;;  %v1640_v56 = vld [vmem:[%s2081_s4 + $0x2f0] ss:$8 sps:$4 sm:$0xff]  }
  0x36   : > { %878 = vmatprep.subr.bf16.mxu1 %v1583_v57  ;;  %v1645_v57 = vld [vmem:[%s2081_s4 + $0x2e4] ss:$8 sps:$4 sm:$0xff]  }
  0x38   : > { %664 = vmatpush1.bf16.msra.mxu0 %v1550_v53  ;;  %v1639_v53 = vld [vmem:[%s2081_s4 + $0x204] ss:$8 sps:$4 sm:$0xff]  }
  0x39   : > { %665 = vmatprep.subr.bf16.mxu0 %v1558_v55  ;;  %879 = vmatpush2.bf16.msra.mxu1 %v1585_v60  ;;  %v1642_v55 = vld [vmem:[%s2081_s4 + $0x2f4] ss:$8 sps:$4 sm:$0xff]   ;;  %v1646_v60 = vld [vmem:[%s2081_s4 + $0x2d0] ss:$8 sps:$4 sm:$0xff]  }
  0x3a   : > { %880 = vmatprep.subr.bf16.mxu1 %v1589_v61  ;;  %v1651_v61 = vld [vmem:[%s2081_s4 + $0x2c4] ss:$8 sps:$4 sm:$0xff]  }
  0x3c   : > { %666 = vmatpush1.bf16.msra.mxu0 %v1556_v58  ;;  %v1643_v58 = vld [vmem:[%s2081_s4 + $0x2e0] ss:$8 sps:$4 sm:$0xff]  }
  0x3d   : > { %667 = vmatprep.subr.bf16.mxu0 %v1564_v59  ;;  %881 = vmatpush2.bf16.msra.mxu1 %v1591_v0  ;;  %v1648_v59 = vld [vmem:[%s2081_s4 + $0x2d4] ss:$8 sps:$4 sm:$0xff]   ;;  %v1652_v0 = vld [vmem:[%s2081_s4 + $0x2b0] ss:$8 sps:$4 sm:$0xff]  }
  0x3e   : > { %882 = vmatprep.subr.bf16.mxu1 %v1595_v1  ;;  %v1657_v1 = vld [vmem:[%s2081_s4 + $0x2a4] ss:$8 sps:$4 sm:$0xff]  }
  0x40   : > { %668 = vmatpush1.bf16.msra.mxu0 %v1562_v62  ;;  %v1649_v62 = vld [vmem:[%s2081_s4 + $0x2c0] ss:$8 sps:$4 sm:$0xff]  }
  0x41   : > { %669 = vmatprep.subr.bf16.mxu0 %v1570_v63  ;;  %883 = vmatpush2.bf16.msra.mxu1 %v1597_v5  ;;  %v1654_v63 = vld [vmem:[%s2081_s4 + $0x2b4] ss:$8 sps:$4 sm:$0xff]   ;;  %v1658_v5 = vld [vmem:[%s2081_s4 + $0x290] ss:$8 sps:$4 sm:$0xff]  }
  0x42   : > { %884 = vmatprep.subr.bf16.mxu1 %v1601_v6  ;;  %v1663_v6 = vld [vmem:[%s2081_s4 + $0x284] ss:$8 sps:$4 sm:$0xff]  }
  0x44   : > { %670 = vmatpush1.bf16.msra.mxu0 %v1568_v2  ;;  %v1655_v2 = vld [vmem:[%s2081_s4 + $0x2a0] ss:$8 sps:$4 sm:$0xff]  }
  0x45   : > { %671 = vmatprep.subr.bf16.mxu0 %v1576_v3  ;;  %885 = vmatpush2.bf16.msra.mxu1 %v1603_v11  ;;  %v1660_v3 = vld [vmem:[%s2081_s4 + $0x294] ss:$8 sps:$4 sm:$0xff]  }
  0x46   : > { %886 = vmatprep.subr.bf16.mxu1 %v1607_v20 }
  0x48   : > { %672 = vmatpush2.bf16.msra.mxu0 %v1574_v9  ;;  %v1661_v9 = vld [vmem:[%s2081_s4 + $0x280] ss:$8 sps:$4 sm:$0xff]  }
  0x49   : > { %673 = vmatprep.subr.bf16.mxu0 %v1582_v10  ;;  %887 = vmatpush2.bf16.msra.mxu1 %v1609_v22 }
  0x4a   : > { %1138 = vmatprep.subr.bf16.mxu1 %v1618_v28 }
  0x4c   : > { %674 = vmatpush2.bf16.msra.mxu0 %v1580_v12 }
  0x4d   : > { %675 = vmatprep.subr.bf16.mxu0 %v1588_v13 }
  0x50   : > { %676 = vmatpush2.bf16.msra.mxu0 %v1586_v14 }
  0x51   : > { %677 = vmatprep.subr.bf16.mxu0 %v1594_v15 }
  0x54   : > { %678 = vmatpush2.bf16.msra.mxu0 %v1592_v16 }
  0x55   : > { %679 = vmatprep.subr.bf16.mxu0 %v1600_v17 }
  0x58   : > { %680 = vmatpush2.bf16.msra.mxu0 %v1598_v18 }
  0x59   : > { %681 = vmatprep.subr.bf16.mxu0 %v1606_v19 }
  0x5c   : > { %682 = vmatpush2.bf16.msra.mxu0 %v1604_v21 }
  0x5d   : > { %683 = vmatprep.subr.bf16.mxu0 %v1612_v23 }
  0x60   : > { %684 = vmatpush2.bf16.msra.mxu0 %v1610_v24 }
  0x61   : > { %685 = vmatprep.subr.bf16.mxu0 %v1615_v25 }
  0x64   : > { %686 = vmatpush2.bf16.msra.mxu0 %v1613_v26  ;;  %v1181_v26 = vld [vmem:[%s2082_s5] sm:$0x3] }
  0x65   : > { %1439 = vmatprep.subr.msk.bf16.mxu0 %vm332_vm0, %v1768_v27  ;;  %v1186_v28 = vrot.slane %v1181_v26, %v1739_v8 }
  0xdf   : > { %v373_v29 = vpop.f32.mrf.mxu0 }
  0xe0   : > { %v380_v34 = vpack.c.bf16 %v373_v29, %v373_v29 }
  0xe1   : > { %v375_v31 = vpop.f32.mrf.mxu0 }
  0xe2   : > { %v381_v32 = vpack.c.bf16 %v375_v31, %v375_v31 }
  0xe3   : > { %v377_v35 = vpop.f32.mrf.mxu0 }
  0xe4   : > { %888 = vmatprep.mubr.bf16.mxu1 %v381_v32  ;;  %v1190_v32 = vrot.slane %v1181_v26, %v1737_v7 }
  0xe5   : > { %v378_v27 = vpop.f32.mrf.mxu0  ;;  %889 = vmatmul.mubr.bf16.vlgmr.msra.gmra.mxu1 %v380_v34 }
  0xe6   : > { %1139 = vmatpush1.bf16.msra.mxu1 %v1616_v33 }
  0xe7   : > { %v453_v38 = vpop.f32.mrf.mxu0  ;;  %1140 = vmatprep.subr.bf16.mxu1 %v1621_v36 }
  0xe8   : > { %v460_v42 = vpack.c.bf16 %v453_v38, %v453_v38 }
  0xe9   : > { %v455_v40 = vpop.f32.mrf.mxu0 }
  0xea   : > { %v461_v41 = vpack.c.bf16 %v455_v40, %v455_v40  ;;  %1141 = vmatpush1.bf16.msra.mxu1 %v1619_v37 }
  0xeb   : > { %v457_v43 = vpop.f32.mrf.mxu0  ;;  %1142 = vmatprep.subr.bf16.mxu1 %v1624_v39 }
  0xec   : > { %687 = vmatprep.mubr.bf16.mxu0 %v461_v41 }
  0xed   : > { %v458_v46 = vpop.f32.mrf.mxu0  ;;  %688 = vmatmul.mubr.bf16.vlgmr.msra.gmra.mxu0 %v460_v42 }
  0xee   : > { %917 = vmatpush1.bf16.msra.mxu0 %v1776_v30  ;;  %934 = vmatprep.mubr.bf16.mxu0 %v1672_v4  ;;  %v1628_v30 = vld [vmem:[%s2081_s4 + $0x230] ss:$8 sps:$4 sm:$0xff]   ;;  %v1633_v4 = vld [vmem:[%s2081_s4 + $0x224] ss:$8 sps:$4 sm:$0xff]  }
  0xef   : > { %1143 = vmatpush1.bf16.msra.mxu1 %v1622_v44 }
  0xf0   : > { %1144 = vmatprep.subr.bf16.mxu1 %v1627_v45 }
  0xf3   : > { %1145 = vmatpush1.bf16.msra.mxu1 %v1625_v47 }
  0xf4   : > { %1146 = vmatprep.subr.bf16.mxu1 %v1630_v48 }
  0xf5   : > { %1440 = vmatmul.mubr.msk.bf16.vlgmr.msra.gmra.mxu0 %vm328_vm1, %v1438_v49 }
  0xf7   : > { %1147 = vmatpush1.bf16.msra.mxu1 %v1628_v30 }
  0xf8   : > { %1148 = vmatprep.subr.bf16.mxu1 %v1633_v4 }
  0xfb   : > { %1149 = vmatpush1.bf16.msra.mxu1 %v1631_v50 }
  0xfc   : > { %1150 = vmatprep.subr.bf16.mxu1 %v1636_v51 }
  0xff   : > { %1151 = vmatpush1.bf16.msra.mxu1 %v1634_v52 }
 0x100   : > { %1152 = vmatprep.subr.bf16.mxu1 %v1639_v53 }
 0x103   : > { %1153 = vmatpush1.bf16.msra.mxu1 %v1637_v54 }
 0x104   : > { %1154 = vmatprep.subr.bf16.mxu1 %v1642_v55 }
 0x107   : > { %1155 = vmatpush2.bf16.msra.mxu1 %v1640_v56 }
 0x108   : > { %1156 = vmatprep.subr.bf16.mxu1 %v1645_v57 }
 0x10b   : > { %1157 = vmatpush2.bf16.msra.mxu1 %v1643_v58 }
 0x10c   : > { %1158 = vmatprep.subr.bf16.mxu1 %v1648_v59 }
 0x10f   : > { %1159 = vmatpush2.bf16.msra.mxu1 %v1646_v60 }
 0x110   : > { %1160 = vmatprep.subr.bf16.mxu1 %v1651_v61 }
 0x113   : > { %1161 = vmatpush2.bf16.msra.mxu1 %v1649_v62 }
 0x114   : > { %1162 = vmatprep.subr.bf16.mxu1 %v1654_v63 }
 0x117   : > { %1163 = vmatpush2.bf16.msra.mxu1 %v1652_v0 }
 0x118   : > { %1164 = vmatprep.subr.bf16.mxu1 %v1657_v1 }
 0x11b   : > { %1165 = vmatpush2.bf16.msra.mxu1 %v1655_v2 }
 0x11c   : > { %1166 = vmatprep.subr.bf16.mxu1 %v1660_v3 }
 0x11f   : > { %1167 = vmatpush2.bf16.msra.mxu1 %v1658_v5 }
 0x120   : > { %1168 = vmatprep.subr.bf16.mxu1 %v1663_v6 }
 0x123   : > { %1169 = vmatpush2.bf16.msra.mxu1 %v1661_v9 }
 0x1a5   : > { %v890_v10 = vpop.f32.mrf.mxu1 }
 0x1a7   : > { %v892_v11 = vpop.f32.mrf.mxu1 }
 0x1a9   : > { %v894_v12 = vpop.f32.mrf.mxu1 }
 0x1ab   : > { %v895_v13 = vpop.f32.mrf.mxu1 }
 0x1ad   : > { %v689_v14 = vpop.f32.mrf.mxu0 }
 0x1ae   : > { %v891_v15 = vadd.f32 %v890_v10, %v689_v14 }
 0x1af   : > { %v691_v16 = vpop.f32.mrf.mxu0 }
 0x1b0   : > { %v893_v17 = vadd.f32 %v892_v11, %v691_v16 }
 0x1b1   : > { %v693_v18 = vpop.f32.mrf.mxu0 }
 0x1b3   : > { %v694_v19 = vpop.f32.mrf.mxu0 }
 0x1b5   : > { %v936_v20 = vpop.f32.mrf.mxu0 }
 0x1b6   : > { %v943_v23 = vpack.c.bf16 %v936_v20, %v936_v20 }
 0x1b7   : > { %v938_v21 = vpop.f32.mrf.mxu0 }
 0x1b8   : > { %v944_v22 = vpack.c.bf16 %v938_v21, %v938_v21 }
 0x1b9   : > { %v940_v24 = vpop.f32.mrf.mxu0 }
 0x1ba   : > { %1170 = vmatprep.mubr.bf16.mxu1 %v944_v22 }
 0x1bb   : > { %v941_v25 = vpop.f32.mrf.mxu0  ;;  %1171 = vmatmul.mubr.bf16.vlgmr.msra.gmra.mxu1 %v943_v23 }
 0x27b   : > { %v1172_v29 = vpop.f32.mrf.mxu1 }
 0x27c   : > { %v1179_v31 = vadd.f32 %v1172_v29, %v891_v15 }
 0x27d   : > { %v1174_v33 = vpop.f32.mrf.mxu1 }
 0x27e   : > { %v1193_v34 = vadd.f32 %v1186_v28, %v1179_v31  ;;  %v1180_v35 = vadd.f32 %v1174_v33, %v893_v17 }
 0x27f   : > { %v1176_v36 = vpop.f32.mrf.mxu1 }
 0x280   : > { %1195 = vst [vmem:[%s286_s13] sm:$0xff] %v1193_v34  ;;  %v1197_v27 = vrot.slane %v1193_v34, 4  ;;  %v1209_v37 = vmul.f32 %v1193_v34, %v1193_v34  ;;  %v1194_v38 = vadd.f32 %v1190_v32, %v1180_v35 }
 0x281   : > { %v1177_v39 = vpop.f32.mrf.mxu1 }
 0x282   : > { %v1198_v40 = vadd.f32 %v1197_v27, %v1193_v34  ;;  %v1211_v8 = vrot.slane %v1209_v37, 4  ;;  %1196 = vst [vmem:[%s286_s13 + $0x8] sm:$0xff] %v1194_v38  ;;  %v1203_v41 = vrot.slane %v1194_v38, 4  ;;  %v1210_v42 = vmul.f32 %v1194_v38, %v1194_v38 }
 0x284   : > { %v1199_v7 = vrot.slane %v1198_v40, 2  ;;  %v1212_v43 = vadd.f32 %v1211_v8, %v1209_v37  ;;  %v1204_v44 = vadd.f32 %v1203_v41, %v1194_v38  ;;  %v1217_v45 = vrot.slane %v1210_v42, 4 }
 0x286   : > { %v1200_v46 = vadd.f32 %v1199_v7, %v1198_v40  ;;  %v1213_v47 = vrot.slane %v1212_v43, 2  ;;  %v1205_v48 = vrot.slane %v1204_v44, 2  ;;  %v1218_v49 = vadd.f32 %v1217_v45, %v1210_v42 }
 0x288   : > { %v1214_v30 = vadd.f32 %v1213_v47, %v1212_v43  ;;  %v1206_v4 = vadd.f32 %v1205_v48, %v1204_v44  ;;  %v1219_v50 = vrot.slane %v1218_v49, 2  ;;  %v1201_v51 = vrot.slane %v1200_v46, 1 }
 0x28a   : > { %v1215_v52 = vrot.slane %v1214_v30, 1  ;;  %v1207_v53 = vrot.slane %v1206_v4, 1  ;;  %v1220_v54 = vadd.f32 %v1219_v50, %v1218_v49  ;;  %v1202_v57 = vadd.f32 %v1201_v51, %v1200_v46 }
 0x28c   : > { %v1216_v55 = vadd.f32 %v1215_v52, %v1214_v30  ;;  %v1221_v56 = vrot.slane %v1220_v54, 1  ;;  %v1208_v58 = vadd.f32 %v1207_v53, %v1206_v4 }
 0x28e   : > { %v1222_v59 = vadd.f32 %v1221_v56, %v1220_v54  ;;  %v1224_v60 = vsel %vm1223_vm2, %v1202_v57, %v1216_v55 }
 0x290   : > { %v1225_v61 = vsel %vm1223_vm2, %v1208_v58, %v1222_v59 }
 0x291   : > { %v1228_v62 = vcombine.low %v1224_v60, %v1225_v61 }
 0x293   : > { %1505 = vst.sshfl [vmem:[%s291_s16] sm:$0x33 pattern:$0x76325410] %v1228_v62 }
 0x294 PF: > { %s18_s24 = sadd.s32 1, %s1670_s24  }
 0x295   : > { %p15_p4 = scmp.ge.s32.totalorder %s18_s24, 4  }
 0x297   :  { %17 = sbr.rel (!%p15_p4) target bundleno = 1 (0x1), region = 90 }

// kernel: model_forward.13
= control target key start
LH: loop header
LB: loop body
LE: loop exit
PB: predicated region body
PF: predicated region fallthrough
CT: control target
= control target key end

     0   :  { %vm586_vm0 = vcmask 1040384   ;;  %s1050_s1 = inlined_call_operand.vmem [shape: bf16[256,512], index: 1, kind: input, shape index: {}]   ;;  %s1051_s0 = inlined_call_operand.vmem [shape: f32[16,256], index: 0, kind: input, shape index: {}]   ;;  %s1052_s2 = inlined_call_operand.vmem [shape: f32[1,512], index: 2, kind: input, shape index: {}]   ;;  %s1053_s3 = inlined_call_operand.vmem [shape: f32[16,512], index: 3, kind: output, shape index: {0}]   ;;  %s1054_s4 = inlined_call_operand.vmem [shape: f32[1,2,512], index: 4, kind: output, shape index: {1}]  }
   0x1   :  { %v687_v0 = vld [vmem:[%s1050_s1 + $0xe4] ss:$16 sps:$4 sm:$0xff]   ;;  %v689_v1 = vld [vmem:[%s1050_s1 + $0xec] ss:$16 sps:$4 sm:$0xff]   ;;  %v691_v2 = vld [vmem:[%s1050_s1 + $0xe0] ss:$16 sps:$4 sm:$0xff]  }
   0x2   :  { %428 = vmatprep.subr.bf16.mxu0 %v687_v0  ;;  %v692_v3 = vld [vmem:[%s1050_s1 + $0xe8] ss:$16 sps:$4 sm:$0xff]   ;;  %471 = vmatprep.subr.bf16.mxu1 %v689_v1  ;;  %v693_v4 = vld [vmem:[%s1050_s1 + $0xc4] ss:$16 sps:$4 sm:$0xff]   ;;  %v695_v5 = vld [vmem:[%s1050_s1 + $0xcc] ss:$16 sps:$4 sm:$0xff]  }
   0x3   :  { %429 = vmatpush1.bf16.msra.mxu0 %v691_v2  ;;  %472 = vmatpush1.bf16.msra.mxu1 %v692_v3  ;;  %v697_v6 = vld [vmem:[%s1050_s1 + $0xc0] ss:$16 sps:$4 sm:$0xff]   ;;  %v698_v7 = vld [vmem:[%s1050_s1 + $0xc8] ss:$16 sps:$4 sm:$0xff]   ;;  %v699_v8 = vld [vmem:[%s1050_s1 + $0xa4] ss:$16 sps:$4 sm:$0xff]  }
   0x4   :  { %430 = vmatprep.subr.bf16.mxu0 %v693_v4  ;;  %473 = vmatprep.subr.bf16.mxu1 %v695_v5  ;;  %v701_v9 = vld [vmem:[%s1050_s1 + $0xac] ss:$16 sps:$4 sm:$0xff]   ;;  %v703_v10 = vld [vmem:[%s1050_s1 + $0xa0] ss:$16 sps:$4 sm:$0xff]   ;;  %v704_v11 = vld [vmem:[%s1050_s1 + $0xa8] ss:$16 sps:$4 sm:$0xff]  }
   0x5   :  { %v705_v12 = vld [vmem:[%s1050_s1 + $0x84] ss:$16 sps:$4 sm:$0xff]   ;;  %v707_v13 = vld [vmem:[%s1050_s1 + $0x8c] ss:$16 sps:$4 sm:$0xff]   ;;  %v709_v14 = vld [vmem:[%s1050_s1 + $0x80] ss:$16 sps:$4 sm:$0xff]  }
   0x6   :  { %v710_v15 = vld [vmem:[%s1050_s1 + $0x88] ss:$16 sps:$4 sm:$0xff]   ;;  %v711_v16 = vld [vmem:[%s1050_s1 + $0x64] ss:$16 sps:$4 sm:$0xff]   ;;  %v713_v17 = vld [vmem:[%s1050_s1 + $0x6c] ss:$16 sps:$4 sm:$0xff]  }
   0x7   :  { %431 = vmatpush1.bf16.msra.mxu0 %v697_v6  ;;  %474 = vmatpush1.bf16.msra.mxu1 %v698_v7  ;;  %v715_v18 = vld [vmem:[%s1050_s1 + $0x60] ss:$16 sps:$4 sm:$0xff]   ;;  %v716_v19 = vld [vmem:[%s1050_s1 + $0x68] ss:$16 sps:$4 sm:$0xff]   ;;  %v717_v20 = vld [vmem:[%s1050_s1 + $0x44] ss:$16 sps:$4 sm:$0xff]   ;;  %v88_v6 = vlaneseq }
   0x8   :  { %432 = vmatprep.subr.bf16.mxu0 %v699_v8  ;;  %475 = vmatprep.subr.bf16.mxu1 %v701_v9  ;;  %v719_v21 = vld [vmem:[%s1050_s1 + $0x4c] ss:$16 sps:$4 sm:$0xff]   ;;  %v721_v22 = vld [vmem:[%s1050_s1 + $0x40] ss:$16 sps:$4 sm:$0xff]   ;;  %v722_v23 = vld [vmem:[%s1050_s1 + $0x48] ss:$16 sps:$4 sm:$0xff]  }
   0x9   :  { %v723_v24 = vld [vmem:[%s1050_s1 + $0x24] ss:$16 sps:$4 sm:$0xff]   ;;  %v725_v25 = vld [vmem:[%s1050_s1 + $0x2c] ss:$16 sps:$4 sm:$0xff]   ;;  %v727_v26 = vld [vmem:[%s1050_s1 + $0x20] ss:$16 sps:$4 sm:$0xff]  }
   0xa   :  { %v728_v27 = vld [vmem:[%s1050_s1 + $0x28] ss:$16 sps:$4 sm:$0xff]   ;;  %v729_v28 = vld [vmem:[%s1050_s1 + $0x4] ss:$16 sps:$4 sm:$0xff]   ;;  %v731_v29 = vld [vmem:[%s1050_s1 + $0xc] ss:$16 sps:$4 sm:$0xff]  }
   0xb   :  { %433 = vmatpush1.bf16.msra.mxu0 %v703_v10  ;;  %476 = vmatpush1.bf16.msra.mxu1 %v704_v11  ;;  %v733_v30 = vld [vmem:[%s1050_s1] ss:$16 sps:$4 sm:$0xff]   ;;  %v734_v31 = vld [vmem:[%s1050_s1 + $0x8] ss:$16 sps:$4 sm:$0xff]   ;;  %v735_v32 = vld [vmem:[%s1050_s1 + $0x1e4] ss:$16 sps:$4 sm:$0xff]  }
   0xc   :  { %434 = vmatprep.subr.bf16.mxu0 %v705_v12  ;;  %477 = vmatprep.subr.bf16.mxu1 %v707_v13  ;;  %v737_v33 = vld [vmem:[%s1050_s1 + $0x1ec] ss:$16 sps:$4 sm:$0xff]   ;;  %v739_v34 = vld [vmem:[%s1050_s1 + $0x1e0] ss:$16 sps:$4 sm:$0xff]   ;;  %v740_v35 = vld [vmem:[%s1050_s1 + $0x1e8] ss:$16 sps:$4 sm:$0xff]  }
   0xd   :  { %v741_v36 = vld [vmem:[%s1050_s1 + $0x1c4] ss:$16 sps:$4 sm:$0xff]   ;;  %v743_v37 = vld [vmem:[%s1050_s1 + $0x1cc] ss:$16 sps:$4 sm:$0xff]   ;;  %v745_v38 = vld [vmem:[%s1050_s1 + $0x1c0] ss:$16 sps:$4 sm:$0xff]  }
   0xe   :  { %v746_v39 = vld [vmem:[%s1050_s1 + $0x1c8] ss:$16 sps:$4 sm:$0xff]   ;;  %v747_v40 = vld [vmem:[%s1050_s1 + $0x1a4] ss:$16 sps:$4 sm:$0xff]   ;;  %v749_v41 = vld [vmem:[%s1050_s1 + $0x1ac] ss:$16 sps:$4 sm:$0xff]  }
   0xf   :  { %435 = vmatpush1.bf16.msra.mxu0 %v709_v14  ;;  %478 = vmatpush1.bf16.msra.mxu1 %v710_v15  ;;  %v751_v42 = vld [vmem:[%s1050_s1 + $0x1a0] ss:$16 sps:$4 sm:$0xff]   ;;  %v752_v43 = vld [vmem:[%s1050_s1 + $0x1a8] ss:$16 sps:$4 sm:$0xff]   ;;  %v753_v44 = vld [vmem:[%s1050_s1 + $0x184] ss:$16 sps:$4 sm:$0xff]  }
  0x10   :  { %436 = vmatprep.subr.bf16.mxu0 %v711_v16  ;;  %479 = vmatprep.subr.bf16.mxu1 %v713_v17  ;;  %v755_v45 = vld [vmem:[%s1050_s1 + $0x18c] ss:$16 sps:$4 sm:$0xff]   ;;  %v757_v48 = vld [vmem:[%s1050_s1 + $0x180] ss:$16 sps:$4 sm:$0xff]   ;;  %v758_v49 = vld [vmem:[%s1050_s1 + $0x188] ss:$16 sps:$4 sm:$0xff]  }
  0x11   :  { %v17_v46 = vld [vmem:[%s1051_s0 + $0x8] sm:$0xff]  ;;  %v19_v47 = vld [vmem:[%s1051_s0 + $0x18] sm:$0xff]  ;;  %v759_v51 = vld [vmem:[%s1050_s1 + $0x164] ss:$16 sps:$4 sm:$0xff]   ;;  %v1013_v7 = vshrl.u32 %v88_v6, 7 }
  0x12   :  { %v21_v50 = vpack.c.bf16 %v19_v47, %v17_v46  ;;  %v761_v52 = vld [vmem:[%s1050_s1 + $0x16c] ss:$16 sps:$4 sm:$0xff]   ;;  %v763_v53 = vld [vmem:[%s1050_s1 + $0x160] ss:$16 sps:$4 sm:$0xff]   ;;  %v764_v54 = vld [vmem:[%s1050_s1 + $0x168] ss:$16 sps:$4 sm:$0xff]  }
  0x13   :  { %437 = vmatpush1.bf16.msra.mxu0 %v715_v18  ;;  %480 = vmatpush1.bf16.msra.mxu1 %v716_v19  ;;  %v765_v55 = vld [vmem:[%s1050_s1 + $0x144] ss:$16 sps:$4 sm:$0xff]   ;;  %v767_v56 = vld [vmem:[%s1050_s1 + $0x14c] ss:$16 sps:$4 sm:$0xff]   ;;  %v769_v57 = vld [vmem:[%s1050_s1 + $0x140] ss:$16 sps:$4 sm:$0xff]  }
  0x14   :  { %438 = vmatprep.subr.bf16.mxu0 %v717_v20  ;;  %481 = vmatprep.subr.bf16.mxu1 %v719_v21  ;;  %v770_v58 = vld [vmem:[%s1050_s1 + $0x148] ss:$16 sps:$4 sm:$0xff]   ;;  %v771_v59 = vld [vmem:[%s1050_s1 + $0x124] ss:$16 sps:$4 sm:$0xff]   ;;  %v773_v60 = vld [vmem:[%s1050_s1 + $0x12c] ss:$16 sps:$4 sm:$0xff]  }
  0x15   :  { %460 = vmatprep.mubr.bf16.mxu0 %v21_v50  ;;  %503 = vmatprep.mubr.bf16.mxu1 %v21_v50  ;;  %v775_v61 = vld [vmem:[%s1050_s1 + $0x120] ss:$16 sps:$4 sm:$0xff]   ;;  %v776_v62 = vld [vmem:[%s1050_s1 + $0x128] ss:$16 sps:$4 sm:$0xff]   ;;  %v777_v63 = vld [vmem:[%s1050_s1 + $0x104] ss:$16 sps:$4 sm:$0xff]  }
  0x16   :  { %v779_v0 = vld [vmem:[%s1050_s1 + $0x10c] ss:$16 sps:$4 sm:$0xff]   ;;  %v781_v1 = vld [vmem:[%s1050_s1 + $0x100] ss:$16 sps:$4 sm:$0xff]   ;;  %v782_v2 = vld [vmem:[%s1050_s1 + $0x108] ss:$16 sps:$4 sm:$0xff]  }
  0x17   :  { %439 = vmatpush1.bf16.msra.mxu0 %v721_v22  ;;  %482 = vmatpush1.bf16.msra.mxu1 %v722_v23  ;;  %v16_v3 = vld [vmem:[%s1051_s0] sm:$0xff]  ;;  %v18_v4 = vld [vmem:[%s1051_s0 + $0x10] sm:$0xff]  ;;  %v90_v8 = vsub.s32 0, %v1013_v7  ;;  %v98_v9 = vsub.s32 2, %v1013_v7  ;;  %v94_v11 = vsub.s32 1, %v1013_v7  ;;  %v102_v12 = vsub.s32 3, %v1013_v7 }
  0x18   :  { %440 = vmatprep.subr.bf16.mxu0 %v723_v24  ;;  %483 = vmatprep.subr.bf16.mxu1 %v725_v25  ;;  %v20_v5 = vpack.c.bf16 %v18_v4, %v16_v3  ;;  %v86_v10 = vld [vmem:[%s1052_s2] sm:$0xf] }
  0x19   :  { %v91_v13 = vrot.slane %v86_v10, %v90_v8  ;;  %v99_v14 = vrot.slane %v86_v10, %v98_v9  ;;  %v95_v15 = vrot.slane %v86_v10, %v94_v11  ;;  %v103_v16 = vrot.slane %v86_v10, %v102_v12 }
  0x1a   :  { %v783_v12 = vmov 1983009808  }
  0x1b   :  { %441 = vmatpush1.bf16.msra.mxu0 %v727_v26  ;;  %484 = vmatpush1.bf16.msra.mxu1 %v728_v27 }
  0x1c   :  { %442 = vmatprep.subr.bf16.mxu0 %v729_v28  ;;  %485 = vmatprep.subr.bf16.mxu1 %v731_v29 }
  0x1f   :  { %443 = vmatpush1.bf16.msra.mxu0 %v733_v30  ;;  %486 = vmatpush1.bf16.msra.mxu1 %v734_v31 }
  0x20   :  { %444 = vmatprep.subr.bf16.mxu0 %v735_v32  ;;  %487 = vmatprep.subr.bf16.mxu1 %v737_v33 }
  0x23   :  { %445 = vmatpush2.bf16.msra.mxu0 %v739_v34  ;;  %488 = vmatpush2.bf16.msra.mxu1 %v740_v35 }
  0x24   :  { %446 = vmatprep.subr.bf16.mxu0 %v741_v36  ;;  %489 = vmatprep.subr.bf16.mxu1 %v743_v37 }
  0x27   :  { %447 = vmatpush2.bf16.msra.mxu0 %v745_v38  ;;  %490 = vmatpush2.bf16.msra.mxu1 %v746_v39 }
  0x28   :  { %448 = vmatprep.subr.bf16.mxu0 %v747_v40  ;;  %491 = vmatprep.subr.bf16.mxu1 %v749_v41 }
  0x2b   :  { %449 = vmatpush2.bf16.msra.mxu0 %v751_v42  ;;  %492 = vmatpush2.bf16.msra.mxu1 %v752_v43 }
  0x2c   :  { %450 = vmatprep.subr.bf16.mxu0 %v753_v44  ;;  %493 = vmatprep.subr.bf16.mxu1 %v755_v45 }
  0x2f   :  { %451 = vmatpush2.bf16.msra.mxu0 %v757_v48  ;;  %494 = vmatpush2.bf16.msra.mxu1 %v758_v49 }
  0x30   :  { %452 = vmatprep.subr.bf16.mxu0 %v759_v51  ;;  %495 = vmatprep.subr.bf16.mxu1 %v761_v52 }
  0x33   :  { %453 = vmatpush2.bf16.msra.mxu0 %v763_v53  ;;  %496 = vmatpush2.bf16.msra.mxu1 %v764_v54 }
  0x34   :  { %454 = vmatprep.subr.bf16.mxu0 %v765_v55  ;;  %497 = vmatprep.subr.bf16.mxu1 %v767_v56 }
  0x37   :  { %455 = vmatpush2.bf16.msra.mxu0 %v769_v57  ;;  %498 = vmatpush2.bf16.msra.mxu1 %v770_v58 }
  0x38   :  { %456 = vmatprep.subr.bf16.mxu0 %v771_v59  ;;  %499 = vmatprep.subr.bf16.mxu1 %v773_v60 }
  0x3b   :  { %457 = vmatpush2.bf16.msra.mxu0 %v775_v61  ;;  %500 = vmatpush2.bf16.msra.mxu1 %v776_v62 }
  0x3c   :  { %458 = vmatprep.subr.bf16.mxu0 %v777_v63  ;;  %501 = vmatprep.subr.bf16.mxu1 %v779_v0 }
  0x3f   :  { %459 = vmatpush2.bf16.msra.mxu0 %v781_v1  ;;  %502 = vmatpush2.bf16.msra.mxu1 %v782_v2 }
  0x42   :  { %461 = vmatmul.mubr.bf16.vlgmr.msra.gmra.mxu0 %v20_v5  ;;  %504 = vmatmul.mubr.bf16.vlgmr.msra.gmra.mxu1 %v20_v5 }
 0x102   :  { %v462_v17 = vpop.f32.mrf.mxu0  ;;  %v505_v18 = vpop.f32.mrf.mxu1 }
 0x103   :  { %v463_v19 = vadd.f32 %v462_v17, %v91_v13  ;;  %v506_v20 = vadd.f32 %v505_v18, %v99_v14 }
 0x104   :  { %v464_v21 = vpop.f32.mrf.mxu0  ;;  %v507_v22 = vpop.f32.mrf.mxu1 }
 0x105   :  { %514 = vst [vmem:[%s1053_s3] sm:$0xff] %v463_v19  ;;  %516 = vst [vmem:[%s1053_s3 + $0x10] sm:$0xff] %v506_v20  ;;  %v465_v23 = vadd.f32 %v464_v21, %v95_v15  ;;  %v508_v24 = vadd.f32 %v507_v22, %v103_v16  ;;  %v550_v29 = vmul.f32 %v463_v19, %v463_v19 }
 0x106   :  { %v466_v25 = vpop.f32.mrf.mxu0  ;;  %v509_v26 = vpop.f32.mrf.mxu1  ;;  %v552_v30 = vmul.f32 %v506_v20, %v506_v20 }
 0x107   :  { %515 = vst [vmem:[%s1053_s3 + $0x8] sm:$0xff] %v465_v23  ;;  %517 = vst [vmem:[%s1053_s3 + $0x18] sm:$0xff] %v508_v24  ;;  %v467_v27 = vadd.f32 %v466_v25, %v91_v13  ;;  %v510_v28 = vadd.f32 %v509_v26, %v99_v14  ;;  %v551_v37 = vmul.f32 %v465_v23, %v465_v23  ;;  %v598_v13 = vunpack.c.l.s4 %v783_v12 }
 0x108   :  { %v468_v31 = vpop.f32.mrf.mxu0  ;;  %v511_v32 = vpop.f32.mrf.mxu1  ;;  %v553_v38 = vmul.f32 %v508_v24, %v508_v24 }
 0x109   :  { %518 = vst [vmem:[%s1053_s3 + $0x20] sm:$0xff] %v467_v27  ;;  %v522_v33 = vadd.f32 %v467_v27, %v463_v19  ;;  %v554_v34 = vmul.f32 %v467_v27, %v467_v27  ;;  %520 = vst [vmem:[%s1053_s3 + $0x30] sm:$0xff] %v510_v28  ;;  %v536_v35 = vadd.f32 %v510_v28, %v506_v20  ;;  %v599_v26 = vunpack.c.0.s8 %v598_v13 }
 0x10a   :  { %v556_v36 = vmul.f32 %v510_v28, %v510_v28  ;;  %v469_v39 = vadd.f32 %v468_v31, %v95_v15  ;;  %v512_v40 = vadd.f32 %v511_v32, %v103_v16 }
 0x10b   :  { %v523_v41 = vrot.slane %v522_v33, 4  ;;  %v558_v42 = vadd.f32 %v554_v34, %v550_v29  ;;  %v537_v43 = vrot.slane %v536_v35, 4 }
 0x10c   :  { %v572_v44 = vadd.f32 %v556_v36, %v552_v30  ;;  %519 = vst [vmem:[%s1053_s3 + $0x28] sm:$0xff] %v469_v39  ;;  %v529_v45 = vadd.f32 %v469_v39, %v465_v23  ;;  %v555_v46 = vmul.f32 %v469_v39, %v469_v39  ;;  %521 = vst [vmem:[%s1053_s3 + $0x38] sm:$0xff] %v512_v40 }
 0x10d   :  { %v543_v47 = vadd.f32 %v512_v40, %v508_v24  ;;  %v557_v48 = vmul.f32 %v512_v40, %v512_v40  ;;  %v524_v49 = vadd.f32 %v523_v41, %v522_v33  ;;  %v559_v50 = vrot.slane %v558_v42, 4 }
 0x10e   :  { %v538_v51 = vadd.f32 %v537_v43, %v536_v35  ;;  %v573_v52 = vrot.slane %v572_v44, 4  ;;  %v530_v53 = vrot.slane %v529_v45, 4  ;;  %v565_v54 = vadd.f32 %v555_v46, %v551_v37 }
 0x10f   :  { %v544_v55 = vrot.slane %v543_v47, 4  ;;  %v579_v56 = vadd.f32 %v557_v48, %v553_v38  ;;  %v525_v57 = vrot.slane %v524_v49, 2  ;;  %v560_v58 = vadd.f32 %v559_v50, %v558_v42 }
 0x110   :  { %v539_v59 = vrot.slane %v538_v51, 2  ;;  %v574_v60 = vadd.f32 %v573_v52, %v572_v44  ;;  %v531_v61 = vadd.f32 %v530_v53, %v529_v45  ;;  %v566_v62 = vrot.slane %v565_v54, 4 }
 0x111   :  { %v545_v63 = vadd.f32 %v544_v55, %v543_v47  ;;  %v580_v0 = vrot.slane %v579_v56, 4  ;;  %v526_v1 = vadd.f32 %v525_v57, %v524_v49  ;;  %v561_v2 = vrot.slane %v560_v58, 2 }
 0x112   :  { %v540_v3 = vadd.f32 %v539_v59, %v538_v51  ;;  %v575_v4 = vrot.slane %v574_v60, 2  ;;  %v532_v5 = vrot.slane %v531_v61, 2  ;;  %v567_v6 = vadd.f32 %v566_v62, %v565_v54 }
 0x113   :  { %v546_v8 = vrot.slane %v545_v63, 2  ;;  %v581_v9 = vadd.f32 %v580_v0, %v579_v56  ;;  %v562_v10 = vadd.f32 %v561_v2, %v560_v58  ;;  %v527_v18 = vrot.slane %v526_v1, 1 }
 0x114   :  { %v576_v11 = vadd.f32 %v575_v4, %v574_v60  ;;  %v533_v14 = vadd.f32 %v532_v5, %v531_v61  ;;  %v568_v15 = vrot.slane %v567_v6, 2  ;;  %v541_v20 = vrot.slane %v540_v3, 1 }
 0x115   :  { %v547_v16 = vadd.f32 %v546_v8, %v545_v63  ;;  %v582_v17 = vrot.slane %v581_v9, 2  ;;  %v563_v19 = vrot.slane %v562_v10, 1  ;;  %v528_v31 = vadd.f32 %v527_v18, %v526_v1 }
 0x116   :  { %v577_v21 = vrot.slane %v576_v11, 1  ;;  %v534_v22 = vrot.slane %v533_v14, 1  ;;  %v569_v23 = vadd.f32 %v568_v15, %v567_v6  ;;  %v542_v32 = vadd.f32 %v541_v20, %v540_v3 }
 0x117   :  { %v548_v24 = vrot.slane %v547_v16, 1  ;;  %v583_v25 = vadd.f32 %v582_v17, %v581_v9  ;;  %v564_v27 = vadd.f32 %v563_v19, %v562_v10  ;;  %v602_v37 = vsub.s32 %v599_v26, %v1013_v7 }
 0x118   :  { %v578_v28 = vadd.f32 %v577_v21, %v576_v11  ;;  %v570_v29 = vrot.slane %v569_v23, 1  ;;  %v535_v33 = vadd.f32 %v534_v22, %v533_v14 }
 0x119   :  { %v584_v30 = vrot.slane %v583_v25, 1  ;;  %v549_v35 = vadd.f32 %v548_v24, %v547_v16  ;;  %v587_v38 = vsel %vm586_vm0, %v528_v31, %v564_v27 }
 0x11a   :  { %v571_v34 = vadd.f32 %v570_v29, %v569_v23  ;;  %v589_v39 = vsel %vm586_vm0, %v542_v32, %v578_v28 }
 0x11b   :  { %v585_v36 = vadd.f32 %v584_v30, %v583_v25 }
 0x11c   :  { %v588_v40 = vsel %vm586_vm0, %v535_v33, %v571_v34 }
 0x11d   :  { %v590_v41 = vsel %vm586_vm0, %v549_v35, %v585_v36  ;;  %v595_v42 = vcombine.low %v587_v38, %v588_v40 }
 0x11e   :  { %v596_v43 = vcombine.low %v589_v39, %v590_v41 }
 0x11f   :  { %v603_v44 = vrot.slane %v595_v42, %v602_v37 }
 0x120   :  { %v610_v45 = vrot.slane %v596_v43, %v602_v37 }
 0x122   :  { %v611_v46 = vcombine.low %v603_v44, %v610_v45 }
 0x124   :  { %613 = vst [vmem:[%s1054_s4] sm:$0xff] %v611_v46 }

// kernel: squeeze.15
= control target key start
LH: loop header
LB: loop body
LE: loop exit
PB: predicated region body
PF: predicated region fallthrough
CT: control target
= control target key end

     0   :  { %s35_s8 = smov 32   ;;  %vm8_vm0 = vcmask 261120   ;;  %s36_s11 = smov 64   ;;  %s62_s0 = inlined_call_operand.vmem [shape: f32[512], index: 0, kind: input, shape index: {}]   ;;  %s63_s1 = inlined_call_operand.vmem [shape: f32[16,32], index: 1, kind: output, shape index: {}]  }
   0x1   :  { %v5_v0 = vld [vmem:[%s62_s0] sm:$0xf]  ;;  %s34_s0 = smov 96  }
   0x2   :  { %6 = vst [vmem:[#allocation0] sm:$0xf] %v5_v0 }
   0x9   :  { %v10_v1 = vld [vmem:[#allocation0] sm:$0xf]  }
   0xa   :  { %v22_v2 = vld [vmem:[#allocation0] sm:$0xf]   ;;  %11 = vrot.lane.b32.xlu0 %v10_v1, %s34_s0 }
   0xb   :  { %23 = vrot.lane.b32.xlu1 %v22_v2, %s35_s8  ;;  %v7_v3 = vld [vmem:[#allocation0] sm:$0xf]  }
   0xc   :  { %v16_v4 = vld [vmem:[#allocation0] sm:$0xf]   ;;  %9 = vst.msk [vmem:[%s63_s1] ss:$4 sm:$0xf] %vm8_vm0, %v7_v3  }
   0xe   :  { %17 = vrot.lane.b32.xlu0 %v16_v4, %s36_s11 }
  0x7c   :  { %v12_v5 = vpop.permute.xlu0 %11  }
  0x7d   :  { %v24_v6 = vpop.permute.xlu1 %23   ;;  %28 = vst.msk [vmem:[%s63_s1 + $0x1] ss:$4 sm:$0xf] %vm8_vm0, %v12_v5  }
  0x7e   :  { %30 = vst.msk [vmem:[%s63_s1 + $0x3] ss:$4 sm:$0xf] %vm8_vm0, %v24_v6  }
  0x80   :  { %v18_v7 = vpop.permute.xlu0 %17  }
  0x81   :  { %29 = vst.msk [vmem:[%s63_s1 + $0x2] ss:$4 sm:$0xf] %vm8_vm0, %v18_v7  }

// kernel: tile.73
= control target key start
LH: loop header
LB: loop body
LE: loop exit
PB: predicated region body
PF: predicated region fallthrough
CT: control target
= control target key end

     0   :  { %s28_s0 = inlined_call_operand.vmem [shape: f32[32], index: 0, kind: input, shape index: {}]   ;;  %s29_s1 = inlined_call_operand.vmem [shape: f32[16,32], index: 1, kind: output, shape index: {}]  }
   0x1   :  { %v4_v0 = vld [vmem:[%s28_s0] ss:$0 sm:$0xff] }
   0x2   :  { %5 = vst [vmem:[%s29_s1] sm:$0xff] %v4_v0  ;;  %8 = vst [vmem:[%s29_s1 + $0x8] sm:$0xff] %v4_v0 }

// kernel: model_forward.15
= control target key start
LH: loop header
LB: loop body
LE: loop exit
PB: predicated region body
PF: predicated region fallthrough
CT: control target
= control target key end

     0   :  { %vm564_vm0 = vcmask 1040384   ;;  %s1010_s1 = inlined_call_operand.vmem [shape: bf16[256,512], index: 1, kind: input, shape index: {}]   ;;  %s1011_s0 = inlined_call_operand.vmem [shape: f32[8,256], index: 0, kind: input, shape index: {}]   ;;  %s1012_s2 = inlined_call_operand.vmem [shape: f32[1,512], index: 2, kind: input, shape index: {}]   ;;  %s1013_s3 = inlined_call_operand.vmem [shape: f32[8,512], index: 3, kind: output, shape index: {0}]   ;;  %s1014_s4 = inlined_call_operand.vmem [shape: f32[1,2,512], index: 4, kind: output, shape index: {1}]  }
   0x1   :  { %v665_v0 = vld [vmem:[%s1010_s1 + $0xe4] ss:$16 sps:$4 sm:$0xff]   ;;  %v667_v1 = vld [vmem:[%s1010_s1 + $0xec] ss:$16 sps:$4 sm:$0xff]   ;;  %v669_v2 = vld [vmem:[%s1010_s1 + $0xe0] ss:$16 sps:$4 sm:$0xff]  }
   0x2   :  { %426 = vmatprep.subr.bf16.mxu0 %v665_v0  ;;  %v670_v3 = vld [vmem:[%s1010_s1 + $0xe8] ss:$16 sps:$4 sm:$0xff]   ;;  %467 = vmatprep.subr.bf16.mxu1 %v667_v1  ;;  %v671_v4 = vld [vmem:[%s1010_s1 + $0xc4] ss:$16 sps:$4 sm:$0xff]   ;;  %v673_v5 = vld [vmem:[%s1010_s1 + $0xcc] ss:$16 sps:$4 sm:$0xff]  }
   0x3   :  { %427 = vmatpush1.bf16.msra.mxu0 %v669_v2  ;;  %468 = vmatpush1.bf16.msra.mxu1 %v670_v3  ;;  %v675_v6 = vld [vmem:[%s1010_s1 + $0xc0] ss:$16 sps:$4 sm:$0xff]   ;;  %v676_v7 = vld [vmem:[%s1010_s1 + $0xc8] ss:$16 sps:$4 sm:$0xff]   ;;  %v677_v8 = vld [vmem:[%s1010_s1 + $0xa4] ss:$16 sps:$4 sm:$0xff]  }
   0x4   :  { %428 = vmatprep.subr.bf16.mxu0 %v671_v4  ;;  %469 = vmatprep.subr.bf16.mxu1 %v673_v5  ;;  %v679_v9 = vld [vmem:[%s1010_s1 + $0xac] ss:$16 sps:$4 sm:$0xff]   ;;  %v681_v10 = vld [vmem:[%s1010_s1 + $0xa0] ss:$16 sps:$4 sm:$0xff]   ;;  %v682_v11 = vld [vmem:[%s1010_s1 + $0xa8] ss:$16 sps:$4 sm:$0xff]   ;;  %v86_v4 = vlaneseq }
   0x5   :  { %v683_v12 = vld [vmem:[%s1010_s1 + $0x84] ss:$16 sps:$4 sm:$0xff]   ;;  %v685_v13 = vld [vmem:[%s1010_s1 + $0x8c] ss:$16 sps:$4 sm:$0xff]   ;;  %v687_v14 = vld [vmem:[%s1010_s1 + $0x80] ss:$16 sps:$4 sm:$0xff]  }
   0x6   :  { %v688_v15 = vld [vmem:[%s1010_s1 + $0x88] ss:$16 sps:$4 sm:$0xff]   ;;  %v689_v16 = vld [vmem:[%s1010_s1 + $0x64] ss:$16 sps:$4 sm:$0xff]   ;;  %v691_v17 = vld [vmem:[%s1010_s1 + $0x6c] ss:$16 sps:$4 sm:$0xff]  }
   0x7   :  { %429 = vmatpush1.bf16.msra.mxu0 %v675_v6  ;;  %470 = vmatpush1.bf16.msra.mxu1 %v676_v7  ;;  %v693_v18 = vld [vmem:[%s1010_s1 + $0x60] ss:$16 sps:$4 sm:$0xff]   ;;  %v694_v19 = vld [vmem:[%s1010_s1 + $0x68] ss:$16 sps:$4 sm:$0xff]   ;;  %v695_v20 = vld [vmem:[%s1010_s1 + $0x44] ss:$16 sps:$4 sm:$0xff]  }
   0x8   :  { %430 = vmatprep.subr.bf16.mxu0 %v677_v8  ;;  %471 = vmatprep.subr.bf16.mxu1 %v679_v9  ;;  %v697_v21 = vld [vmem:[%s1010_s1 + $0x4c] ss:$16 sps:$4 sm:$0xff]   ;;  %v699_v22 = vld [vmem:[%s1010_s1 + $0x40] ss:$16 sps:$4 sm:$0xff]   ;;  %v700_v23 = vld [vmem:[%s1010_s1 + $0x48] ss:$16 sps:$4 sm:$0xff]  }
   0x9   :  { %v701_v24 = vld [vmem:[%s1010_s1 + $0x24] ss:$16 sps:$4 sm:$0xff]   ;;  %v703_v25 = vld [vmem:[%s1010_s1 + $0x2c] ss:$16 sps:$4 sm:$0xff]   ;;  %v705_v26 = vld [vmem:[%s1010_s1 + $0x20] ss:$16 sps:$4 sm:$0xff]  }
   0xa   :  { %v706_v27 = vld [vmem:[%s1010_s1 + $0x28] ss:$16 sps:$4 sm:$0xff]   ;;  %v707_v28 = vld [vmem:[%s1010_s1 + $0x4] ss:$16 sps:$4 sm:$0xff]   ;;  %v709_v29 = vld [vmem:[%s1010_s1 + $0xc] ss:$16 sps:$4 sm:$0xff]  }
   0xb   :  { %431 = vmatpush1.bf16.msra.mxu0 %v681_v10  ;;  %472 = vmatpush1.bf16.msra.mxu1 %v682_v11  ;;  %v711_v30 = vld [vmem:[%s1010_s1] ss:$16 sps:$4 sm:$0xff]   ;;  %v712_v31 = vld [vmem:[%s1010_s1 + $0x8] ss:$16 sps:$4 sm:$0xff]   ;;  %v713_v32 = vld [vmem:[%s1010_s1 + $0x1e4] ss:$16 sps:$4 sm:$0xff]  }
   0xc   :  { %432 = vmatprep.subr.bf16.mxu0 %v683_v12  ;;  %473 = vmatprep.subr.bf16.mxu1 %v685_v13  ;;  %v715_v33 = vld [vmem:[%s1010_s1 + $0x1ec] ss:$16 sps:$4 sm:$0xff]   ;;  %v717_v34 = vld [vmem:[%s1010_s1 + $0x1e0] ss:$16 sps:$4 sm:$0xff]   ;;  %v718_v35 = vld [vmem:[%s1010_s1 + $0x1e8] ss:$16 sps:$4 sm:$0xff]  }
   0xd   :  { %v719_v36 = vld [vmem:[%s1010_s1 + $0x1c4] ss:$16 sps:$4 sm:$0xff]   ;;  %v721_v37 = vld [vmem:[%s1010_s1 + $0x1cc] ss:$16 sps:$4 sm:$0xff]   ;;  %v723_v38 = vld [vmem:[%s1010_s1 + $0x1c0] ss:$16 sps:$4 sm:$0xff]  }
   0xe   :  { %v724_v39 = vld [vmem:[%s1010_s1 + $0x1c8] ss:$16 sps:$4 sm:$0xff]   ;;  %v725_v40 = vld [vmem:[%s1010_s1 + $0x1a4] ss:$16 sps:$4 sm:$0xff]   ;;  %v727_v41 = vld [vmem:[%s1010_s1 + $0x1ac] ss:$16 sps:$4 sm:$0xff]  }
   0xf   :  { %433 = vmatpush1.bf16.msra.mxu0 %v687_v14  ;;  %474 = vmatpush1.bf16.msra.mxu1 %v688_v15  ;;  %v729_v42 = vld [vmem:[%s1010_s1 + $0x1a0] ss:$16 sps:$4 sm:$0xff]   ;;  %v730_v43 = vld [vmem:[%s1010_s1 + $0x1a8] ss:$16 sps:$4 sm:$0xff]   ;;  %v731_v44 = vld [vmem:[%s1010_s1 + $0x184] ss:$16 sps:$4 sm:$0xff]  }
  0x10   :  { %434 = vmatprep.subr.bf16.mxu0 %v689_v16  ;;  %475 = vmatprep.subr.bf16.mxu1 %v691_v17  ;;  %v733_v45 = vld [vmem:[%s1010_s1 + $0x18c] ss:$16 sps:$4 sm:$0xff]   ;;  %v735_v47 = vld [vmem:[%s1010_s1 + $0x180] ss:$16 sps:$4 sm:$0xff]   ;;  %v736_v48 = vld [vmem:[%s1010_s1 + $0x188] ss:$16 sps:$4 sm:$0xff]  }
  0x11   :  { %v17_v46 = vld [vmem:[%s1011_s0 + $0x8] sm:$0xff]  ;;  %v737_v50 = vld [vmem:[%s1010_s1 + $0x164] ss:$16 sps:$4 sm:$0xff]   ;;  %v741_v52 = vld [vmem:[%s1010_s1 + $0x160] ss:$16 sps:$4 sm:$0xff]   ;;  %v985_v5 = vshrl.u32 %v86_v4, 7 }
  0x12   :  { %v19_v49 = vpack.c.bf16 %v17_v46, %v17_v46  ;;  %v739_v51 = vld [vmem:[%s1010_s1 + $0x16c] ss:$16 sps:$4 sm:$0xff]   ;;  %v742_v53 = vld [vmem:[%s1010_s1 + $0x168] ss:$16 sps:$4 sm:$0xff]   ;;  %v743_v54 = vld [vmem:[%s1010_s1 + $0x144] ss:$16 sps:$4 sm:$0xff]  }
  0x13   :  { %435 = vmatpush1.bf16.msra.mxu0 %v693_v18  ;;  %476 = vmatpush1.bf16.msra.mxu1 %v694_v19  ;;  %v745_v55 = vld [vmem:[%s1010_s1 + $0x14c] ss:$16 sps:$4 sm:$0xff]   ;;  %v747_v56 = vld [vmem:[%s1010_s1 + $0x140] ss:$16 sps:$4 sm:$0xff]   ;;  %v748_v57 = vld [vmem:[%s1010_s1 + $0x148] ss:$16 sps:$4 sm:$0xff]  }
  0x14   :  { %436 = vmatprep.subr.bf16.mxu0 %v695_v20  ;;  %477 = vmatprep.subr.bf16.mxu1 %v697_v21  ;;  %v749_v58 = vld [vmem:[%s1010_s1 + $0x124] ss:$16 sps:$4 sm:$0xff]   ;;  %v751_v59 = vld [vmem:[%s1010_s1 + $0x12c] ss:$16 sps:$4 sm:$0xff]   ;;  %v753_v60 = vld [vmem:[%s1010_s1 + $0x120] ss:$16 sps:$4 sm:$0xff]  }
  0x15   :  { %458 = vmatprep.mubr.bf16.mxu0 %v19_v49  ;;  %499 = vmatprep.mubr.bf16.mxu1 %v19_v49  ;;  %v754_v61 = vld [vmem:[%s1010_s1 + $0x128] ss:$16 sps:$4 sm:$0xff]   ;;  %v755_v62 = vld [vmem:[%s1010_s1 + $0x104] ss:$16 sps:$4 sm:$0xff]   ;;  %v757_v63 = vld [vmem:[%s1010_s1 + $0x10c] ss:$16 sps:$4 sm:$0xff]  }
  0x16   :  { %v759_v0 = vld [vmem:[%s1010_s1 + $0x100] ss:$16 sps:$4 sm:$0xff]   ;;  %v760_v1 = vld [vmem:[%s1010_s1 + $0x108] ss:$16 sps:$4 sm:$0xff]   ;;  %v88_v6 = vsub.s32 0, %v985_v5  ;;  %v96_v7 = vsub.s32 2, %v985_v5 }
  0x17   :  { %437 = vmatpush1.bf16.msra.mxu0 %v699_v22  ;;  %478 = vmatpush1.bf16.msra.mxu1 %v700_v23  ;;  %v16_v2 = vld [vmem:[%s1011_s0] sm:$0xff]  ;;  %v92_v9 = vsub.s32 1, %v985_v5  ;;  %v100_v10 = vsub.s32 3, %v985_v5 }
  0x18   :  { %438 = vmatprep.subr.bf16.mxu0 %v701_v24  ;;  %479 = vmatprep.subr.bf16.mxu1 %v703_v25  ;;  %v18_v3 = vpack.c.bf16 %v16_v2, %v16_v2  ;;  %v84_v8 = vld [vmem:[%s1012_s2] sm:$0xf] }
  0x19   :  { %v89_v11 = vrot.slane %v84_v8, %v88_v6  ;;  %v97_v12 = vrot.slane %v84_v8, %v96_v7  ;;  %v93_v15 = vrot.slane %v84_v8, %v92_v9  ;;  %v101_v16 = vrot.slane %v84_v8, %v100_v10 }
  0x1b   :  { %439 = vmatpush1.bf16.msra.mxu0 %v705_v26  ;;  %480 = vmatpush1.bf16.msra.mxu1 %v706_v27 }
  0x1c   :  { %440 = vmatprep.subr.bf16.mxu0 %v707_v28  ;;  %481 = vmatprep.subr.bf16.mxu1 %v709_v29 }
  0x1f   :  { %441 = vmatpush1.bf16.msra.mxu0 %v711_v30  ;;  %482 = vmatpush1.bf16.msra.mxu1 %v712_v31 }
  0x20   :  { %442 = vmatprep.subr.bf16.mxu0 %v713_v32  ;;  %483 = vmatprep.subr.bf16.mxu1 %v715_v33 }
  0x23   :  { %443 = vmatpush2.bf16.msra.mxu0 %v717_v34  ;;  %484 = vmatpush2.bf16.msra.mxu1 %v718_v35 }
  0x24   :  { %444 = vmatprep.subr.bf16.mxu0 %v719_v36  ;;  %485 = vmatprep.subr.bf16.mxu1 %v721_v37 }
  0x27   :  { %445 = vmatpush2.bf16.msra.mxu0 %v723_v38  ;;  %486 = vmatpush2.bf16.msra.mxu1 %v724_v39 }
  0x28   :  { %446 = vmatprep.subr.bf16.mxu0 %v725_v40  ;;  %487 = vmatprep.subr.bf16.mxu1 %v727_v41 }
  0x2b   :  { %447 = vmatpush2.bf16.msra.mxu0 %v729_v42  ;;  %488 = vmatpush2.bf16.msra.mxu1 %v730_v43 }
  0x2c   :  { %448 = vmatprep.subr.bf16.mxu0 %v731_v44  ;;  %489 = vmatprep.subr.bf16.mxu1 %v733_v45 }
  0x2f   :  { %449 = vmatpush2.bf16.msra.mxu0 %v735_v47  ;;  %490 = vmatpush2.bf16.msra.mxu1 %v736_v48 }
  0x30   :  { %450 = vmatprep.subr.bf16.mxu0 %v737_v50  ;;  %491 = vmatprep.subr.bf16.mxu1 %v739_v51 }
  0x33   :  { %451 = vmatpush2.bf16.msra.mxu0 %v741_v52  ;;  %492 = vmatpush2.bf16.msra.mxu1 %v742_v53 }
  0x34   :  { %452 = vmatprep.subr.bf16.mxu0 %v743_v54  ;;  %493 = vmatprep.subr.bf16.mxu1 %v745_v55 }
  0x37   :  { %453 = vmatpush2.bf16.msra.mxu0 %v747_v56  ;;  %494 = vmatpush2.bf16.msra.mxu1 %v748_v57  ;;  %v761_v57 = vmov 1983009808  }
  0x38   :  { %454 = vmatprep.subr.bf16.mxu0 %v749_v58  ;;  %495 = vmatprep.subr.bf16.mxu1 %v751_v59  ;;  %v576_v58 = vunpack.c.l.s4 %v761_v57 }
  0x3a   :  { %v577_v8 = vunpack.c.0.s8 %v576_v58 }
  0x3b   :  { %455 = vmatpush2.bf16.msra.mxu0 %v753_v60  ;;  %496 = vmatpush2.bf16.msra.mxu1 %v754_v61 }
  0x3c   :  { %456 = vmatprep.subr.bf16.mxu0 %v755_v62  ;;  %497 = vmatprep.subr.bf16.mxu1 %v757_v63 }
  0x3f   :  { %457 = vmatpush2.bf16.msra.mxu0 %v759_v0  ;;  %498 = vmatpush2.bf16.msra.mxu1 %v760_v1 }
  0x42   :  { %459 = vmatmul.mubr.bf16.vlgmr.msra.gmra.mxu0 %v18_v3  ;;  %500 = vmatmul.mubr.bf16.vlgmr.msra.gmra.mxu1 %v18_v3 }
 0x102   :  { %v460_v13 = vpop.f32.mrf.mxu0  ;;  %v501_v14 = vpop.f32.mrf.mxu1 }
 0x103   :  { %v461_v17 = vadd.f32 %v460_v13, %v89_v11  ;;  %v502_v18 = vadd.f32 %v501_v14, %v97_v12 }
 0x104   :  { %v462_v19 = vpop.f32.mrf.mxu0  ;;  %v503_v20 = vpop.f32.mrf.mxu1 }
 0x105   :  { %508 = vst [vmem:[%s1013_s3] sm:$0xff] %v461_v17  ;;  %v512_v21 = vrot.slane %v461_v17, 4  ;;  %v536_v22 = vmul.f32 %v461_v17, %v461_v17  ;;  %510 = vst [vmem:[%s1013_s3 + $0x10] sm:$0xff] %v502_v18  ;;  %v524_v23 = vrot.slane %v502_v18, 4  ;;  %v538_v24 = vmul.f32 %v502_v18, %v502_v18 }
 0x106   :  { %v463_v25 = vadd.f32 %v462_v19, %v93_v15  ;;  %v504_v26 = vadd.f32 %v503_v20, %v101_v16  ;;  %v464_v27 = vpop.f32.mrf.mxu0  ;;  %v505_v28 = vpop.f32.mrf.mxu1  ;;  %v580_v19 = vsub.s32 %v577_v8, %v985_v5 }
 0x107   :  { %v513_v29 = vadd.f32 %v512_v21, %v461_v17  ;;  %v540_v30 = vrot.slane %v536_v22, 4  ;;  %v525_v31 = vadd.f32 %v524_v23, %v502_v18  ;;  %v552_v32 = vrot.slane %v538_v24, 4 }
 0x108   :  { %509 = vst [vmem:[%s1013_s3 + $0x8] sm:$0xff] %v463_v25  ;;  %v518_v33 = vrot.slane %v463_v25, 4  ;;  %v537_v34 = vmul.f32 %v463_v25, %v463_v25  ;;  %511 = vst [vmem:[%s1013_s3 + $0x18] sm:$0xff] %v504_v26  ;;  %v530_v35 = vrot.slane %v504_v26, 4  ;;  %v539_v36 = vmul.f32 %v504_v26, %v504_v26  ;;  %v465_v37 = vpop.f32.mrf.mxu0  ;;  %v506_v38 = vpop.f32.mrf.mxu1 }
 0x109   :  { %v514_v39 = vrot.slane %v513_v29, 2  ;;  %v541_v40 = vadd.f32 %v540_v30, %v536_v22  ;;  %v526_v41 = vrot.slane %v525_v31, 2  ;;  %v553_v42 = vadd.f32 %v552_v32, %v538_v24 }
 0x10a   :  { %v519_v43 = vadd.f32 %v518_v33, %v463_v25  ;;  %v546_v44 = vrot.slane %v537_v34, 4  ;;  %v531_v45 = vadd.f32 %v530_v35, %v504_v26  ;;  %v558_v46 = vrot.slane %v539_v36, 4 }
 0x10b   :  { %v515_v47 = vadd.f32 %v514_v39, %v513_v29  ;;  %v542_v48 = vrot.slane %v541_v40, 2  ;;  %v527_v49 = vadd.f32 %v526_v41, %v525_v31  ;;  %v554_v50 = vrot.slane %v553_v42, 2 }
 0x10c   :  { %v520_v51 = vrot.slane %v519_v43, 2  ;;  %v547_v52 = vadd.f32 %v546_v44, %v537_v34  ;;  %v532_v53 = vrot.slane %v531_v45, 2  ;;  %v559_v54 = vadd.f32 %v558_v46, %v539_v36 }
 0x10d   :  { %v543_v55 = vadd.f32 %v542_v48, %v541_v40  ;;  %v555_v56 = vadd.f32 %v554_v50, %v553_v42  ;;  %v516_v63 = vrot.slane %v515_v47, 1  ;;  %v528_v1 = vrot.slane %v527_v49, 1 }
 0x10e   :  { %v521_v59 = vadd.f32 %v520_v51, %v519_v43  ;;  %v548_v60 = vrot.slane %v547_v52, 2  ;;  %v533_v61 = vadd.f32 %v532_v53, %v531_v45  ;;  %v560_v62 = vrot.slane %v559_v54, 2 }
 0x10f   :  { %v544_v0 = vrot.slane %v543_v55, 1  ;;  %v556_v2 = vrot.slane %v555_v56, 1  ;;  %v517_v13 = vadd.f32 %v516_v63, %v515_v47  ;;  %v529_v14 = vadd.f32 %v528_v1, %v527_v49 }
 0x110   :  { %v522_v3 = vrot.slane %v521_v59, 1  ;;  %v549_v4 = vadd.f32 %v548_v60, %v547_v52  ;;  %v534_v6 = vrot.slane %v533_v61, 1  ;;  %v561_v7 = vadd.f32 %v560_v62, %v559_v54 }
 0x111   :  { %v545_v9 = vadd.f32 %v544_v0, %v543_v55  ;;  %v557_v10 = vadd.f32 %v556_v2, %v555_v56 }
 0x112   :  { %v550_v11 = vrot.slane %v549_v4, 1  ;;  %v562_v12 = vrot.slane %v561_v7, 1  ;;  %v523_v15 = vadd.f32 %v522_v3, %v521_v59  ;;  %v535_v17 = vadd.f32 %v534_v6, %v533_v61 }
 0x113   :  { %v565_v20 = vsel %vm564_vm0, %v517_v13, %v545_v9  ;;  %v567_v21 = vsel %vm564_vm0, %v529_v14, %v557_v10 }
 0x114   :  { %v551_v16 = vadd.f32 %v550_v11, %v549_v4  ;;  %v563_v18 = vadd.f32 %v562_v12, %v561_v7 }
 0x116   :  { %v566_v22 = vsel %vm564_vm0, %v523_v15, %v551_v16  ;;  %v568_v23 = vsel %vm564_vm0, %v535_v17, %v563_v18 }
 0x117   :  { %v573_v24 = vcombine.low %v565_v20, %v566_v22  ;;  %v574_v25 = vcombine.low %v567_v21, %v568_v23 }
 0x119   :  { %v581_v26 = vrot.slane %v573_v24, %v580_v19  ;;  %v588_v27 = vrot.slane %v574_v25, %v580_v19 }
 0x11b   :  { %v589_v28 = vcombine.low %v581_v26, %v588_v27 }
 0x11d   :  { %591 = vst [vmem:[%s1014_s4] sm:$0xff] %v589_v28 }

// kernel: model_forward.16
= control target key start
LH: loop header
LB: loop body
LE: loop exit
PB: predicated region body
PF: predicated region fallthrough
CT: control target
= control target key end

     0   :  { %v29_v0 = vlaneseq  ;;  %s234_s1 = inlined_call_operand.vmem [shape: f32[1,512], index: 1, kind: input, shape index: {}]   ;;  %s235_s2 = inlined_call_operand.vmem [shape: f32[1,512], index: 2, kind: input, shape index: {}]   ;;  %s236_s4 = inlined_call_operand.vmem [shape: f32[1,512], index: 4, kind: input, shape index: {}]   ;;  %s237_s0 = inlined_call_operand.vmem [shape: f32[8,512], index: 0, kind: input, shape index: {}]   ;;  %s238_s3 = inlined_call_operand.vmem [shape: f32[8,512], index: 3, kind: input, shape index: {}]   ;;  %s239_s5 = inlined_call_operand.vmem [shape: f32[1,512], index: 5, kind: input, shape index: {}]   ;;  %s240_s6 = inlined_call_operand.vmem [shape: f32[8,512], index: 6, kind: output, shape index: {}]  }
   0x1   :  { %v27_v2 = vld [vmem:[%s234_s1] sm:$0xf]  ;;  %v24_v14 = vld [vmem:[%s237_s0 + $0x8] sm:$0xff]  ;;  %v25_v20 = vld [vmem:[%s237_s0 + $0x10] sm:$0xff] }
   0x2   :  { %v30_v1 = vshrl.u32 %v29_v0, 7  ;;  %v53_v3 = vld [vmem:[%s235_s2] sm:$0xf]  ;;  %v80_v15 = vld [vmem:[%s238_s3 + $0x8] sm:$0xff]  ;;  %v81_v25 = vld [vmem:[%s238_s3 + $0x10] sm:$0xff] }
   0x3   :  { %v83_v4 = vld [vmem:[%s236_s4] sm:$0xf]  ;;  %v26_v30 = vld [vmem:[%s237_s0 + $0x18] sm:$0xff] }
   0x4   :  { %v31_v5 = vsub.s32 0, %v30_v1  ;;  %v35_v6 = vsub.s32 1, %v30_v1  ;;  %v39_v7 = vsub.s32 2, %v30_v1  ;;  %v23_v8 = vld [vmem:[%s237_s0] sm:$0xff]  ;;  %v43_v16 = vsub.s32 3, %v30_v1  ;;  %v82_v35 = vld [vmem:[%s238_s3 + $0x18] sm:$0xff] }
   0x5   :  { %v79_v9 = vld [vmem:[%s238_s3] sm:$0xff] }
   0x6   :  { %v32_v10 = vrot.slane %v27_v2, %v31_v5  ;;  %v58_v11 = vrot.slane %v53_v3, %v31_v5  ;;  %v88_v12 = vrot.slane %v83_v4, %v31_v5  ;;  %v113_v13 = vld [vmem:[%s239_s5] sm:$0xf]  ;;  %v36_v17 = vrot.slane %v27_v2, %v35_v6 }
   0x7   :  { %v62_v18 = vrot.slane %v53_v3, %v35_v6  ;;  %v92_v19 = vrot.slane %v83_v4, %v35_v6  ;;  %v40_v23 = vrot.slane %v27_v2, %v39_v7  ;;  %v66_v24 = vrot.slane %v53_v3, %v39_v7 }
   0x8   :  { %v49_v21 = vmul.f32 %v32_v10, %v23_v8  ;;  %v105_v22 = vmul.f32 %v88_v12, %v79_v9  ;;  %v118_v26 = vrot.slane %v113_v13, %v31_v5  ;;  %v50_v27 = vmul.f32 %v36_v17, %v24_v14 }
   0x9   :  { %v106_v28 = vmul.f32 %v92_v19, %v80_v15  ;;  %v96_v29 = vrot.slane %v83_v4, %v39_v7  ;;  %v51_v32 = vmul.f32 %v40_v23, %v25_v20  ;;  %v44_v33 = vrot.slane %v27_v2, %v43_v16 }
   0xa   :  { %v75_v31 = vadd.f32 %v58_v11, %v49_v21  ;;  %v70_v34 = vrot.slane %v53_v3, %v43_v16  ;;  %v76_v36 = vadd.f32 %v62_v18, %v50_v27  ;;  %v122_v37 = vrot.slane %v113_v13, %v35_v6 }
   0xb   :  { %v107_v38 = vmul.f32 %v96_v29, %v81_v25  ;;  %v100_v39 = vrot.slane %v83_v4, %v43_v16  ;;  %v77_v41 = vadd.f32 %v66_v24, %v51_v32  ;;  %v126_v42 = vrot.slane %v113_v13, %v39_v7 }
   0xc   :  { %v109_v40 = vadd.f32 %v105_v22, %v75_v31  ;;  %v52_v43 = vmul.f32 %v44_v33, %v26_v30  ;;  %v110_v44 = vadd.f32 %v106_v28, %v76_v36  ;;  %v130_v49 = vrot.slane %v113_v13, %v43_v16 }
   0xd   :  { %v108_v45 = vmul.f32 %v100_v39, %v82_v35  ;;  %v111_v47 = vadd.f32 %v107_v38, %v77_v41 }
   0xe   :  { %v135_v46 = vadd.f32 %v118_v26, %v109_v40  ;;  %v78_v48 = vadd.f32 %v70_v34, %v52_v43  ;;  %v136_v50 = vadd.f32 %v122_v37, %v110_v44 }
   0xf   :  { %v137_v52 = vadd.f32 %v126_v42, %v111_v47 }
  0x10   :  { %v139_v51 = vmax.f32 %v135_v46, 0.0  ;;  %v112_v53 = vadd.f32 %v108_v45, %v78_v48  ;;  %v140_v54 = vmax.f32 %v136_v50, 0.0 }
  0x11   :  { %v141_v55 = vmax.f32 %v137_v52, 0.0 }
  0x12   :  { %143 = vst [vmem:[%s240_s6] sm:$0xff] %v139_v51  ;;  %v138_v56 = vadd.f32 %v130_v49, %v112_v53  ;;  %144 = vst [vmem:[%s240_s6 + $0x8] sm:$0xff] %v140_v54 }
  0x13   :  { %145 = vst [vmem:[%s240_s6 + $0x10] sm:$0xff] %v141_v55 }
  0x14   :  { %v142_v57 = vmax.f32 %v138_v56, 0.0 }
  0x16   :  { %146 = vst [vmem:[%s240_s6 + $0x18] sm:$0xff] %v142_v57 }

// kernel: model_forward.14
= control target key start
LH: loop header
LB: loop body
LE: loop exit
PB: predicated region body
PF: predicated region fallthrough
CT: control target
= control target key end

     0   :  { %s4963_s24 = smov 0   ;;  %s6313_s0 = inlined_call_operand.vmem [shape: f32[2,8,512], index: 0, kind: input, shape index: {}]   ;;  %s6314_s1 = inlined_call_operand.vmem [shape: f32[1,512], index: 1, kind: input, shape index: {}]   ;;  %s6315_s2 = inlined_call_operand.vmem [shape: f32[1,512], index: 2, kind: input, shape index: {}]   ;;  %s6316_s3 = inlined_call_operand.vmem [shape: bf16[3,4,8], index: 3, kind: input, shape index: {}]   ;;  %s6317_s4 = inlined_call_operand.vmem [shape: bf16[3,512,512], index: 4, kind: input, shape index: {}]   ;;  %s6318_s5 = inlined_call_operand.vmem [shape: f32[1,512], index: 5, kind: input, shape index: {}]   ;;  %s6319_s6 = inlined_call_operand.vmem [shape: f32[2,4,512], index: 6, kind: output, shape index: {0}]   ;;  %s6320_s7 = inlined_call_operand.vmem [shape: f32[2,2,512], index: 7, kind: output, shape index: {1}]  }
   0x1 LB: > { %s3657_s25 = sadd.s32 4294967295, %s4919_s24   ;;  %p3661_p0 = scmp.ge.s32.totalorder %s4919_s24, 1  ;;  %s4919_s24 = sphi %s4963_s24, %s18_s24  }
   0x2   : > { %p240_p1 = scmp.lt.s32.totalorder %s4919_s24, 3 }
   0x4   : > { %p241_p2 = pnand %p3661_p0, %p240_p1 }
   0x5   : > { %p277_p3 = scmp.lt.s32.totalorder (!%p241_p2), %s3657_s25, 1 }
   0x6   : > { %244 = sbr.rel (%p241_p2) target bundleno = 925 (0x39d), region = 44 }
   0xb   : > { %v299_v0 = vlaneseq  ;;  %s6322_s25 = smov (!%p277_p3, %s3657_s25), 1  ;;  %v297_v1 = vld [vmem:[%s6314_s1] sm:$0xf]  ;;  %v4921_v3 = vmov 0   ;;  %vm362_vm0 = vcmask 1043456   ;;  %vm358_vm1 = vcmask 64512  }
   0xc   : > { %407 = vmatprep.mubr.bf16.mxu0 %v4921_v3  ;;  %448 = vmatprep.mubr.bf16.mxu1 %v4921_v3  ;;  %v323_v4 = vld [vmem:[%s6315_s2] sm:$0xf]  ;;  %s4324_s30 = sshll.u32 %s6322_s25, 5  ;;  %v4339_v40 = vld [vmem:[%s6317_s4 + $0x4e4] ss:$16 sps:$4 sm:$0xff]   ;;  %vm3541_vm2 = vcmask 1040384  }
   0xd   : > { %v4976_v2 = vshrl.u32 %v299_v0, 7  ;;  %s281_s10 = scalar_lea.vmem %s6313_s0, %s4324_s30  ;;  %v357_v39 = vld [vmem:[%s6316_s3] sm:$0x3]  ;;  %v4342_v41 = vld [vmem:[%s6317_s4 + $0x6e4] ss:$16 sps:$4 sm:$0xff]   ;;  %s4326_s14 = sshll.u32 %s6322_s25, 3 }
   0xe   : > { %v294_v9 = vld [vmem:[%s281_s10 + $0x8] sm:$0xff]  ;;  %v296_v12 = vld [vmem:[%s281_s10 + $0x18] sm:$0xff]  ;;  %v293_v15 = vld [vmem:[%s281_s10] sm:$0xff]  ;;  %s291_s17 = scalar_lea.vmem %s6320_s7, %s4326_s14 }
   0xf   : > { %v4985_v5 = vsub.s32 1, %v4976_v2  ;;  %v4988_v6 = vsub.s32 3, %v4976_v2  ;;  %v4991_v7 = vsub.s32 0, %v4976_v2  ;;  %v4994_v8 = vsub.s32 2, %v4976_v2  ;;  %v295_v18 = vld [vmem:[%s281_s10 + $0x10] sm:$0xff]  ;;  %s4325_s10 = sshll.u32 %s6322_s25, 4 }
  0x10   : > { %v3672_v42 = vld [vmem:[%s6316_s3 + $0x2] sm:$0x3]  ;;  %v4345_v45 = vld [vmem:[%s6317_s4 + $0x4c4] ss:$16 sps:$4 sm:$0xff]   ;;  %s6284_s13 = scalar_lea.vmem %s6319_s6, %s4325_s10 }
  0x11   : > { %v306_v10 = vrot.slane %v297_v1, %v4985_v5  ;;  %v332_v11 = vrot.slane %v323_v4, %v4985_v5  ;;  %v314_v13 = vrot.slane %v297_v1, %v4988_v6  ;;  %v340_v14 = vrot.slane %v323_v4, %v4988_v6  ;;  %v4337_v43 = vld [vmem:[%s6317_s4 + $0x4e0] ss:$16 sps:$4 sm:$0xff]   ;;  %v4348_v46 = vld [vmem:[%s6317_s4 + $0x6c4] ss:$16 sps:$4 sm:$0xff]  }
  0x12   : > { %v302_v16 = vrot.slane %v297_v1, %v4991_v7  ;;  %v328_v17 = vrot.slane %v323_v4, %v4991_v7  ;;  %v310_v19 = vrot.slane %v297_v1, %v4994_v8  ;;  %v336_v20 = vrot.slane %v323_v4, %v4994_v8  ;;  %v4340_v44 = vld [vmem:[%s6317_s4 + $0x6e0] ss:$16 sps:$4 sm:$0xff]   ;;  %v4351_v49 = vld [vmem:[%s6317_s4 + $0x4a4] ss:$16 sps:$4 sm:$0xff]  }
  0x13   : > { %v320_v21 = vmul.f32 %v306_v10, %v294_v9  ;;  %v322_v22 = vmul.f32 %v314_v13, %v296_v12  ;;  %v4343_v47 = vld [vmem:[%s6317_s4 + $0x4c0] ss:$16 sps:$4 sm:$0xff]   ;;  %v4354_v50 = vld [vmem:[%s6317_s4 + $0x6a4] ss:$16 sps:$4 sm:$0xff]  }
  0x14   : > { %v319_v23 = vmul.f32 %v302_v16, %v293_v15  ;;  %v321_v24 = vmul.f32 %v310_v19, %v295_v18  ;;  %v4346_v48 = vld [vmem:[%s6317_s4 + $0x6c0] ss:$16 sps:$4 sm:$0xff]   ;;  %v4357_v53 = vld [vmem:[%s6317_s4 + $0x484] ss:$16 sps:$4 sm:$0xff]  }
  0x15   : > { %v346_v25 = vadd.f32 %v332_v11, %v320_v21  ;;  %v348_v26 = vadd.f32 %v340_v14, %v322_v22  ;;  %v4349_v51 = vld [vmem:[%s6317_s4 + $0x4a0] ss:$16 sps:$4 sm:$0xff]   ;;  %v4360_v54 = vld [vmem:[%s6317_s4 + $0x684] ss:$16 sps:$4 sm:$0xff]  }
  0x16   : > { %v345_v27 = vadd.f32 %v328_v17, %v319_v23  ;;  %v347_v28 = vadd.f32 %v336_v20, %v321_v24  ;;  %v4352_v52 = vld [vmem:[%s6317_s4 + $0x6a0] ss:$16 sps:$4 sm:$0xff]   ;;  %v4363_v57 = vld [vmem:[%s6317_s4 + $0x464] ss:$16 sps:$4 sm:$0xff]  }
  0x17   : > { %v350_v29 = vmax.f32 %v346_v25, 0.0  ;;  %v352_v30 = vmax.f32 %v348_v26, 0.0  ;;  %v4355_v55 = vld [vmem:[%s6317_s4 + $0x480] ss:$16 sps:$4 sm:$0xff]   ;;  %v4366_v58 = vld [vmem:[%s6317_s4 + $0x664] ss:$16 sps:$4 sm:$0xff]  }
  0x18   : > { %v349_v31 = vmax.f32 %v345_v27, 0.0  ;;  %v351_v32 = vmax.f32 %v347_v28, 0.0  ;;  %v4358_v56 = vld [vmem:[%s6317_s4 + $0x680] ss:$16 sps:$4 sm:$0xff]   ;;  %v4369_v61 = vld [vmem:[%s6317_s4 + $0x444] ss:$16 sps:$4 sm:$0xff]  }
  0x19   : > { %v5007_v33 = vpack.c.bf16 %v350_v29, %v350_v29  ;;  %v5009_v34 = vpack.c.bf16 %v352_v30, %v352_v30  ;;  %v4361_v59 = vld [vmem:[%s6317_s4 + $0x460] ss:$16 sps:$4 sm:$0xff]   ;;  %v4372_v62 = vld [vmem:[%s6317_s4 + $0x644] ss:$16 sps:$4 sm:$0xff]  }
  0x1a   : > { %v353_v35 = vpack.c.bf16 %v349_v31, %v349_v31  ;;  %v355_v36 = vpack.c.bf16 %v351_v32, %v351_v32  ;;  %v4364_v60 = vld [vmem:[%s6317_s4 + $0x660] ss:$16 sps:$4 sm:$0xff]   ;;  %v4375_v1 = vld [vmem:[%s6317_s4 + $0x424] ss:$16 sps:$4 sm:$0xff]  }
  0x1b   : > { %3668 = vmatprep.subr.msk.bf16.mxu0 %vm362_vm0, %v5007_v33  ;;  %3670 = vmatprep.subr.msk.bf16.mxu1 %vm362_vm0, %v5009_v34  ;;  %v4367_v63 = vld [vmem:[%s6317_s4 + $0x440] ss:$16 sps:$4 sm:$0xff]   ;;  %v4378_v4 = vld [vmem:[%s6317_s4 + $0x624] ss:$16 sps:$4 sm:$0xff]  }
  0x1c   : > { %v5016_v37 = vsel %vm362_vm0, %v353_v35, 0  ;;  %v5019_v38 = vsel %vm362_vm0, %v355_v36, 0  ;;  %v4370_v0 = vld [vmem:[%s6317_s4 + $0x640] ss:$16 sps:$4 sm:$0xff]   ;;  %v4381_v11 = vld [vmem:[%s6317_s4 + $0x404] ss:$16 sps:$4 sm:$0xff]  }
  0x1d   : > { %390 = vmatpush1.bf16.msra.mxu0 %v5016_v37  ;;  %431 = vmatpush1.bf16.msra.mxu1 %v5019_v38  ;;  %v4373_v9 = vld [vmem:[%s6317_s4 + $0x420] ss:$16 sps:$4 sm:$0xff]   ;;  %v4384_v12 = vld [vmem:[%s6317_s4 + $0x604] ss:$16 sps:$4 sm:$0xff]  }
  0x1e   : > { %3673 = vmatprep.subr.msk.bf16.mxu0 %vm362_vm0, %v5007_v33  ;;  %3675 = vmatprep.subr.msk.bf16.mxu1 %vm362_vm0, %v5009_v34  ;;  %v4376_v10 = vld [vmem:[%s6317_s4 + $0x620] ss:$16 sps:$4 sm:$0xff]   ;;  %v4387_v15 = vld [vmem:[%s6317_s4 + $0x5e4] ss:$16 sps:$4 sm:$0xff]  }
  0x1f   : > { %v4379_v13 = vld [vmem:[%s6317_s4 + $0x400] ss:$16 sps:$4 sm:$0xff]   ;;  %v4390_v16 = vld [vmem:[%s6317_s4 + $0x7e4] ss:$16 sps:$4 sm:$0xff]  }
  0x20   : > { %3669 = vmatmul.mubr.msk.bf16.vlgmr.msra.gmra.mxu0 %vm358_vm1, %v357_v39  ;;  %3671 = vmatmul.mubr.msk.bf16.vlgmr.msra.gmra.mxu1 %vm358_vm1, %v357_v39  ;;  %v4382_v14 = vld [vmem:[%s6317_s4 + $0x600] ss:$16 sps:$4 sm:$0xff]   ;;  %v4393_v19 = vld [vmem:[%s6317_s4 + $0x5c4] ss:$16 sps:$4 sm:$0xff]  }
  0x21   : > { %609 = vmatpush1.bf16.msra.mxu0 %v5016_v37  ;;  %650 = vmatpush1.bf16.msra.mxu1 %v5019_v38  ;;  %v4385_v17 = vld [vmem:[%s6317_s4 + $0x5e0] ss:$16 sps:$4 sm:$0xff]   ;;  %v4396_v20 = vld [vmem:[%s6317_s4 + $0x7c4] ss:$16 sps:$4 sm:$0xff]  }
  0x22   : > { %626 = vmatprep.mubr.bf16.mxu0 %v4921_v3  ;;  %667 = vmatprep.mubr.bf16.mxu1 %v4921_v3  ;;  %v4388_v18 = vld [vmem:[%s6317_s4 + $0x7e0] ss:$16 sps:$4 sm:$0xff]   ;;  %v4399_v23 = vld [vmem:[%s6317_s4 + $0x5a4] ss:$16 sps:$4 sm:$0xff]  }
  0x23   : > { %1449 = vmatprep.subr.bf16.mxu0 %v4339_v40  ;;  %1490 = vmatprep.subr.bf16.mxu1 %v4342_v41  ;;  %v4391_v21 = vld [vmem:[%s6317_s4 + $0x5c0] ss:$16 sps:$4 sm:$0xff]   ;;  %v4402_v24 = vld [vmem:[%s6317_s4 + $0x7a4] ss:$16 sps:$4 sm:$0xff]  }
  0x24   : > { %v4394_v22 = vld [vmem:[%s6317_s4 + $0x7c0] ss:$16 sps:$4 sm:$0xff]   ;;  %v4405_v27 = vld [vmem:[%s6317_s4 + $0x584] ss:$16 sps:$4 sm:$0xff]  }
  0x25   : > { %v4397_v25 = vld [vmem:[%s6317_s4 + $0x5a0] ss:$16 sps:$4 sm:$0xff]   ;;  %v4408_v28 = vld [vmem:[%s6317_s4 + $0x784] ss:$16 sps:$4 sm:$0xff]  }
  0x26   : > { %v4400_v26 = vld [vmem:[%s6317_s4 + $0x7a0] ss:$16 sps:$4 sm:$0xff]   ;;  %v4411_v31 = vld [vmem:[%s6317_s4 + $0x564] ss:$16 sps:$4 sm:$0xff]  }
  0x27   : > { %v4403_v29 = vld [vmem:[%s6317_s4 + $0x580] ss:$16 sps:$4 sm:$0xff]   ;;  %v4414_v32 = vld [vmem:[%s6317_s4 + $0x764] ss:$16 sps:$4 sm:$0xff]  }
  0x28   : > { %3674 = vmatmul.mubr.msk.bf16.vlgmr.msra.gmra.mxu0 %vm358_vm1, %v3672_v42  ;;  %3676 = vmatmul.mubr.msk.bf16.vlgmr.msra.gmra.mxu1 %vm358_vm1, %v3672_v42  ;;  %v4406_v30 = vld [vmem:[%s6317_s4 + $0x780] ss:$16 sps:$4 sm:$0xff]   ;;  %v4417_v39 = vld [vmem:[%s6317_s4 + $0x544] ss:$16 sps:$4 sm:$0xff]  }
  0x29   : > { %1450 = vmatpush1.bf16.msra.mxu0 %v4337_v43  ;;  %1491 = vmatpush1.bf16.msra.mxu1 %v4340_v44  ;;  %v4409_v35 = vld [vmem:[%s6317_s4 + $0x560] ss:$16 sps:$4 sm:$0xff]   ;;  %v4420_v40 = vld [vmem:[%s6317_s4 + $0x744] ss:$16 sps:$4 sm:$0xff]  }
  0x2a   : > { %1451 = vmatprep.subr.bf16.mxu0 %v4345_v45  ;;  %1492 = vmatprep.subr.bf16.mxu1 %v4348_v46  ;;  %v4412_v36 = vld [vmem:[%s6317_s4 + $0x760] ss:$16 sps:$4 sm:$0xff]   ;;  %v4423_v43 = vld [vmem:[%s6317_s4 + $0x524] ss:$16 sps:$4 sm:$0xff]  }
  0x2b   : > { %v4415_v41 = vld [vmem:[%s6317_s4 + $0x540] ss:$16 sps:$4 sm:$0xff]   ;;  %v4426_v44 = vld [vmem:[%s6317_s4 + $0x724] ss:$16 sps:$4 sm:$0xff]  }
  0x2c   : > { %v4418_v42 = vld [vmem:[%s6317_s4 + $0x740] ss:$16 sps:$4 sm:$0xff]  }
  0x2d   : > { %1452 = vmatpush1.bf16.msra.mxu0 %v4343_v47  ;;  %1493 = vmatpush1.bf16.msra.mxu1 %v4346_v48  ;;  %v4421_v45 = vld [vmem:[%s6317_s4 + $0x520] ss:$16 sps:$4 sm:$0xff]   ;;  %v4429_v47 = vld [vmem:[%s6317_s4 + $0x504] ss:$16 sps:$4 sm:$0xff]  }
  0x2e   : > { %1453 = vmatprep.subr.bf16.mxu0 %v4351_v49  ;;  %1494 = vmatprep.subr.bf16.mxu1 %v4354_v50  ;;  %v4424_v46 = vld [vmem:[%s6317_s4 + $0x720] ss:$16 sps:$4 sm:$0xff]   ;;  %v4432_v48 = vld [vmem:[%s6317_s4 + $0x704] ss:$16 sps:$4 sm:$0xff]  }
  0x2f   : > { %v4427_v49 = vld [vmem:[%s6317_s4 + $0x500] ss:$16 sps:$4 sm:$0xff]  }
  0x30   : > { %v4430_v50 = vld [vmem:[%s6317_s4 + $0x700] ss:$16 sps:$4 sm:$0xff]  }
  0x31   : > { %1454 = vmatpush1.bf16.msra.mxu0 %v4349_v51  ;;  %1495 = vmatpush1.bf16.msra.mxu1 %v4352_v52  ;;  %v4435_v51 = vld [vmem:[%s6317_s4 + $0x4ec] ss:$16 sps:$4 sm:$0xff]  }
  0x32   : > { %1455 = vmatprep.subr.bf16.mxu0 %v4357_v53  ;;  %1496 = vmatprep.subr.bf16.mxu1 %v4360_v54  ;;  %v4438_v52 = vld [vmem:[%s6317_s4 + $0x6ec] ss:$16 sps:$4 sm:$0xff]  }
  0x35   : > { %1456 = vmatpush1.bf16.msra.mxu0 %v4355_v55  ;;  %1497 = vmatpush1.bf16.msra.mxu1 %v4358_v56 }
  0x36   : > { %1457 = vmatprep.subr.bf16.mxu0 %v4363_v57  ;;  %1498 = vmatprep.subr.bf16.mxu1 %v4366_v58 }
  0x39   : > { %1458 = vmatpush1.bf16.msra.mxu0 %v4361_v59  ;;  %1499 = vmatpush1.bf16.msra.mxu1 %v4364_v60 }
  0x3a   : > { %1459 = vmatprep.subr.bf16.mxu0 %v4369_v61  ;;  %1500 = vmatprep.subr.bf16.mxu1 %v4372_v62 }
  0x3d   : > { %1460 = vmatpush1.bf16.msra.mxu0 %v4367_v63  ;;  %1501 = vmatpush1.bf16.msra.mxu1 %v4370_v0 }
  0x3e   : > { %1461 = vmatprep.subr.bf16.mxu0 %v4375_v1  ;;  %1502 = vmatprep.subr.bf16.mxu1 %v4378_v4 }
  0x41   : > { %1462 = vmatpush1.bf16.msra.mxu0 %v4373_v9  ;;  %1503 = vmatpush1.bf16.msra.mxu1 %v4376_v10  ;;  %v4433_v9 = vld [vmem:[%s6317_s4 + $0x4e8] ss:$16 sps:$4 sm:$0xff]  }
  0x42   : > { %1463 = vmatprep.subr.bf16.mxu0 %v4381_v11  ;;  %1504 = vmatprep.subr.bf16.mxu1 %v4384_v12  ;;  %v4436_v10 = vld [vmem:[%s6317_s4 + $0x6e8] ss:$16 sps:$4 sm:$0xff]  }
  0x45   : > { %1464 = vmatpush1.bf16.msra.mxu0 %v4379_v13  ;;  %1505 = vmatpush1.bf16.msra.mxu1 %v4382_v14 }
  0x46   : > { %1465 = vmatprep.subr.bf16.mxu0 %v4387_v15  ;;  %1506 = vmatprep.subr.bf16.mxu1 %v4390_v16  ;;  %v4441_v15 = vld [vmem:[%s6317_s4 + $0x4cc] ss:$16 sps:$4 sm:$0xff]  }
  0x47   : > { %v4444_v16 = vld [vmem:[%s6317_s4 + $0x6cc] ss:$16 sps:$4 sm:$0xff]  }
  0x49   : > { %1466 = vmatpush2.bf16.msra.mxu0 %v4385_v17  ;;  %1507 = vmatpush2.bf16.msra.mxu1 %v4388_v18 }
  0x4a   : > { %1467 = vmatprep.subr.bf16.mxu0 %v4393_v19  ;;  %1508 = vmatprep.subr.bf16.mxu1 %v4396_v20  ;;  %v4439_v19 = vld [vmem:[%s6317_s4 + $0x4c8] ss:$16 sps:$4 sm:$0xff]  }
  0x4b   : > { %v4442_v20 = vld [vmem:[%s6317_s4 + $0x6c8] ss:$16 sps:$4 sm:$0xff]  }
  0x4d   : > { %1468 = vmatpush2.bf16.msra.mxu0 %v4391_v21  ;;  %1509 = vmatpush2.bf16.msra.mxu1 %v4394_v22  ;;  %v4447_v21 = vld [vmem:[%s6317_s4 + $0x4ac] ss:$16 sps:$4 sm:$0xff]  }
  0x4e   : > { %1469 = vmatprep.subr.bf16.mxu0 %v4399_v23  ;;  %1510 = vmatprep.subr.bf16.mxu1 %v4402_v24  ;;  %v4450_v22 = vld [vmem:[%s6317_s4 + $0x6ac] ss:$16 sps:$4 sm:$0xff]   ;;  %v4445_v23 = vld [vmem:[%s6317_s4 + $0x4a8] ss:$16 sps:$4 sm:$0xff]  }
  0x4f   : > { %v4448_v24 = vld [vmem:[%s6317_s4 + $0x6a8] ss:$16 sps:$4 sm:$0xff]  }
  0x51   : > { %1470 = vmatpush2.bf16.msra.mxu0 %v4397_v25  ;;  %1511 = vmatpush2.bf16.msra.mxu1 %v4400_v26  ;;  %v4453_v25 = vld [vmem:[%s6317_s4 + $0x48c] ss:$16 sps:$4 sm:$0xff]  }
  0x52   : > { %1471 = vmatprep.subr.bf16.mxu0 %v4405_v27  ;;  %1512 = vmatprep.subr.bf16.mxu1 %v4408_v28  ;;  %v4456_v26 = vld [vmem:[%s6317_s4 + $0x68c] ss:$16 sps:$4 sm:$0xff]   ;;  %v4451_v27 = vld [vmem:[%s6317_s4 + $0x488] ss:$16 sps:$4 sm:$0xff]  }
  0x53   : > { %v4454_v28 = vld [vmem:[%s6317_s4 + $0x688] ss:$16 sps:$4 sm:$0xff]  }
  0x55   : > { %1472 = vmatpush2.bf16.msra.mxu0 %v4403_v29  ;;  %1513 = vmatpush2.bf16.msra.mxu1 %v4406_v30  ;;  %v4459_v29 = vld [vmem:[%s6317_s4 + $0x46c] ss:$16 sps:$4 sm:$0xff]  }
  0x56   : > { %1473 = vmatprep.subr.bf16.mxu0 %v4411_v31  ;;  %1514 = vmatprep.subr.bf16.mxu1 %v4414_v32  ;;  %v4462_v30 = vld [vmem:[%s6317_s4 + $0x66c] ss:$16 sps:$4 sm:$0xff]   ;;  %v4457_v31 = vld [vmem:[%s6317_s4 + $0x468] ss:$16 sps:$4 sm:$0xff]  }
  0x57   : > { %v4460_v32 = vld [vmem:[%s6317_s4 + $0x668] ss:$16 sps:$4 sm:$0xff]  }
  0x59   : > { %1474 = vmatpush2.bf16.msra.mxu0 %v4409_v35  ;;  %1515 = vmatpush2.bf16.msra.mxu1 %v4412_v36  ;;  %v4465_v35 = vld [vmem:[%s6317_s4 + $0x44c] ss:$16 sps:$4 sm:$0xff]  }
  0x5a   : > { %1475 = vmatprep.subr.bf16.mxu0 %v4417_v39  ;;  %1516 = vmatprep.subr.bf16.mxu1 %v4420_v40  ;;  %v4468_v36 = vld [vmem:[%s6317_s4 + $0x64c] ss:$16 sps:$4 sm:$0xff]   ;;  %v4463_v39 = vld [vmem:[%s6317_s4 + $0x448] ss:$16 sps:$4 sm:$0xff]  }
  0x5b   : > { %v4466_v40 = vld [vmem:[%s6317_s4 + $0x648] ss:$16 sps:$4 sm:$0xff]  }
  0x5d   : > { %1476 = vmatpush2.bf16.msra.mxu0 %v4415_v41  ;;  %1517 = vmatpush2.bf16.msra.mxu1 %v4418_v42  ;;  %v4471_v41 = vld [vmem:[%s6317_s4 + $0x42c] ss:$16 sps:$4 sm:$0xff]  }
  0x5e   : > { %1477 = vmatprep.subr.bf16.mxu0 %v4423_v43  ;;  %1518 = vmatprep.subr.bf16.mxu1 %v4426_v44  ;;  %v4474_v42 = vld [vmem:[%s6317_s4 + $0x62c] ss:$16 sps:$4 sm:$0xff]   ;;  %v4469_v43 = vld [vmem:[%s6317_s4 + $0x428] ss:$16 sps:$4 sm:$0xff]  }
  0x5f   : > { %v4472_v44 = vld [vmem:[%s6317_s4 + $0x628] ss:$16 sps:$4 sm:$0xff]  }
  0x61   : > { %1478 = vmatpush2.bf16.msra.mxu0 %v4421_v45  ;;  %1519 = vmatpush2.bf16.msra.mxu1 %v4424_v46  ;;  %v4477_v45 = vld [vmem:[%s6317_s4 + $0x40c] ss:$16 sps:$4 sm:$0xff]  }
  0x62   : > { %1479 = vmatprep.subr.bf16.mxu0 %v4429_v47  ;;  %1520 = vmatprep.subr.bf16.mxu1 %v4432_v48  ;;  %v4480_v46 = vld [vmem:[%s6317_s4 + $0x60c] ss:$16 sps:$4 sm:$0xff]   ;;  %v4475_v47 = vld [vmem:[%s6317_s4 + $0x408] ss:$16 sps:$4 sm:$0xff]  }
  0x63   : > { %v4478_v48 = vld [vmem:[%s6317_s4 + $0x608] ss:$16 sps:$4 sm:$0xff]  }
  0x65   : > { %1480 = vmatpush2.bf16.msra.mxu0 %v4427_v49  ;;  %1521 = vmatpush2.bf16.msra.mxu1 %v4430_v50  ;;  %v4483_v49 = vld [vmem:[%s6317_s4 + $0x5ec] ss:$16 sps:$4 sm:$0xff]  }
  0x66   : > { %1531 = vmatprep.subr.bf16.mxu0 %v4435_v51  ;;  %1572 = vmatprep.subr.bf16.mxu1 %v4438_v52  ;;  %v4486_v50 = vld [vmem:[%s6317_s4 + $0x7ec] ss:$16 sps:$4 sm:$0xff]   ;;  %v4481_v51 = vld [vmem:[%s6317_s4 + $0x5e8] ss:$16 sps:$4 sm:$0xff]  }
  0x67   : > { %v4484_v52 = vld [vmem:[%s6317_s4 + $0x7e8] ss:$16 sps:$4 sm:$0xff]  }
  0xe0   : > { %v5239_v53 = vpop.f32.mrf.mxu0  ;;  %v5241_v54 = vpop.f32.mrf.mxu1 }
  0xe2   : > { %v5243_v55 = vpop.f32.mrf.mxu0  ;;  %v5245_v56 = vpop.f32.mrf.mxu1 }
  0xe4   : > { %v413_v57 = vpop.f32.mrf.mxu0  ;;  %v454_v58 = vpop.f32.mrf.mxu1 }
  0xe5   : > { %v4489_v57 = vld [vmem:[%s6317_s4 + $0x5cc] ss:$16 sps:$4 sm:$0xff]  }
  0xe6   : > { %v414_v59 = vpop.f32.mrf.mxu0  ;;  %v455_v60 = vpop.f32.mrf.mxu1  ;;  %v4492_v58 = vld [vmem:[%s6317_s4 + $0x7cc] ss:$16 sps:$4 sm:$0xff]  }
  0xe7   : > { %v4487_v59 = vld [vmem:[%s6317_s4 + $0x5c8] ss:$16 sps:$4 sm:$0xff]  }
  0xe8   : > { %v628_v61 = vpop.f32.mrf.mxu0  ;;  %v669_v62 = vpop.f32.mrf.mxu1  ;;  %v4490_v60 = vld [vmem:[%s6317_s4 + $0x7c8] ss:$16 sps:$4 sm:$0xff]  }
  0xe9   : > { %v5253_v11 = vpack.c.bf16 %v628_v61, %v628_v61  ;;  %v5255_v12 = vpack.c.bf16 %v669_v62, %v669_v62  ;;  %v4495_v61 = vld [vmem:[%s6317_s4 + $0x5ac] ss:$16 sps:$4 sm:$0xff]  }
  0xea   : > { %v630_v63 = vpop.f32.mrf.mxu0  ;;  %v671_v0 = vpop.f32.mrf.mxu1  ;;  %v4498_v62 = vld [vmem:[%s6317_s4 + $0x7ac] ss:$16 sps:$4 sm:$0xff]  }
  0xeb   : > { %v677_v1 = vpack.c.bf16 %v630_v63, %v630_v63  ;;  %v679_v4 = vpack.c.bf16 %v671_v0, %v671_v0  ;;  %v4493_v63 = vld [vmem:[%s6317_s4 + $0x5a8] ss:$16 sps:$4 sm:$0xff]  }
  0xec   : > { %v632_v13 = vpop.f32.mrf.mxu0  ;;  %v673_v14 = vpop.f32.mrf.mxu1  ;;  %v4496_v0 = vld [vmem:[%s6317_s4 + $0x7a8] ss:$16 sps:$4 sm:$0xff]  }
  0xed   : > { %1481 = vmatprep.mubr.bf16.mxu0 %v677_v1  ;;  %1522 = vmatprep.mubr.bf16.mxu1 %v679_v4  ;;  %v4507_v13 = vld [vmem:[%s6317_s4 + $0x56c] ss:$16 sps:$4 sm:$0xff]  }
  0xee   : > { %v633_v17 = vpop.f32.mrf.mxu0  ;;  %v674_v18 = vpop.f32.mrf.mxu1  ;;  %1482 = vmatmul.mubr.bf16.vlgmr.msra.gmra.mxu0 %v5253_v11  ;;  %1523 = vmatmul.mubr.bf16.vlgmr.msra.gmra.mxu1 %v5255_v12  ;;  %v4510_v14 = vld [vmem:[%s6317_s4 + $0x76c] ss:$16 sps:$4 sm:$0xff]  }
  0xef   : > { %1532 = vmatpush1.bf16.msra.mxu0 %v4433_v9  ;;  %1573 = vmatpush1.bf16.msra.mxu1 %v4436_v10  ;;  %v4499_v9 = vld [vmem:[%s6317_s4 + $0x588] ss:$16 sps:$4 sm:$0xff]   ;;  %v4513_v17 = vld [vmem:[%s6317_s4 + $0x54c] ss:$16 sps:$4 sm:$0xff]  }
  0xf0   : > { %1563 = vmatprep.mubr.bf16.mxu0 %v677_v1  ;;  %1604 = vmatprep.mubr.bf16.mxu1 %v679_v4  ;;  %v4501_v1 = vld [vmem:[%s6317_s4 + $0x58c] ss:$16 sps:$4 sm:$0xff]   ;;  %v4502_v10 = vld [vmem:[%s6317_s4 + $0x788] ss:$16 sps:$4 sm:$0xff]  }
  0xf1   : > { %1533 = vmatprep.subr.bf16.mxu0 %v4441_v15  ;;  %1574 = vmatprep.subr.bf16.mxu1 %v4444_v16  ;;  %v4504_v4 = vld [vmem:[%s6317_s4 + $0x78c] ss:$16 sps:$4 sm:$0xff]   ;;  %v4505_v15 = vld [vmem:[%s6317_s4 + $0x568] ss:$16 sps:$4 sm:$0xff]  }
  0xf2   : > { %v4508_v16 = vld [vmem:[%s6317_s4 + $0x768] ss:$16 sps:$4 sm:$0xff]   ;;  %v4516_v18 = vld [vmem:[%s6317_s4 + $0x74c] ss:$16 sps:$4 sm:$0xff]  }
  0xf3   : > { %1534 = vmatpush1.bf16.msra.mxu0 %v4439_v19  ;;  %1575 = vmatpush1.bf16.msra.mxu1 %v4442_v20  ;;  %v4511_v19 = vld [vmem:[%s6317_s4 + $0x548] ss:$16 sps:$4 sm:$0xff]  }
  0xf4   : > { %1535 = vmatprep.subr.bf16.mxu0 %v4447_v21  ;;  %1576 = vmatprep.subr.bf16.mxu1 %v4450_v22  ;;  %v4514_v20 = vld [vmem:[%s6317_s4 + $0x748] ss:$16 sps:$4 sm:$0xff]   ;;  %v4519_v21 = vld [vmem:[%s6317_s4 + $0x52c] ss:$16 sps:$4 sm:$0xff]  }
  0xf5   : > { %v4522_v22 = vld [vmem:[%s6317_s4 + $0x72c] ss:$16 sps:$4 sm:$0xff]  }
  0xf7   : > { %1536 = vmatpush1.bf16.msra.mxu0 %v4445_v23  ;;  %1577 = vmatpush1.bf16.msra.mxu1 %v4448_v24  ;;  %v4517_v23 = vld [vmem:[%s6317_s4 + $0x528] ss:$16 sps:$4 sm:$0xff]  }
  0xf8   : > { %1537 = vmatprep.subr.bf16.mxu0 %v4453_v25  ;;  %1578 = vmatprep.subr.bf16.mxu1 %v4456_v26  ;;  %v4520_v24 = vld [vmem:[%s6317_s4 + $0x728] ss:$16 sps:$4 sm:$0xff]   ;;  %v4525_v25 = vld [vmem:[%s6317_s4 + $0x50c] ss:$16 sps:$4 sm:$0xff]  }
  0xf9   : > { %v4528_v26 = vld [vmem:[%s6317_s4 + $0x70c] ss:$16 sps:$4 sm:$0xff]  }
  0xfb   : > { %1538 = vmatpush1.bf16.msra.mxu0 %v4451_v27  ;;  %1579 = vmatpush1.bf16.msra.mxu1 %v4454_v28  ;;  %v4523_v27 = vld [vmem:[%s6317_s4 + $0x508] ss:$16 sps:$4 sm:$0xff]  }
  0xfc   : > { %1539 = vmatprep.subr.bf16.mxu0 %v4459_v29  ;;  %1580 = vmatprep.subr.bf16.mxu1 %v4462_v30  ;;  %v4526_v28 = vld [vmem:[%s6317_s4 + $0x708] ss:$16 sps:$4 sm:$0xff]   ;;  %v4531_v29 = vld [vmem:[%s6317_s4 + $0xe4] ss:$16 sps:$4 sm:$0xff]  }
  0xfd   : > { %v4534_v30 = vld [vmem:[%s6317_s4 + $0x2e4] ss:$16 sps:$4 sm:$0xff]  }
  0xff   : > { %1540 = vmatpush1.bf16.msra.mxu0 %v4457_v31  ;;  %1581 = vmatpush1.bf16.msra.mxu1 %v4460_v32  ;;  %v4529_v31 = vld [vmem:[%s6317_s4 + $0xe0] ss:$16 sps:$4 sm:$0xff]  }
 0x100   : > { %1541 = vmatprep.subr.bf16.mxu0 %v4465_v35  ;;  %1582 = vmatprep.subr.bf16.mxu1 %v4468_v36  ;;  %v4532_v32 = vld [vmem:[%s6317_s4 + $0x2e0] ss:$16 sps:$4 sm:$0xff]   ;;  %v5453_v35 = vpack.c.bf16 %v5243_v55, %v5243_v55  ;;  %v4537_v36 = vld [vmem:[%s6317_s4 + $0xc4] ss:$16 sps:$4 sm:$0xff]  }
 0x101   : > { %v4535_v55 = vld [vmem:[%s6317_s4 + $0xc0] ss:$16 sps:$4 sm:$0xff]  }
 0x103   : > { %1542 = vmatpush1.bf16.msra.mxu0 %v4463_v39  ;;  %1583 = vmatpush1.bf16.msra.mxu1 %v4466_v40  ;;  %v4540_v39 = vld [vmem:[%s6317_s4 + $0x2c4] ss:$16 sps:$4 sm:$0xff]   ;;  %v5463_v40 = vpack.c.bf16 %v5245_v56, %v5245_v56 }
 0x104   : > { %1543 = vmatprep.subr.bf16.mxu0 %v4471_v41  ;;  %1584 = vmatprep.subr.bf16.mxu1 %v4474_v42  ;;  %v4538_v41 = vld [vmem:[%s6317_s4 + $0x2c0] ss:$16 sps:$4 sm:$0xff]   ;;  %v4543_v56 = vld [vmem:[%s6317_s4 + $0xa4] ss:$16 sps:$4 sm:$0xff]  }
 0x105   : > { %v4544_v42 = vld [vmem:[%s6317_s4 + $0x2a0] ss:$16 sps:$4 sm:$0xff]  }
 0x107   : > { %1544 = vmatpush1.bf16.msra.mxu0 %v4469_v43  ;;  %1585 = vmatpush1.bf16.msra.mxu1 %v4472_v44  ;;  %v4549_v43 = vld [vmem:[%s6317_s4 + $0x84] ss:$16 sps:$4 sm:$0xff]  }
 0x108   : > { %1545 = vmatprep.subr.bf16.mxu0 %v4477_v45  ;;  %1586 = vmatprep.subr.bf16.mxu1 %v4480_v46  ;;  %v4552_v44 = vld [vmem:[%s6317_s4 + $0x284] ss:$16 sps:$4 sm:$0xff]   ;;  %v4547_v45 = vld [vmem:[%s6317_s4 + $0x80] ss:$16 sps:$4 sm:$0xff]  }
 0x109   : > { %v4550_v46 = vld [vmem:[%s6317_s4 + $0x280] ss:$16 sps:$4 sm:$0xff]  }
 0x10b   : > { %1546 = vmatpush1.bf16.msra.mxu0 %v4475_v47  ;;  %1587 = vmatpush1.bf16.msra.mxu1 %v4478_v48  ;;  %v4555_v47 = vld [vmem:[%s6317_s4 + $0x64] ss:$16 sps:$4 sm:$0xff]  }
 0x10c   : > { %1547 = vmatprep.subr.bf16.mxu0 %v4483_v49  ;;  %1588 = vmatprep.subr.bf16.mxu1 %v4486_v50  ;;  %v4558_v48 = vld [vmem:[%s6317_s4 + $0x264] ss:$16 sps:$4 sm:$0xff]   ;;  %v4553_v49 = vld [vmem:[%s6317_s4 + $0x60] ss:$16 sps:$4 sm:$0xff]  }
 0x10d   : > { %v4556_v50 = vld [vmem:[%s6317_s4 + $0x260] ss:$16 sps:$4 sm:$0xff]  }
 0x10f   : > { %1548 = vmatpush2.bf16.msra.mxu0 %v4481_v51  ;;  %1589 = vmatpush2.bf16.msra.mxu1 %v4484_v52  ;;  %v4561_v51 = vld [vmem:[%s6317_s4 + $0x44] ss:$16 sps:$4 sm:$0xff]  }
 0x110   : > { %1549 = vmatprep.subr.bf16.mxu0 %v4489_v57  ;;  %1590 = vmatprep.subr.bf16.mxu1 %v4492_v58  ;;  %v4564_v52 = vld [vmem:[%s6317_s4 + $0x244] ss:$16 sps:$4 sm:$0xff]   ;;  %v4559_v57 = vld [vmem:[%s6317_s4 + $0x40] ss:$16 sps:$4 sm:$0xff]  }
 0x111   : > { %v4562_v58 = vld [vmem:[%s6317_s4 + $0x240] ss:$16 sps:$4 sm:$0xff]  }
 0x113   : > { %1550 = vmatpush2.bf16.msra.mxu0 %v4487_v59  ;;  %1591 = vmatpush2.bf16.msra.mxu1 %v4490_v60  ;;  %v4567_v59 = vld [vmem:[%s6317_s4 + $0x24] ss:$16 sps:$4 sm:$0xff]  }
 0x114   : > { %1551 = vmatprep.subr.bf16.mxu0 %v4495_v61  ;;  %1592 = vmatprep.subr.bf16.mxu1 %v4498_v62  ;;  %v4570_v60 = vld [vmem:[%s6317_s4 + $0x224] ss:$16 sps:$4 sm:$0xff]   ;;  %v4565_v61 = vld [vmem:[%s6317_s4 + $0x20] ss:$16 sps:$4 sm:$0xff]  }
 0x115   : > { %v4568_v62 = vld [vmem:[%s6317_s4 + $0x220] ss:$16 sps:$4 sm:$0xff]  }
 0x117   : > { %1552 = vmatpush2.bf16.msra.mxu0 %v4493_v63  ;;  %1593 = vmatpush2.bf16.msra.mxu1 %v4496_v0  ;;  %v4573_v63 = vld [vmem:[%s6317_s4 + $0x4] ss:$16 sps:$4 sm:$0xff]  }
 0x118   : > { %1553 = vmatprep.subr.bf16.mxu0 %v4501_v1  ;;  %1594 = vmatprep.subr.bf16.mxu1 %v4504_v4  ;;  %v4576_v0 = vld [vmem:[%s6317_s4 + $0x204] ss:$16 sps:$4 sm:$0xff]   ;;  %v4571_v1 = vld [vmem:[%s6317_s4] ss:$16 sps:$4 sm:$0xff]  }
 0x119   : > { %v4574_v4 = vld [vmem:[%s6317_s4 + $0x200] ss:$16 sps:$4 sm:$0xff]  }
 0x11b   : > { %1554 = vmatpush2.bf16.msra.mxu0 %v4499_v9  ;;  %1595 = vmatpush2.bf16.msra.mxu1 %v4502_v10  ;;  %v4579_v9 = vld [vmem:[%s6317_s4 + $0x1e4] ss:$16 sps:$4 sm:$0xff]  }
 0x11c   : > { %1555 = vmatprep.subr.bf16.mxu0 %v4507_v13  ;;  %1596 = vmatprep.subr.bf16.mxu1 %v4510_v14  ;;  %v4582_v10 = vld [vmem:[%s6317_s4 + $0x3e4] ss:$16 sps:$4 sm:$0xff]   ;;  %v4577_v13 = vld [vmem:[%s6317_s4 + $0x1e0] ss:$16 sps:$4 sm:$0xff]  }
 0x11d   : > { %v4580_v14 = vld [vmem:[%s6317_s4 + $0x3e0] ss:$16 sps:$4 sm:$0xff]  }
 0x11f   : > { %1556 = vmatpush2.bf16.msra.mxu0 %v4505_v15  ;;  %1597 = vmatpush2.bf16.msra.mxu1 %v4508_v16  ;;  %v4585_v15 = vld [vmem:[%s6317_s4 + $0x1c4] ss:$16 sps:$4 sm:$0xff]  }
 0x120   : > { %1557 = vmatprep.subr.bf16.mxu0 %v4513_v17  ;;  %1598 = vmatprep.subr.bf16.mxu1 %v4516_v18  ;;  %v4588_v16 = vld [vmem:[%s6317_s4 + $0x3c4] ss:$16 sps:$4 sm:$0xff]   ;;  %v4583_v17 = vld [vmem:[%s6317_s4 + $0x1c0] ss:$16 sps:$4 sm:$0xff]  }
 0x121   : > { %v4586_v18 = vld [vmem:[%s6317_s4 + $0x3c0] ss:$16 sps:$4 sm:$0xff]  }
 0x123   : > { %1558 = vmatpush2.bf16.msra.mxu0 %v4511_v19  ;;  %1599 = vmatpush2.bf16.msra.mxu1 %v4514_v20  ;;  %v4591_v19 = vld [vmem:[%s6317_s4 + $0x1a4] ss:$16 sps:$4 sm:$0xff]  }
 0x124   : > { %1559 = vmatprep.subr.bf16.mxu0 %v4519_v21  ;;  %1600 = vmatprep.subr.bf16.mxu1 %v4522_v22  ;;  %v4594_v20 = vld [vmem:[%s6317_s4 + $0x3a4] ss:$16 sps:$4 sm:$0xff]   ;;  %v4589_v21 = vld [vmem:[%s6317_s4 + $0x1a0] ss:$16 sps:$4 sm:$0xff]  }
 0x125   : > { %v4592_v22 = vld [vmem:[%s6317_s4 + $0x3a0] ss:$16 sps:$4 sm:$0xff]  }
 0x127   : > { %1560 = vmatpush2.bf16.msra.mxu0 %v4517_v23  ;;  %1601 = vmatpush2.bf16.msra.mxu1 %v4520_v24  ;;  %v4597_v23 = vld [vmem:[%s6317_s4 + $0x184] ss:$16 sps:$4 sm:$0xff]  }
 0x128   : > { %1561 = vmatprep.subr.bf16.mxu0 %v4525_v25  ;;  %1602 = vmatprep.subr.bf16.mxu1 %v4528_v26  ;;  %v4600_v24 = vld [vmem:[%s6317_s4 + $0x384] ss:$16 sps:$4 sm:$0xff]   ;;  %v4595_v25 = vld [vmem:[%s6317_s4 + $0x180] ss:$16 sps:$4 sm:$0xff]  }
 0x129   : > { %v4598_v26 = vld [vmem:[%s6317_s4 + $0x380] ss:$16 sps:$4 sm:$0xff]  }
 0x12b   : > { %1562 = vmatpush2.bf16.msra.mxu0 %v4523_v27  ;;  %1603 = vmatpush2.bf16.msra.mxu1 %v4526_v28  ;;  %v4603_v27 = vld [vmem:[%s6317_s4 + $0x164] ss:$16 sps:$4 sm:$0xff]  }
 0x12c   : > { %2253 = vmatprep.subr.bf16.mxu0 %v4531_v29  ;;  %2294 = vmatprep.subr.bf16.mxu1 %v4534_v30  ;;  %v4606_v28 = vld [vmem:[%s6317_s4 + $0x364] ss:$16 sps:$4 sm:$0xff]   ;;  %v4601_v29 = vld [vmem:[%s6317_s4 + $0x160] ss:$16 sps:$4 sm:$0xff]  }
 0x12d   : > { %v4604_v30 = vld [vmem:[%s6317_s4 + $0x360] ss:$16 sps:$4 sm:$0xff]  }
 0x12e   : > { %1564 = vmatmul.mubr.bf16.vlgmr.msra.gmra.mxu0 %v5253_v11  ;;  %1605 = vmatmul.mubr.bf16.vlgmr.msra.gmra.mxu1 %v5255_v12  ;;  %v4546_v11 = vld [vmem:[%s6317_s4 + $0x2a4] ss:$16 sps:$4 sm:$0xff]   ;;  %v4541_v12 = vld [vmem:[%s6317_s4 + $0xa0] ss:$16 sps:$4 sm:$0xff]  }
 0x12f   : > { %2254 = vmatpush1.bf16.msra.mxu0 %v4529_v31  ;;  %2285 = vmatprep.mubr.bf16.mxu0 %v5453_v35  ;;  %v4609_v31 = vld [vmem:[%s6317_s4 + $0x144] ss:$16 sps:$4 sm:$0xff]  }
 0x130   : > { %2295 = vmatpush1.bf16.msra.mxu1 %v4532_v32  ;;  %2326 = vmatprep.mubr.bf16.mxu1 %v5463_v40  ;;  %v4612_v32 = vld [vmem:[%s6317_s4 + $0x344] ss:$16 sps:$4 sm:$0xff]  }
 0x131   : > { %2255 = vmatprep.subr.bf16.mxu0 %v4537_v36  ;;  %2296 = vmatprep.subr.bf16.mxu1 %v4540_v39  ;;  %v4607_v36 = vld [vmem:[%s6317_s4 + $0x140] ss:$16 sps:$4 sm:$0xff]  }
 0x132   : > { %v4610_v39 = vld [vmem:[%s6317_s4 + $0x340] ss:$16 sps:$4 sm:$0xff]  }
 0x133   : > { %2256 = vmatpush1.bf16.msra.mxu0 %v4535_v55  ;;  %v4615_v55 = vld [vmem:[%s6317_s4 + $0x124] ss:$16 sps:$4 sm:$0xff]  }
 0x134   : > { %2297 = vmatpush1.bf16.msra.mxu1 %v4538_v41  ;;  %2257 = vmatprep.subr.bf16.mxu0 %v4543_v56  ;;  %v4618_v41 = vld [vmem:[%s6317_s4 + $0x324] ss:$16 sps:$4 sm:$0xff]   ;;  %v4613_v56 = vld [vmem:[%s6317_s4 + $0x120] ss:$16 sps:$4 sm:$0xff]  }
 0x135   : > { %2298 = vmatprep.subr.bf16.mxu1 %v4546_v11  ;;  %v4616_v11 = vld [vmem:[%s6317_s4 + $0x320] ss:$16 sps:$4 sm:$0xff]  }
 0x137   : > { %2258 = vmatpush1.bf16.msra.mxu0 %v4541_v12  ;;  %v4621_v12 = vld [vmem:[%s6317_s4 + $0x104] ss:$16 sps:$4 sm:$0xff]  }
 0x138   : > { %2299 = vmatpush1.bf16.msra.mxu1 %v4544_v42  ;;  %2259 = vmatprep.subr.bf16.mxu0 %v4549_v43  ;;  %v4624_v42 = vld [vmem:[%s6317_s4 + $0x304] ss:$16 sps:$4 sm:$0xff]   ;;  %v4619_v43 = vld [vmem:[%s6317_s4 + $0x100] ss:$16 sps:$4 sm:$0xff]  }
 0x139   : > { %2300 = vmatprep.subr.bf16.mxu1 %v4552_v44  ;;  %v4622_v44 = vld [vmem:[%s6317_s4 + $0x300] ss:$16 sps:$4 sm:$0xff]  }
 0x13b   : > { %2260 = vmatpush1.bf16.msra.mxu0 %v4547_v45  ;;  %v4627_v45 = vld [vmem:[%s6317_s4 + $0xec] ss:$16 sps:$4 sm:$0xff]  }
 0x13c   : > { %2301 = vmatpush1.bf16.msra.mxu1 %v4550_v46  ;;  %2261 = vmatprep.subr.bf16.mxu0 %v4555_v47  ;;  %v4630_v46 = vld [vmem:[%s6317_s4 + $0x2ec] ss:$16 sps:$4 sm:$0xff]   ;;  %v4625_v47 = vld [vmem:[%s6317_s4 + $0xe8] ss:$16 sps:$4 sm:$0xff]  }
 0x13d   : > { %2302 = vmatprep.subr.bf16.mxu1 %v4558_v48  ;;  %v5654_v48 = vpack.c.bf16 %v5239_v53, %v5239_v53  ;;  %v4636_v53 = vld [vmem:[%s6317_s4 + $0x2cc] ss:$16 sps:$4 sm:$0xff]  }
 0x13f   : > { %2262 = vmatpush1.bf16.msra.mxu0 %v4553_v49  ;;  %v4628_v49 = vld [vmem:[%s6317_s4 + $0x2e8] ss:$16 sps:$4 sm:$0xff]  }
 0x140   : > { %2303 = vmatpush1.bf16.msra.mxu1 %v4556_v50  ;;  %2263 = vmatprep.subr.bf16.mxu0 %v4561_v51  ;;  %v5661_v50 = vpack.c.bf16 %v5241_v54, %v5241_v54  ;;  %v4633_v51 = vld [vmem:[%s6317_s4 + $0xcc] ss:$16 sps:$4 sm:$0xff]   ;;  %v4634_v54 = vld [vmem:[%s6317_s4 + $0x2c8] ss:$16 sps:$4 sm:$0xff]  }
 0x141   : > { %2304 = vmatprep.subr.bf16.mxu1 %v4564_v52  ;;  %v4631_v52 = vld [vmem:[%s6317_s4 + $0xc8] ss:$16 sps:$4 sm:$0xff]  }
 0x143   : > { %2264 = vmatpush1.bf16.msra.mxu0 %v4559_v57  ;;  %v4639_v57 = vld [vmem:[%s6317_s4 + $0xac] ss:$16 sps:$4 sm:$0xff]  }
 0x144   : > { %2305 = vmatpush1.bf16.msra.mxu1 %v4562_v58  ;;  %2265 = vmatprep.subr.bf16.mxu0 %v4567_v59  ;;  %v4642_v58 = vld [vmem:[%s6317_s4 + $0x2ac] ss:$16 sps:$4 sm:$0xff]   ;;  %v4640_v59 = vld [vmem:[%s6317_s4 + $0x2a8] ss:$16 sps:$4 sm:$0xff]  }
 0x145   : > { %2306 = vmatprep.subr.bf16.mxu1 %v4570_v60  ;;  %v4648_v60 = vld [vmem:[%s6317_s4 + $0x28c] ss:$16 sps:$4 sm:$0xff]  }
 0x147   : > { %2266 = vmatpush1.bf16.msra.mxu0 %v4565_v61  ;;  %v4643_v61 = vld [vmem:[%s6317_s4 + $0x88] ss:$16 sps:$4 sm:$0xff]  }
 0x148   : > { %2307 = vmatpush1.bf16.msra.mxu1 %v4568_v62  ;;  %2267 = vmatprep.subr.bf16.mxu0 %v4573_v63  ;;  %v4646_v62 = vld [vmem:[%s6317_s4 + $0x288] ss:$16 sps:$4 sm:$0xff]   ;;  %v4651_v63 = vld [vmem:[%s6317_s4 + $0x6c] ss:$16 sps:$4 sm:$0xff]  }
 0x149   : > { %2308 = vmatprep.subr.bf16.mxu1 %v4576_v0  ;;  %v4654_v0 = vld [vmem:[%s6317_s4 + $0x26c] ss:$16 sps:$4 sm:$0xff]  }
 0x14b   : > { %2268 = vmatpush1.bf16.msra.mxu0 %v4571_v1  ;;  %v4649_v1 = vld [vmem:[%s6317_s4 + $0x68] ss:$16 sps:$4 sm:$0xff]  }
 0x14c   : > { %2309 = vmatpush1.bf16.msra.mxu1 %v4574_v4  ;;  %2269 = vmatprep.subr.bf16.mxu0 %v4579_v9  ;;  %v4652_v4 = vld [vmem:[%s6317_s4 + $0x268] ss:$16 sps:$4 sm:$0xff]   ;;  %v4657_v9 = vld [vmem:[%s6317_s4 + $0x4c] ss:$16 sps:$4 sm:$0xff]  }
 0x14d   : > { %2310 = vmatprep.subr.bf16.mxu1 %v4582_v10  ;;  %v4660_v10 = vld [vmem:[%s6317_s4 + $0x24c] ss:$16 sps:$4 sm:$0xff]  }
 0x14f   : > { %2270 = vmatpush2.bf16.msra.mxu0 %v4577_v13  ;;  %v4655_v13 = vld [vmem:[%s6317_s4 + $0x48] ss:$16 sps:$4 sm:$0xff]  }
 0x150   : > { %2311 = vmatpush2.bf16.msra.mxu1 %v4580_v14  ;;  %2271 = vmatprep.subr.bf16.mxu0 %v4585_v15  ;;  %v4658_v14 = vld [vmem:[%s6317_s4 + $0x248] ss:$16 sps:$4 sm:$0xff]   ;;  %v4663_v15 = vld [vmem:[%s6317_s4 + $0x2c] ss:$16 sps:$4 sm:$0xff]  }
 0x151   : > { %2312 = vmatprep.subr.bf16.mxu1 %v4588_v16  ;;  %v4666_v16 = vld [vmem:[%s6317_s4 + $0x22c] ss:$16 sps:$4 sm:$0xff]  }
 0x153   : > { %2272 = vmatpush2.bf16.msra.mxu0 %v4583_v17  ;;  %v4661_v17 = vld [vmem:[%s6317_s4 + $0x28] ss:$16 sps:$4 sm:$0xff]  }
 0x154   : > { %2313 = vmatpush2.bf16.msra.mxu1 %v4586_v18  ;;  %2273 = vmatprep.subr.bf16.mxu0 %v4591_v19  ;;  %v4664_v18 = vld [vmem:[%s6317_s4 + $0x228] ss:$16 sps:$4 sm:$0xff]   ;;  %v4669_v19 = vld [vmem:[%s6317_s4 + $0xc] ss:$16 sps:$4 sm:$0xff]  }
 0x155   : > { %2314 = vmatprep.subr.bf16.mxu1 %v4594_v20  ;;  %v4672_v20 = vld [vmem:[%s6317_s4 + $0x20c] ss:$16 sps:$4 sm:$0xff]  }
 0x157   : > { %2274 = vmatpush2.bf16.msra.mxu0 %v4589_v21  ;;  %v4667_v21 = vld [vmem:[%s6317_s4 + $0x8] ss:$16 sps:$4 sm:$0xff]  }
 0x158   : > { %2315 = vmatpush2.bf16.msra.mxu1 %v4592_v22  ;;  %2275 = vmatprep.subr.bf16.mxu0 %v4597_v23  ;;  %v4670_v22 = vld [vmem:[%s6317_s4 + $0x208] ss:$16 sps:$4 sm:$0xff]   ;;  %v4675_v23 = vld [vmem:[%s6317_s4 + $0x1ec] ss:$16 sps:$4 sm:$0xff]  }
 0x159   : > { %2316 = vmatprep.subr.bf16.mxu1 %v4600_v24  ;;  %v4678_v24 = vld [vmem:[%s6317_s4 + $0x3ec] ss:$16 sps:$4 sm:$0xff]  }
 0x15b   : > { %2276 = vmatpush2.bf16.msra.mxu0 %v4595_v25  ;;  %v4673_v25 = vld [vmem:[%s6317_s4 + $0x1e8] ss:$16 sps:$4 sm:$0xff]  }
 0x15c   : > { %2317 = vmatpush2.bf16.msra.mxu1 %v4598_v26  ;;  %2277 = vmatprep.subr.bf16.mxu0 %v4603_v27  ;;  %v4676_v26 = vld [vmem:[%s6317_s4 + $0x3e8] ss:$16 sps:$4 sm:$0xff]   ;;  %v4681_v27 = vld [vmem:[%s6317_s4 + $0x1cc] ss:$16 sps:$4 sm:$0xff]  }
 0x15d   : > { %2318 = vmatprep.subr.bf16.mxu1 %v4606_v28  ;;  %v4684_v28 = vld [vmem:[%s6317_s4 + $0x3cc] ss:$16 sps:$4 sm:$0xff]  }
 0x15f   : > { %2278 = vmatpush2.bf16.msra.mxu0 %v4601_v29  ;;  %v4679_v29 = vld [vmem:[%s6317_s4 + $0x1c8] ss:$16 sps:$4 sm:$0xff]  }
 0x160   : > { %2319 = vmatpush2.bf16.msra.mxu1 %v4604_v30  ;;  %2279 = vmatprep.subr.bf16.mxu0 %v4609_v31  ;;  %v4682_v30 = vld [vmem:[%s6317_s4 + $0x3c8] ss:$16 sps:$4 sm:$0xff]   ;;  %v4687_v31 = vld [vmem:[%s6317_s4 + $0x1ac] ss:$16 sps:$4 sm:$0xff]  }
 0x161   : > { %2320 = vmatprep.subr.bf16.mxu1 %v4612_v32  ;;  %v4690_v32 = vld [vmem:[%s6317_s4 + $0x3ac] ss:$16 sps:$4 sm:$0xff]  }
 0x163   : > { %2280 = vmatpush2.bf16.msra.mxu0 %v4607_v36  ;;  %v4685_v36 = vld [vmem:[%s6317_s4 + $0x1a8] ss:$16 sps:$4 sm:$0xff]  }
 0x164   : > { %2321 = vmatpush2.bf16.msra.mxu1 %v4610_v39  ;;  %2281 = vmatprep.subr.bf16.mxu0 %v4615_v55  ;;  %v4688_v39 = vld [vmem:[%s6317_s4 + $0x3a8] ss:$16 sps:$4 sm:$0xff]   ;;  %v4693_v55 = vld [vmem:[%s6317_s4 + $0x18c] ss:$16 sps:$4 sm:$0xff]  }
 0x165   : > { %2322 = vmatprep.subr.bf16.mxu1 %v4618_v41  ;;  %v4696_v41 = vld [vmem:[%s6317_s4 + $0x38c] ss:$16 sps:$4 sm:$0xff]  }
 0x167   : > { %2282 = vmatpush2.bf16.msra.mxu0 %v4613_v56  ;;  %v4691_v56 = vld [vmem:[%s6317_s4 + $0x188] ss:$16 sps:$4 sm:$0xff]  }
 0x168   : > { %2323 = vmatpush2.bf16.msra.mxu1 %v4616_v11  ;;  %2283 = vmatprep.subr.bf16.mxu0 %v4621_v12  ;;  %v4694_v11 = vld [vmem:[%s6317_s4 + $0x388] ss:$16 sps:$4 sm:$0xff]   ;;  %v4699_v12 = vld [vmem:[%s6317_s4 + $0x16c] ss:$16 sps:$4 sm:$0xff]  }
 0x169   : > { %2324 = vmatprep.subr.bf16.mxu1 %v4624_v42  ;;  %v4702_v42 = vld [vmem:[%s6317_s4 + $0x36c] ss:$16 sps:$4 sm:$0xff]  }
 0x16b   : > { %2284 = vmatpush2.bf16.msra.mxu0 %v4619_v43  ;;  %v4697_v43 = vld [vmem:[%s6317_s4 + $0x168] ss:$16 sps:$4 sm:$0xff]  }
 0x16c   : > { %2325 = vmatpush2.bf16.msra.mxu1 %v4622_v44  ;;  %2335 = vmatprep.subr.bf16.mxu0 %v4627_v45  ;;  %v4700_v44 = vld [vmem:[%s6317_s4 + $0x368] ss:$16 sps:$4 sm:$0xff]   ;;  %v4705_v45 = vld [vmem:[%s6317_s4 + $0x14c] ss:$16 sps:$4 sm:$0xff]  }
 0x16d   : > { %2376 = vmatprep.subr.bf16.mxu1 %v4630_v46  ;;  %v4708_v46 = vld [vmem:[%s6317_s4 + $0x34c] ss:$16 sps:$4 sm:$0xff]  }
 0x16e   : > { %2286 = vmatmul.mubr.bf16.vlgmr.msra.gmra.mxu0 %v5654_v48 }
 0x16f   : > { %2327 = vmatmul.mubr.bf16.vlgmr.msra.gmra.mxu1 %v5661_v50  ;;  %2336 = vmatpush1.bf16.msra.mxu0 %v4625_v47  ;;  %v4703_v47 = vld [vmem:[%s6317_s4 + $0x148] ss:$16 sps:$4 sm:$0xff]  }
 0x170   : > { %2367 = vmatprep.mubr.bf16.mxu0 %v5453_v35  ;;  %2377 = vmatpush1.bf16.msra.mxu1 %v4628_v49  ;;  %v4637_v35 = vld [vmem:[%s6317_s4 + $0xa8] ss:$16 sps:$4 sm:$0xff]  }
 0x171   : > { %2408 = vmatprep.mubr.bf16.mxu1 %v5463_v40  ;;  %2337 = vmatprep.subr.bf16.mxu0 %v4633_v51  ;;  %v4645_v40 = vld [vmem:[%s6317_s4 + $0x8c] ss:$16 sps:$4 sm:$0xff]   ;;  %v4706_v49 = vld [vmem:[%s6317_s4 + $0x348] ss:$16 sps:$4 sm:$0xff]  }
 0x172   : > { %2378 = vmatprep.subr.bf16.mxu1 %v4636_v53  ;;  %v4711_v51 = vld [vmem:[%s6317_s4 + $0x12c] ss:$16 sps:$4 sm:$0xff]  }
 0x173   : > { %2338 = vmatpush1.bf16.msra.mxu0 %v4631_v52  ;;  %v4714_v53 = vld [vmem:[%s6317_s4 + $0x32c] ss:$16 sps:$4 sm:$0xff]   ;;  %v4709_v52 = vld [vmem:[%s6317_s4 + $0x128] ss:$16 sps:$4 sm:$0xff]  }
 0x174   : > { %2379 = vmatpush1.bf16.msra.mxu1 %v4634_v54  ;;  %2339 = vmatprep.subr.bf16.mxu0 %v4639_v57  ;;  %v4712_v54 = vld [vmem:[%s6317_s4 + $0x328] ss:$16 sps:$4 sm:$0xff]   ;;  %v4717_v57 = vld [vmem:[%s6317_s4 + $0x10c] ss:$16 sps:$4 sm:$0xff]  }
 0x175   : > { %2380 = vmatprep.subr.bf16.mxu1 %v4642_v58  ;;  %v4720_v58 = vld [vmem:[%s6317_s4 + $0x30c] ss:$16 sps:$4 sm:$0xff]  }
 0x177   : > { %2340 = vmatpush1.bf16.msra.mxu0 %v4637_v35  ;;  %v4715_v35 = vld [vmem:[%s6317_s4 + $0x108] ss:$16 sps:$4 sm:$0xff]  }
 0x178   : > { %2381 = vmatpush1.bf16.msra.mxu1 %v4640_v59  ;;  %2341 = vmatprep.subr.bf16.mxu0 %v4645_v40  ;;  %v4718_v59 = vld [vmem:[%s6317_s4 + $0x308] ss:$16 sps:$4 sm:$0xff]  }
 0x179   : > { %2382 = vmatprep.subr.bf16.mxu1 %v4648_v60 }
 0x17b   : > { %2342 = vmatpush1.bf16.msra.mxu0 %v4643_v61 }
 0x17c   : > { %2383 = vmatpush1.bf16.msra.mxu1 %v4646_v62  ;;  %2343 = vmatprep.subr.bf16.mxu0 %v4651_v63 }
 0x17d   : > { %2384 = vmatprep.subr.bf16.mxu1 %v4654_v0 }
 0x17f   : > { %2344 = vmatpush1.bf16.msra.mxu0 %v4649_v1 }
 0x180   : > { %2385 = vmatpush1.bf16.msra.mxu1 %v4652_v4  ;;  %2345 = vmatprep.subr.bf16.mxu0 %v4657_v9  ;;  %v4726_v4 = vld [vmem:[%s6317_s4 + $0xae4] ss:$16 sps:$4 sm:$0xff]  }
 0x181   : > { %2386 = vmatprep.subr.bf16.mxu1 %v4660_v10  ;;  %v4729_v9 = vld [vmem:[%s6317_s4 + $0x8c4] ss:$16 sps:$4 sm:$0xff]  }
 0x182   : > { %v4732_v10 = vld [vmem:[%s6317_s4 + $0xac4] ss:$16 sps:$4 sm:$0xff]  }
 0x183   : > { %2346 = vmatpush1.bf16.msra.mxu0 %v4655_v13  ;;  %v4727_v13 = vld [vmem:[%s6317_s4 + $0x8c0] ss:$16 sps:$4 sm:$0xff]  }
 0x184   : > { %2387 = vmatpush1.bf16.msra.mxu1 %v4658_v14  ;;  %2347 = vmatprep.subr.bf16.mxu0 %v4663_v15  ;;  %v4730_v14 = vld [vmem:[%s6317_s4 + $0xac0] ss:$16 sps:$4 sm:$0xff]   ;;  %v4735_v15 = vld [vmem:[%s6317_s4 + $0x8a4] ss:$16 sps:$4 sm:$0xff]  }
 0x185   : > { %2388 = vmatprep.subr.bf16.mxu1 %v4666_v16  ;;  %v4738_v16 = vld [vmem:[%s6317_s4 + $0xaa4] ss:$16 sps:$4 sm:$0xff]  }
 0x187   : > { %2348 = vmatpush1.bf16.msra.mxu0 %v4661_v17  ;;  %v4733_v17 = vld [vmem:[%s6317_s4 + $0x8a0] ss:$16 sps:$4 sm:$0xff]  }
 0x188   : > { %2389 = vmatpush1.bf16.msra.mxu1 %v4664_v18  ;;  %2349 = vmatprep.subr.bf16.mxu0 %v4669_v19  ;;  %v4736_v18 = vld [vmem:[%s6317_s4 + $0xaa0] ss:$16 sps:$4 sm:$0xff]   ;;  %v4741_v19 = vld [vmem:[%s6317_s4 + $0x884] ss:$16 sps:$4 sm:$0xff]  }
 0x189   : > { %2390 = vmatprep.subr.bf16.mxu1 %v4672_v20  ;;  %v4744_v20 = vld [vmem:[%s6317_s4 + $0xa84] ss:$16 sps:$4 sm:$0xff]  }
 0x18b   : > { %2350 = vmatpush1.bf16.msra.mxu0 %v4667_v21  ;;  %v4739_v21 = vld [vmem:[%s6317_s4 + $0x880] ss:$16 sps:$4 sm:$0xff]  }
 0x18c   : > { %2391 = vmatpush1.bf16.msra.mxu1 %v4670_v22  ;;  %2351 = vmatprep.subr.bf16.mxu0 %v4675_v23  ;;  %v4742_v22 = vld [vmem:[%s6317_s4 + $0xa80] ss:$16 sps:$4 sm:$0xff]   ;;  %v4747_v23 = vld [vmem:[%s6317_s4 + $0x864] ss:$16 sps:$4 sm:$0xff]  }
 0x18d   : > { %2392 = vmatprep.subr.bf16.mxu1 %v4678_v24  ;;  %v4750_v24 = vld [vmem:[%s6317_s4 + $0xa64] ss:$16 sps:$4 sm:$0xff]  }
 0x18f   : > { %2352 = vmatpush2.bf16.msra.mxu0 %v4673_v25  ;;  %v4745_v25 = vld [vmem:[%s6317_s4 + $0x860] ss:$16 sps:$4 sm:$0xff]  }
 0x190   : > { %2393 = vmatpush2.bf16.msra.mxu1 %v4676_v26  ;;  %2353 = vmatprep.subr.bf16.mxu0 %v4681_v27  ;;  %v4748_v26 = vld [vmem:[%s6317_s4 + $0xa60] ss:$16 sps:$4 sm:$0xff]   ;;  %v4753_v27 = vld [vmem:[%s6317_s4 + $0x844] ss:$16 sps:$4 sm:$0xff]  }
 0x191   : > { %2394 = vmatprep.subr.bf16.mxu1 %v4684_v28  ;;  %v4756_v28 = vld [vmem:[%s6317_s4 + $0xa44] ss:$16 sps:$4 sm:$0xff]  }
 0x193   : > { %2354 = vmatpush2.bf16.msra.mxu0 %v4679_v29  ;;  %v4751_v29 = vld [vmem:[%s6317_s4 + $0x840] ss:$16 sps:$4 sm:$0xff]  }
 0x194   : > { %2395 = vmatpush2.bf16.msra.mxu1 %v4682_v30  ;;  %2355 = vmatprep.subr.bf16.mxu0 %v4687_v31  ;;  %v4754_v30 = vld [vmem:[%s6317_s4 + $0xa40] ss:$16 sps:$4 sm:$0xff]   ;;  %v4759_v31 = vld [vmem:[%s6317_s4 + $0x824] ss:$16 sps:$4 sm:$0xff]  }
 0x195   : > { %2396 = vmatprep.subr.bf16.mxu1 %v4690_v32  ;;  %v4762_v32 = vld [vmem:[%s6317_s4 + $0xa24] ss:$16 sps:$4 sm:$0xff]  }
 0x197   : > { %2356 = vmatpush2.bf16.msra.mxu0 %v4685_v36  ;;  %v4757_v36 = vld [vmem:[%s6317_s4 + $0x820] ss:$16 sps:$4 sm:$0xff]  }
 0x198   : > { %2397 = vmatpush2.bf16.msra.mxu1 %v4688_v39  ;;  %2357 = vmatprep.subr.bf16.mxu0 %v4693_v55  ;;  %v4760_v39 = vld [vmem:[%s6317_s4 + $0xa20] ss:$16 sps:$4 sm:$0xff]   ;;  %v4765_v55 = vld [vmem:[%s6317_s4 + $0x804] ss:$16 sps:$4 sm:$0xff]  }
 0x199   : > { %2398 = vmatprep.subr.bf16.mxu1 %v4696_v41  ;;  %v4768_v41 = vld [vmem:[%s6317_s4 + $0xa04] ss:$16 sps:$4 sm:$0xff]  }
 0x19b   : > { %2358 = vmatpush2.bf16.msra.mxu0 %v4691_v56  ;;  %v4763_v56 = vld [vmem:[%s6317_s4 + $0x800] ss:$16 sps:$4 sm:$0xff]  }
 0x19c   : > { %2399 = vmatpush2.bf16.msra.mxu1 %v4694_v11  ;;  %2359 = vmatprep.subr.bf16.mxu0 %v4699_v12  ;;  %v4766_v11 = vld [vmem:[%s6317_s4 + $0xa00] ss:$16 sps:$4 sm:$0xff]   ;;  %v4771_v12 = vld [vmem:[%s6317_s4 + $0x9e4] ss:$16 sps:$4 sm:$0xff]  }
 0x19d   : > { %2400 = vmatprep.subr.bf16.mxu1 %v4702_v42  ;;  %v4774_v42 = vld [vmem:[%s6317_s4 + $0xbe4] ss:$16 sps:$4 sm:$0xff]  }
 0x19f   : > { %2360 = vmatpush2.bf16.msra.mxu0 %v4697_v43  ;;  %v4769_v43 = vld [vmem:[%s6317_s4 + $0x9e0] ss:$16 sps:$4 sm:$0xff]  }
 0x1a0   : > { %2401 = vmatpush2.bf16.msra.mxu1 %v4700_v44  ;;  %2361 = vmatprep.subr.bf16.mxu0 %v4705_v45  ;;  %v4772_v44 = vld [vmem:[%s6317_s4 + $0xbe0] ss:$16 sps:$4 sm:$0xff]   ;;  %v4777_v45 = vld [vmem:[%s6317_s4 + $0x9c4] ss:$16 sps:$4 sm:$0xff]  }
 0x1a1   : > { %2402 = vmatprep.subr.bf16.mxu1 %v4708_v46  ;;  %v4780_v46 = vld [vmem:[%s6317_s4 + $0xbc4] ss:$16 sps:$4 sm:$0xff]  }
 0x1a3   : > { %2362 = vmatpush2.bf16.msra.mxu0 %v4703_v47  ;;  %v4775_v47 = vld [vmem:[%s6317_s4 + $0x9c0] ss:$16 sps:$4 sm:$0xff]  }
 0x1a4   : > { %2403 = vmatpush2.bf16.msra.mxu1 %v4706_v49  ;;  %2363 = vmatprep.subr.bf16.mxu0 %v4711_v51  ;;  %v4778_v49 = vld [vmem:[%s6317_s4 + $0xbc0] ss:$16 sps:$4 sm:$0xff]   ;;  %v4783_v51 = vld [vmem:[%s6317_s4 + $0x9a4] ss:$16 sps:$4 sm:$0xff]  }
 0x1a5   : > { %2404 = vmatprep.subr.bf16.mxu1 %v4714_v53  ;;  %v4786_v53 = vld [vmem:[%s6317_s4 + $0xba4] ss:$16 sps:$4 sm:$0xff]  }
 0x1a7   : > { %2364 = vmatpush2.bf16.msra.mxu0 %v4709_v52  ;;  %v4781_v52 = vld [vmem:[%s6317_s4 + $0x9a0] ss:$16 sps:$4 sm:$0xff]  }
 0x1a8   : > { %2405 = vmatpush2.bf16.msra.mxu1 %v4712_v54  ;;  %2365 = vmatprep.subr.bf16.mxu0 %v4717_v57  ;;  %v4784_v54 = vld [vmem:[%s6317_s4 + $0xba0] ss:$16 sps:$4 sm:$0xff]   ;;  %v4789_v57 = vld [vmem:[%s6317_s4 + $0x984] ss:$16 sps:$4 sm:$0xff]  }
 0x1a9   : > { %2406 = vmatprep.subr.bf16.mxu1 %v4720_v58  ;;  %v4792_v58 = vld [vmem:[%s6317_s4 + $0xb84] ss:$16 sps:$4 sm:$0xff]  }
 0x1ab   : > { %2366 = vmatpush2.bf16.msra.mxu0 %v4715_v35  ;;  %v4787_v35 = vld [vmem:[%s6317_s4 + $0x980] ss:$16 sps:$4 sm:$0xff]  }
 0x1ac   : > { %2407 = vmatpush2.bf16.msra.mxu1 %v4718_v59  ;;  %4062 = vmatprep.subr.msk.bf16.mxu0 %vm362_vm0, %v5007_v33  ;;  %v4790_v59 = vld [vmem:[%s6317_s4 + $0xb80] ss:$16 sps:$4 sm:$0xff]  }
 0x1ad   : > { %4064 = vmatprep.subr.msk.bf16.mxu1 %vm362_vm0, %v5009_v34 }
 0x1ae   : > { %2368 = vmatmul.mubr.bf16.vlgmr.msra.gmra.mxu0 %v5654_v48  ;;  %v1483_v40 = vpop.f32.mrf.mxu0  ;;  %v1524_v60 = vpop.f32.mrf.mxu1 }
 0x1af   : > { %2409 = vmatmul.mubr.bf16.vlgmr.msra.gmra.mxu1 %v5661_v50  ;;  %v5853_v61 = vadd.f32 %v1524_v60, %v1483_v40  ;;  %2437 = vmatpush1.bf16.msra.mxu0 %v5016_v37  ;;  %v4061_v50 = vld [vmem:[%s6316_s3 + $0x4] sm:$0x3]  ;;  %v4721_v37 = vld [vmem:[%s6317_s4 + $0x8e0] ss:$16 sps:$4 sm:$0xff]  }
 0x1b0   : > { %2478 = vmatpush1.bf16.msra.mxu1 %v5019_v38  ;;  %v1485_v62 = vpop.f32.mrf.mxu0  ;;  %v1526_v63 = vpop.f32.mrf.mxu1  ;;  %2454 = vmatprep.mubr.bf16.mxu0 %v4921_v3  ;;  %v4723_v38 = vld [vmem:[%s6317_s4 + $0x8e4] ss:$16 sps:$4 sm:$0xff]  }
 0x1b1   : > { %v5858_v33 = vadd.f32 %v1526_v63, %v1485_v62  ;;  %2495 = vmatprep.mubr.bf16.mxu1 %v4921_v3  ;;  %v4724_v3 = vld [vmem:[%s6317_s4 + $0xae0] ss:$16 sps:$4 sm:$0xff]   ;;  %3277 = vmatprep.subr.bf16.mxu0 %v4723_v38  ;;  %v4795_v40 = vld [vmem:[%s6317_s4 + $0x964] ss:$16 sps:$4 sm:$0xff]  }
 0x1b2   : > { %v1487_v34 = vpop.f32.mrf.mxu0  ;;  %v1528_v48 = vpop.f32.mrf.mxu1  ;;  %3318 = vmatprep.subr.bf16.mxu1 %v4726_v4  ;;  %v4798_v60 = vld [vmem:[%s6317_s4 + $0xb64] ss:$16 sps:$4 sm:$0xff]   ;;  %v4793_v62 = vld [vmem:[%s6317_s4 + $0x960] ss:$16 sps:$4 sm:$0xff]  }
 0x1b3   : > { %v4796_v63 = vld [vmem:[%s6317_s4 + $0xb60] ss:$16 sps:$4 sm:$0xff]  }
 0x1b4   : > { %v1488_v0 = vpop.f32.mrf.mxu0  ;;  %v1529_v1 = vpop.f32.mrf.mxu1  ;;  %v4802_v4 = vld [vmem:[%s6317_s4 + $0xb40] ss:$16 sps:$4 sm:$0xff]  }
 0x1b5   : > { %v4801_v0 = vld [vmem:[%s6317_s4 + $0x944] ss:$16 sps:$4 sm:$0xff]  }
 0x1b6   : > { %4063 = vmatmul.mubr.msk.bf16.vlgmr.msra.gmra.mxu0 %vm358_vm1, %v4061_v50  ;;  %v4804_v1 = vld [vmem:[%s6317_s4 + $0xb44] ss:$16 sps:$4 sm:$0xff]  }
 0x1b7   : > { %4065 = vmatmul.mubr.msk.bf16.vlgmr.msra.gmra.mxu1 %vm358_vm1, %v4061_v50  ;;  %3278 = vmatpush1.bf16.msra.mxu0 %v4721_v37 }
 0x1b8   : > { %3319 = vmatpush1.bf16.msra.mxu1 %v4724_v3  ;;  %3279 = vmatprep.subr.bf16.mxu0 %v4729_v9  ;;  %v4799_v3 = vld [vmem:[%s6317_s4 + $0x940] ss:$16 sps:$4 sm:$0xff]  }
 0x1b9   : > { %3320 = vmatprep.subr.bf16.mxu1 %v4732_v10 }
 0x1bb   : > { %3280 = vmatpush1.bf16.msra.mxu0 %v4727_v13 }
 0x1bc   : > { %3321 = vmatpush1.bf16.msra.mxu1 %v4730_v14  ;;  %3281 = vmatprep.subr.bf16.mxu0 %v4735_v15  ;;  %v4805_v14 = vld [vmem:[%s6317_s4 + $0x920] ss:$16 sps:$4 sm:$0xff]   ;;  %v4807_v15 = vld [vmem:[%s6317_s4 + $0x924] ss:$16 sps:$4 sm:$0xff]  }
 0x1bd   : > { %3322 = vmatprep.subr.bf16.mxu1 %v4738_v16  ;;  %v4808_v16 = vld [vmem:[%s6317_s4 + $0xb20] ss:$16 sps:$4 sm:$0xff]  }
 0x1bf   : > { %3282 = vmatpush1.bf16.msra.mxu0 %v4733_v17 }
 0x1c0   : > { %3323 = vmatpush1.bf16.msra.mxu1 %v4736_v18  ;;  %3283 = vmatprep.subr.bf16.mxu0 %v4741_v19  ;;  %v4810_v19 = vld [vmem:[%s6317_s4 + $0xb24] ss:$16 sps:$4 sm:$0xff]  }
 0x1c1   : > { %3324 = vmatprep.subr.bf16.mxu1 %v4744_v20  ;;  %v4813_v20 = vld [vmem:[%s6317_s4 + $0x904] ss:$16 sps:$4 sm:$0xff]  }
 0x1c3   : > { %3284 = vmatpush1.bf16.msra.mxu0 %v4739_v21  ;;  %v4816_v21 = vld [vmem:[%s6317_s4 + $0xb04] ss:$16 sps:$4 sm:$0xff]  }
 0x1c4   : > { %3325 = vmatpush1.bf16.msra.mxu1 %v4742_v22  ;;  %3285 = vmatprep.subr.bf16.mxu0 %v4747_v23  ;;  %v4811_v22 = vld [vmem:[%s6317_s4 + $0x900] ss:$16 sps:$4 sm:$0xff]  }
 0x1c5   : > { %3326 = vmatprep.subr.bf16.mxu1 %v4750_v24  ;;  %v4814_v23 = vld [vmem:[%s6317_s4 + $0xb00] ss:$16 sps:$4 sm:$0xff]   ;;  %v4819_v24 = vld [vmem:[%s6317_s4 + $0x8ec] ss:$16 sps:$4 sm:$0xff]  }
 0x1c7   : > { %3286 = vmatpush1.bf16.msra.mxu0 %v4745_v25  ;;  %v4822_v25 = vld [vmem:[%s6317_s4 + $0xaec] ss:$16 sps:$4 sm:$0xff]  }
 0x1c8   : > { %3327 = vmatpush1.bf16.msra.mxu1 %v4748_v26  ;;  %3287 = vmatprep.subr.bf16.mxu0 %v4753_v27 }
 0x1c9   : > { %3328 = vmatprep.subr.bf16.mxu1 %v4756_v28 }
 0x1cb   : > { %3288 = vmatpush1.bf16.msra.mxu0 %v4751_v29 }
 0x1cc   : > { %3329 = vmatpush1.bf16.msra.mxu1 %v4754_v30  ;;  %3289 = vmatprep.subr.bf16.mxu0 %v4759_v31 }
 0x1cd   : > { %3330 = vmatprep.subr.bf16.mxu1 %v4762_v32 }
 0x1cf   : > { %3290 = vmatpush1.bf16.msra.mxu0 %v4757_v36 }
 0x1d0   : > { %3331 = vmatpush1.bf16.msra.mxu1 %v4760_v39  ;;  %3291 = vmatprep.subr.bf16.mxu0 %v4765_v55 }
 0x1d1   : > { %3332 = vmatprep.subr.bf16.mxu1 %v4768_v41 }
 0x1d3   : > { %3292 = vmatpush1.bf16.msra.mxu0 %v4763_v56 }
 0x1d4   : > { %3333 = vmatpush1.bf16.msra.mxu1 %v4766_v11  ;;  %3293 = vmatprep.subr.bf16.mxu0 %v4771_v12 }
 0x1d5   : > { %3334 = vmatprep.subr.bf16.mxu1 %v4774_v42 }
 0x1d7   : > { %3294 = vmatpush2.bf16.msra.mxu0 %v4769_v43 }
 0x1d8   : > { %3335 = vmatpush2.bf16.msra.mxu1 %v4772_v44  ;;  %3295 = vmatprep.subr.bf16.mxu0 %v4777_v45 }
 0x1d9   : > { %3336 = vmatprep.subr.bf16.mxu1 %v4780_v46 }
 0x1db   : > { %3296 = vmatpush2.bf16.msra.mxu0 %v4775_v47 }
 0x1dc   : > { %3337 = vmatpush2.bf16.msra.mxu1 %v4778_v49  ;;  %3297 = vmatprep.subr.bf16.mxu0 %v4783_v51 }
 0x1dd   : > { %3338 = vmatprep.subr.bf16.mxu1 %v4786_v53 }
 0x1df   : > { %3298 = vmatpush2.bf16.msra.mxu0 %v4781_v52 }
 0x1e0   : > { %3339 = vmatpush2.bf16.msra.mxu1 %v4784_v54  ;;  %3299 = vmatprep.subr.bf16.mxu0 %v4789_v57 }
 0x1e1   : > { %3340 = vmatprep.subr.bf16.mxu1 %v4792_v58 }
 0x1e3   : > { %3300 = vmatpush2.bf16.msra.mxu0 %v4787_v35  ;;  %v4817_v35 = vld [vmem:[%s6317_s4 + $0x8e8] ss:$16 sps:$4 sm:$0xff]  }
 0x1e4   : > { %3341 = vmatpush2.bf16.msra.mxu1 %v4790_v59  ;;  %3301 = vmatprep.subr.bf16.mxu0 %v4795_v40 }
 0x1e5   : > { %3342 = vmatprep.subr.bf16.mxu1 %v4798_v60 }
 0x1e7   : > { %3302 = vmatpush2.bf16.msra.mxu0 %v4793_v62  ;;  %v4820_v62 = vld [vmem:[%s6317_s4 + $0xae8] ss:$16 sps:$4 sm:$0xff]  }
 0x1e8   : > { %3343 = vmatpush2.bf16.msra.mxu1 %v4796_v63  ;;  %3303 = vmatprep.subr.bf16.mxu0 %v4801_v0  ;;  %v4828_v0 = vld [vmem:[%s6317_s4 + $0xacc] ss:$16 sps:$4 sm:$0xff]  }
 0x1e9   : > { %3344 = vmatprep.subr.bf16.mxu1 %v4804_v1 }
 0x1eb   : > { %3304 = vmatpush2.bf16.msra.mxu0 %v4799_v3  ;;  %v4831_v3 = vld [vmem:[%s6317_s4 + $0x8ac] ss:$16 sps:$4 sm:$0xff]  }
 0x1ec   : > { %3345 = vmatpush2.bf16.msra.mxu1 %v4802_v4  ;;  %3305 = vmatprep.subr.bf16.mxu0 %v4807_v15  ;;  %v4834_v4 = vld [vmem:[%s6317_s4 + $0xaac] ss:$16 sps:$4 sm:$0xff]   ;;  %v4835_v15 = vld [vmem:[%s6317_s4 + $0x888] ss:$16 sps:$4 sm:$0xff]  }
 0x1ed   : > { %3346 = vmatprep.subr.bf16.mxu1 %v4810_v19  ;;  %v4841_v19 = vld [vmem:[%s6317_s4 + $0x868] ss:$16 sps:$4 sm:$0xff]  }
 0x1ee   : > { %v1565_v34 = vpop.f32.mrf.mxu0  ;;  %v1606_v48 = vpop.f32.mrf.mxu1 }
 0x1ef   : > { %v1607_v50 = vadd.f32 %v1606_v48, %v1565_v34  ;;  %3306 = vmatpush2.bf16.msra.mxu0 %v4805_v14  ;;  %v4825_v48 = vld [vmem:[%s6317_s4 + $0x8cc] ss:$16 sps:$4 sm:$0xff]  }
 0x1f0   : > { %v1567_v37 = vpop.f32.mrf.mxu0  ;;  %v1608_v38 = vpop.f32.mrf.mxu1  ;;  %3347 = vmatpush2.bf16.msra.mxu1 %v4808_v16  ;;  %3307 = vmatprep.subr.bf16.mxu0 %v4813_v20  ;;  %v4840_v14 = vld [vmem:[%s6317_s4 + $0xa8c] ss:$16 sps:$4 sm:$0xff]   ;;  %v4838_v16 = vld [vmem:[%s6317_s4 + $0xa88] ss:$16 sps:$4 sm:$0xff]  }
 0x1f1   : > { %v1609_v9 = vadd.f32 %v1608_v38, %v1567_v37  ;;  %3348 = vmatprep.subr.bf16.mxu1 %v4816_v21  ;;  %v4823_v37 = vld [vmem:[%s6317_s4 + $0x8c8] ss:$16 sps:$4 sm:$0xff]   ;;  %v4849_v21 = vld [vmem:[%s6317_s4 + $0x84c] ss:$16 sps:$4 sm:$0xff]  }
 0x1f2   : > { %v1569_v10 = vpop.f32.mrf.mxu0  ;;  %v1610_v13 = vpop.f32.mrf.mxu1  ;;  %v4826_v38 = vld [vmem:[%s6317_s4 + $0xac8] ss:$16 sps:$4 sm:$0xff]  }
 0x1f3   : > { %3308 = vmatpush2.bf16.msra.mxu0 %v4811_v22  ;;  %v4832_v10 = vld [vmem:[%s6317_s4 + $0xaa8] ss:$16 sps:$4 sm:$0xff]   ;;  %v4837_v13 = vld [vmem:[%s6317_s4 + $0x88c] ss:$16 sps:$4 sm:$0xff]  }
 0x1f4   : > { %v1570_v17 = vpop.f32.mrf.mxu0  ;;  %v1611_v18 = vpop.f32.mrf.mxu1  ;;  %3349 = vmatpush2.bf16.msra.mxu1 %v4814_v23  ;;  %3359 = vmatprep.subr.bf16.mxu0 %v4819_v24  ;;  %v4844_v20 = vld [vmem:[%s6317_s4 + $0xa68] ss:$16 sps:$4 sm:$0xff]   ;;  %v4852_v22 = vld [vmem:[%s6317_s4 + $0xa4c] ss:$16 sps:$4 sm:$0xff]  }
 0x1f5   : > { %3400 = vmatprep.subr.bf16.mxu1 %v4822_v25  ;;  %v4843_v17 = vld [vmem:[%s6317_s4 + $0x86c] ss:$16 sps:$4 sm:$0xff]   ;;  %v4847_v23 = vld [vmem:[%s6317_s4 + $0x848] ss:$16 sps:$4 sm:$0xff]  }
 0x1f6   : > { %v4846_v18 = vld [vmem:[%s6317_s4 + $0xa6c] ss:$16 sps:$4 sm:$0xff]   ;;  %v4850_v24 = vld [vmem:[%s6317_s4 + $0xa48] ss:$16 sps:$4 sm:$0xff]  }
 0x1f7   : > { %v4855_v25 = vld [vmem:[%s6317_s4 + $0x82c] ss:$16 sps:$4 sm:$0xff]  }
 0x22e   : > { %v2287_v26 = vpop.f32.mrf.mxu0 }
 0x22f   : > { %v2288_v27 = vadd.f32 %v2287_v26, %v5853_v61  ;;  %v2328_v28 = vpop.f32.mrf.mxu1  ;;  %v4858_v26 = vld [vmem:[%s6317_s4 + $0xa2c] ss:$16 sps:$4 sm:$0xff]  }
 0x230   : > { %v2289_v29 = vpop.f32.mrf.mxu0 }
 0x231   : > { %v6065_v30 = vadd.f32 %v2328_v28, %v2288_v27  ;;  %v2290_v31 = vadd.f32 %v2289_v29, %v5858_v33  ;;  %v2330_v32 = vpop.f32.mrf.mxu1  ;;  %v4853_v27 = vld [vmem:[%s6317_s4 + $0x828] ss:$16 sps:$4 sm:$0xff]   ;;  %v4861_v29 = vld [vmem:[%s6317_s4 + $0x80c] ss:$16 sps:$4 sm:$0xff]  }
 0x232   : > { %v2291_v36 = vpop.f32.mrf.mxu0  ;;  %v4856_v28 = vld [vmem:[%s6317_s4 + $0xa28] ss:$16 sps:$4 sm:$0xff]  }
 0x233   : > { %v6068_v39 = vadd.f32 %v2330_v32, %v2290_v31  ;;  %v2332_v55 = vpop.f32.mrf.mxu1  ;;  %v4864_v31 = vld [vmem:[%s6317_s4 + $0xa0c] ss:$16 sps:$4 sm:$0xff]   ;;  %v4859_v32 = vld [vmem:[%s6317_s4 + $0x808] ss:$16 sps:$4 sm:$0xff]  }
 0x234   : > { %v2292_v41 = vpop.f32.mrf.mxu0  ;;  %v4862_v36 = vld [vmem:[%s6317_s4 + $0xa08] ss:$16 sps:$4 sm:$0xff]   ;;  %v4867_v55 = vld [vmem:[%s6317_s4 + $0x9ec] ss:$16 sps:$4 sm:$0xff]  }
 0x235   : > { %v2333_v56 = vpop.f32.mrf.mxu1  ;;  %v4870_v41 = vld [vmem:[%s6317_s4 + $0xbec] ss:$16 sps:$4 sm:$0xff]  }
 0x236   : > { %v4865_v56 = vld [vmem:[%s6317_s4 + $0x9e8] ss:$16 sps:$4 sm:$0xff]  }
 0x26e   : > { %v2369_v11 = vpop.f32.mrf.mxu0 }
 0x26f   : > { %v2370_v12 = vadd.f32 %v2369_v11, %v1607_v50  ;;  %v2410_v42 = vpop.f32.mrf.mxu1  ;;  %v4868_v11 = vld [vmem:[%s6317_s4 + $0xbe8] ss:$16 sps:$4 sm:$0xff]  }
 0x270   : > { %v2371_v43 = vpop.f32.mrf.mxu0 }
 0x271   : > { %v6070_v44 = vadd.f32 %v2410_v42, %v2370_v12  ;;  %v2372_v61 = vadd.f32 %v2371_v43, %v1609_v9  ;;  %v2412_v45 = vpop.f32.mrf.mxu1  ;;  %v4829_v9 = vld [vmem:[%s6317_s4 + $0x8a8] ss:$16 sps:$4 sm:$0xff]   ;;  %v4873_v12 = vld [vmem:[%s6317_s4 + $0x9cc] ss:$16 sps:$4 sm:$0xff]  }
 0x272   : > { %v2373_v46 = vpop.f32.mrf.mxu0  ;;  %v4876_v42 = vld [vmem:[%s6317_s4 + $0xbcc] ss:$16 sps:$4 sm:$0xff]   ;;  %v4871_v43 = vld [vmem:[%s6317_s4 + $0x9c8] ss:$16 sps:$4 sm:$0xff]  }
 0x273   : > { %v6072_v47 = vadd.f32 %v2412_v45, %v2372_v61  ;;  %v2414_v49 = vpop.f32.mrf.mxu1  ;;  %v4874_v61 = vld [vmem:[%s6317_s4 + $0xbc8] ss:$16 sps:$4 sm:$0xff]   ;;  %v4879_v45 = vld [vmem:[%s6317_s4 + $0x9ac] ss:$16 sps:$4 sm:$0xff]  }
 0x274   : > { %v2374_v33 = vpop.f32.mrf.mxu0  ;;  %v4882_v46 = vld [vmem:[%s6317_s4 + $0xbac] ss:$16 sps:$4 sm:$0xff]   ;;  %v4877_v49 = vld [vmem:[%s6317_s4 + $0x9a8] ss:$16 sps:$4 sm:$0xff]  }
 0x275   : > { %v2415_v51 = vpop.f32.mrf.mxu1  ;;  %v4880_v33 = vld [vmem:[%s6317_s4 + $0xba8] ss:$16 sps:$4 sm:$0xff]  }
 0x276   : > { %v2456_v53 = vpop.f32.mrf.mxu0  ;;  %v4885_v51 = vld [vmem:[%s6317_s4 + $0x98c] ss:$16 sps:$4 sm:$0xff]  }
 0x277   : > { %v2497_v52 = vpop.f32.mrf.mxu1  ;;  %v6077_v59 = vpack.c.bf16 %v2456_v53, %v2456_v53  ;;  %v4888_v53 = vld [vmem:[%s6317_s4 + $0xb8c] ss:$16 sps:$4 sm:$0xff]  }
 0x278   : > { %v2458_v54 = vpop.f32.mrf.mxu0  ;;  %v6082_v63 = vpack.c.bf16 %v2497_v52, %v2497_v52  ;;  %v4883_v52 = vld [vmem:[%s6317_s4 + $0x988] ss:$16 sps:$4 sm:$0xff]  }
 0x279   : > { %v2505_v57 = vpack.c.bf16 %v2458_v54, %v2458_v54  ;;  %v2499_v58 = vpop.f32.mrf.mxu1  ;;  %v4886_v54 = vld [vmem:[%s6317_s4 + $0xb88] ss:$16 sps:$4 sm:$0xff]  }
 0x27a   : > { %v2507_v40 = vpack.c.bf16 %v2499_v58, %v2499_v58  ;;  %v2460_v60 = vpop.f32.mrf.mxu0  ;;  %v4894_v58 = vld [vmem:[%s6317_s4 + $0xb6c] ss:$16 sps:$4 sm:$0xff]  }
 0x27b   : > { %v2501_v34 = vpop.f32.mrf.mxu1  ;;  %3309 = vmatprep.mubr.bf16.mxu0 %v2505_v57  ;;  %v4897_v60 = vld [vmem:[%s6317_s4 + $0x94c] ss:$16 sps:$4 sm:$0xff]  }
 0x27c   : > { %3350 = vmatprep.mubr.bf16.mxu1 %v2507_v40  ;;  %v2461_v50 = vpop.f32.mrf.mxu0  ;;  %3310 = vmatmul.mubr.bf16.vlgmr.msra.gmra.mxu0 %v6077_v59  ;;  %v4895_v34 = vld [vmem:[%s6317_s4 + $0x948] ss:$16 sps:$4 sm:$0xff]  }
 0x27d   : > { %v2502_v1 = vpop.f32.mrf.mxu1  ;;  %3351 = vmatmul.mubr.bf16.vlgmr.msra.gmra.mxu1 %v6082_v63  ;;  %3360 = vmatpush1.bf16.msra.mxu0 %v4817_v35  ;;  %v4889_v35 = vld [vmem:[%s6317_s4 + $0x968] ss:$16 sps:$4 sm:$0xff]   ;;  %v4903_v50 = vld [vmem:[%s6317_s4 + $0x92c] ss:$16 sps:$4 sm:$0xff]  }
 0x27e   : > { %3401 = vmatpush1.bf16.msra.mxu1 %v4820_v62  ;;  %3391 = vmatprep.mubr.bf16.mxu0 %v2505_v57  ;;  %v4891_v57 = vld [vmem:[%s6317_s4 + $0x96c] ss:$16 sps:$4 sm:$0xff]   ;;  %v4901_v1 = vld [vmem:[%s6317_s4 + $0x928] ss:$16 sps:$4 sm:$0xff]  }
 0x27f   : > { %3432 = vmatprep.mubr.bf16.mxu1 %v2507_v40  ;;  %3361 = vmatprep.subr.bf16.mxu0 %v4825_v48  ;;  %v4892_v40 = vld [vmem:[%s6317_s4 + $0xb68] ss:$16 sps:$4 sm:$0xff]   ;;  %v4900_v62 = vld [vmem:[%s6317_s4 + $0xb4c] ss:$16 sps:$4 sm:$0xff]  }
 0x280   : > { %3402 = vmatprep.subr.bf16.mxu1 %v4828_v0  ;;  %v4898_v48 = vld [vmem:[%s6317_s4 + $0xb48] ss:$16 sps:$4 sm:$0xff]   ;;  %v4906_v0 = vld [vmem:[%s6317_s4 + $0xb2c] ss:$16 sps:$4 sm:$0xff]  }
 0x281   : > { %3362 = vmatpush1.bf16.msra.mxu0 %v4823_v37  ;;  %v4904_v37 = vld [vmem:[%s6317_s4 + $0xb28] ss:$16 sps:$4 sm:$0xff]  }
 0x282   : > { %3403 = vmatpush1.bf16.msra.mxu1 %v4826_v38  ;;  %3363 = vmatprep.subr.bf16.mxu0 %v4831_v3  ;;  %v4909_v38 = vld [vmem:[%s6317_s4 + $0x90c] ss:$16 sps:$4 sm:$0xff]  }
 0x283   : > { %3404 = vmatprep.subr.bf16.mxu1 %v4834_v4  ;;  %v4912_v3 = vld [vmem:[%s6317_s4 + $0xb0c] ss:$16 sps:$4 sm:$0xff]   ;;  %v4907_v4 = vld [vmem:[%s6317_s4 + $0x908] ss:$16 sps:$4 sm:$0xff]  }
 0x285   : > { %3364 = vmatpush1.bf16.msra.mxu0 %v4829_v9  ;;  %v4910_v9 = vld [vmem:[%s6317_s4 + $0xb08] ss:$16 sps:$4 sm:$0xff]  }
 0x286   : > { %3405 = vmatpush1.bf16.msra.mxu1 %v4832_v10  ;;  %3365 = vmatprep.subr.bf16.mxu0 %v4837_v13  ;;  %v6271_v10 = vld [vmem:[%s6318_s5] sm:$0xf] }
 0x287   : > { %3406 = vmatprep.subr.bf16.mxu1 %v4840_v14 }
 0x289   : > { %3366 = vmatpush1.bf16.msra.mxu0 %v4835_v15 }
 0x28a   : > { %3407 = vmatpush1.bf16.msra.mxu1 %v4838_v16  ;;  %3367 = vmatprep.subr.bf16.mxu0 %v4843_v17  ;;  %v3450_v16 = vrot.slane %v6271_v10, %v4991_v7 }
 0x28b   : > { %3408 = vmatprep.subr.bf16.mxu1 %v4846_v18 }
 0x28d   : > { %3368 = vmatpush1.bf16.msra.mxu0 %v4841_v19 }
 0x28e   : > { %3409 = vmatpush1.bf16.msra.mxu1 %v4844_v20  ;;  %3369 = vmatprep.subr.bf16.mxu0 %v4849_v21 }
 0x28f   : > { %3410 = vmatprep.subr.bf16.mxu1 %v4852_v22 }
 0x291   : > { %3370 = vmatpush1.bf16.msra.mxu0 %v4847_v23 }
 0x292   : > { %3411 = vmatpush1.bf16.msra.mxu1 %v4850_v24  ;;  %3371 = vmatprep.subr.bf16.mxu0 %v4855_v25 }
 0x293   : > { %3412 = vmatprep.subr.bf16.mxu1 %v4858_v26 }
 0x295   : > { %3372 = vmatpush1.bf16.msra.mxu0 %v4853_v27 }
 0x296   : > { %3413 = vmatpush1.bf16.msra.mxu1 %v4856_v28  ;;  %3373 = vmatprep.subr.bf16.mxu0 %v4861_v29 }
 0x297   : > { %3414 = vmatprep.subr.bf16.mxu1 %v4864_v31 }
 0x299   : > { %3374 = vmatpush1.bf16.msra.mxu0 %v4859_v32 }
 0x29a   : > { %3415 = vmatpush1.bf16.msra.mxu1 %v4862_v36  ;;  %3375 = vmatprep.subr.bf16.mxu0 %v4867_v55 }
 0x29b   : > { %3416 = vmatprep.subr.bf16.mxu1 %v4870_v41 }
 0x29d   : > { %3376 = vmatpush2.bf16.msra.mxu0 %v4865_v56 }
 0x29e   : > { %3417 = vmatpush2.bf16.msra.mxu1 %v4868_v11  ;;  %3377 = vmatprep.subr.bf16.mxu0 %v4873_v12 }
 0x29f   : > { %3418 = vmatprep.subr.bf16.mxu1 %v4876_v42 }
 0x2a1   : > { %3378 = vmatpush2.bf16.msra.mxu0 %v4871_v43 }
 0x2a2   : > { %3419 = vmatpush2.bf16.msra.mxu1 %v4874_v61  ;;  %3379 = vmatprep.subr.bf16.mxu0 %v4879_v45 }
 0x2a3   : > { %3420 = vmatprep.subr.bf16.mxu1 %v4882_v46 }
 0x2a5   : > { %3380 = vmatpush2.bf16.msra.mxu0 %v4877_v49 }
 0x2a6   : > { %3421 = vmatpush2.bf16.msra.mxu1 %v4880_v33  ;;  %3381 = vmatprep.subr.bf16.mxu0 %v4885_v51 }
 0x2a7   : > { %3422 = vmatprep.subr.bf16.mxu1 %v4888_v53 }
 0x2a9   : > { %3382 = vmatpush2.bf16.msra.mxu0 %v4883_v52 }
 0x2aa   : > { %3423 = vmatpush2.bf16.msra.mxu1 %v4886_v54  ;;  %3383 = vmatprep.subr.bf16.mxu0 %v4891_v57 }
 0x2ab   : > { %3424 = vmatprep.subr.bf16.mxu1 %v4894_v58 }
 0x2ad   : > { %3384 = vmatpush2.bf16.msra.mxu0 %v4889_v35 }
 0x2ae   : > { %3425 = vmatpush2.bf16.msra.mxu1 %v4892_v40  ;;  %3385 = vmatprep.subr.bf16.mxu0 %v4897_v60 }
 0x2af   : > { %3426 = vmatprep.subr.bf16.mxu1 %v4900_v62 }
 0x2b1   : > { %3386 = vmatpush2.bf16.msra.mxu0 %v4895_v34 }
 0x2b2   : > { %3427 = vmatpush2.bf16.msra.mxu1 %v4898_v48  ;;  %3387 = vmatprep.subr.bf16.mxu0 %v4903_v50 }
 0x2b3   : > { %3428 = vmatprep.subr.bf16.mxu1 %v4906_v0 }
 0x2b5   : > { %3388 = vmatpush2.bf16.msra.mxu0 %v4901_v1 }
 0x2b6   : > { %3429 = vmatpush2.bf16.msra.mxu1 %v4904_v37  ;;  %3389 = vmatprep.subr.bf16.mxu0 %v4909_v38  ;;  %v3458_v37 = vrot.slane %v6271_v10, %v4994_v8 }
 0x2b7   : > { %3430 = vmatprep.subr.bf16.mxu1 %v4912_v3 }
 0x2b9   : > { %3390 = vmatpush2.bf16.msra.mxu0 %v4907_v4 }
 0x2ba   : > { %3431 = vmatpush2.bf16.msra.mxu1 %v4910_v9 }
 0x2bc   : > { %3392 = vmatmul.mubr.bf16.vlgmr.msra.gmra.mxu0 %v6077_v59  ;;  %v3454_v59 = vrot.slane %v6271_v10, %v4985_v5 }
 0x2bd   : > { %3433 = vmatmul.mubr.bf16.vlgmr.msra.gmra.mxu1 %v6082_v63 }
 0x33c   : > { %v3311_v13 = vpop.f32.mrf.mxu0 }
 0x33d   : > { %v3352_v14 = vpop.f32.mrf.mxu1 }
 0x33e   : > { %v3353_v15 = vadd.f32 %v3352_v14, %v3311_v13  ;;  %v3313_v17 = vpop.f32.mrf.mxu0  ;;  %v3462_v13 = vrot.slane %v6271_v10, %v4988_v6 }
 0x33f   : > { %v3354_v18 = vpop.f32.mrf.mxu1 }
 0x340   : > { %v3441_v19 = vadd.f32 %v3353_v15, %v6065_v30  ;;  %v3355_v20 = vadd.f32 %v3354_v18, %v3313_v17  ;;  %v3315_v63 = vpop.f32.mrf.mxu0 }
 0x341   : > { %v3356_v21 = vpop.f32.mrf.mxu1 }
 0x342   : > { %v3467_v22 = vadd.f32 %v3450_v16, %v3441_v19  ;;  %v3442_v23 = vadd.f32 %v3355_v20, %v6068_v39  ;;  %v3316_v24 = vpop.f32.mrf.mxu0 }
 0x343   : > { %v3357_v25 = vpop.f32.mrf.mxu1 }
 0x344   : > { %v3481_v26 = vsel %vm362_vm0, %v3467_v22, 0.0  ;;  %v3509_v27 = vmul.f32 %v3467_v22, %v3467_v22  ;;  %v3468_v7 = vadd.f32 %v3454_v59, %v3442_v23 }
 0x345   : > { %v3482_v28 = vrot.slane %v3481_v26, 4 }
 0x346   : > { %v3513_v5 = vsel %vm362_vm0, %v3509_v27, 0.0  ;;  %v3475_v30 = vcombine.low %v3467_v22, %v3468_v7  ;;  %v3488_v29 = vsel %vm362_vm0, %v3468_v7, 0.0  ;;  %v3510_v31 = vmul.f32 %v3468_v7, %v3468_v7 }
 0x347   : > { %v3483_v39 = vadd.f32 %v3482_v28, %v3481_v26  ;;  %v3514_v32 = vrot.slane %v3513_v5, 4  ;;  %v3489_v36 = vrot.slane %v3488_v29, 4 }
 0x348   : > { %3479 = vst [vmem:[%s6284_s13] sm:$0xff] %v3475_v30  ;;  %v3520_v55 = vsel %vm362_vm0, %v3510_v31, 0.0  ;;  %v4922_v31 = vmov 1983009808  }
 0x349   : > { %v3484_v41 = vrot.slane %v3483_v39, 2  ;;  %v3515_v56 = vadd.f32 %v3514_v32, %v3513_v5  ;;  %v3490_v11 = vadd.f32 %v3489_v36, %v3488_v29  ;;  %v3521_v12 = vrot.slane %v3520_v55, 4 }
 0x34b   : > { %v3485_v42 = vadd.f32 %v3484_v41, %v3483_v39  ;;  %v3516_v43 = vrot.slane %v3515_v56, 2  ;;  %v3491_v61 = vrot.slane %v3490_v11, 2  ;;  %v3522_v45 = vadd.f32 %v3521_v12, %v3520_v55 }
 0x34c   : > { %v3553_v39 = vunpack.c.l.s4 %v4922_v31 }
 0x34d   : > { %v3517_v46 = vadd.f32 %v3516_v43, %v3515_v56  ;;  %v3492_v49 = vadd.f32 %v3491_v61, %v3490_v11  ;;  %v3523_v33 = vrot.slane %v3522_v45, 2  ;;  %v3486_v51 = vrot.slane %v3485_v42, 1 }
 0x34f   : > { %v3518_v53 = vrot.slane %v3517_v46, 1  ;;  %v3493_v52 = vrot.slane %v3492_v49, 1  ;;  %v3524_v54 = vadd.f32 %v3523_v33, %v3522_v45  ;;  %v3487_v35 = vadd.f32 %v3486_v51, %v3485_v42 }
 0x350   : > { %v3554_v42 = vunpack.c.0.s8 %v3553_v39 }
 0x351   : > { %v3519_v57 = vadd.f32 %v3518_v53, %v3517_v46  ;;  %v3525_v58 = vrot.slane %v3524_v54, 1  ;;  %v3494_v40 = vadd.f32 %v3493_v52, %v3492_v49 }
 0x352   : > { %v3557_v33 = vsub.s32 %v3554_v42, %v4976_v2 }
 0x353   : > { %v3526_v60 = vadd.f32 %v3525_v58, %v3524_v54  ;;  %v3542_v62 = vsel %vm3541_vm2, %v3487_v35, %v3519_v57 }
 0x355   : > { %v3543_v34 = vsel %vm3541_vm2, %v3494_v40, %v3526_v60 }
 0x356   : > { %v3550_v48 = vcombine.low %v3542_v62, %v3543_v34 }
 0x358   : > { %v3558_v54 = vrot.slane %v3550_v48, %v3557_v33 }
 0x37c   : > { %v3393_v50 = vpop.f32.mrf.mxu0 }
 0x37d   : > { %v3434_v0 = vpop.f32.mrf.mxu1 }
 0x37e   : > { %v3435_v1 = vadd.f32 %v3434_v0, %v3393_v50  ;;  %v3395_v38 = vpop.f32.mrf.mxu0 }
 0x37f   : > { %v3436_v3 = vpop.f32.mrf.mxu1 }
 0x380   : > { %v3443_v4 = vadd.f32 %v3435_v1, %v6070_v44  ;;  %v3437_v9 = vadd.f32 %v3436_v3, %v3395_v38  ;;  %v3397_v14 = vpop.f32.mrf.mxu0 }
 0x381   : > { %v3438_v15 = vpop.f32.mrf.mxu1 }
 0x382   : > { %v3469_v16 = vadd.f32 %v3458_v37, %v3443_v4  ;;  %v3444_v17 = vadd.f32 %v3437_v9, %v6072_v47  ;;  %v3398_v18 = vpop.f32.mrf.mxu0 }
 0x383   : > { %v3439_v19 = vpop.f32.mrf.mxu1 }
 0x384   : > { %v3495_v20 = vsel %vm362_vm0, %v3469_v16, 0.0  ;;  %v3511_v59 = vmul.f32 %v3469_v16, %v3469_v16  ;;  %v3470_v8 = vadd.f32 %v3462_v13, %v3444_v17 }
 0x385   : > { %v3496_v63 = vrot.slane %v3495_v20, 4 }
 0x386   : > { %v3527_v21 = vsel %vm362_vm0, %v3511_v59, 0.0  ;;  %v3476_v44 = vcombine.low %v3469_v16, %v3470_v8  ;;  %v3502_v22 = vsel %vm362_vm0, %v3470_v8, 0.0  ;;  %v3512_v23 = vmul.f32 %v3470_v8, %v3470_v8 }
 0x387   : > { %v3497_v6 = vadd.f32 %v3496_v63, %v3495_v20  ;;  %v3528_v10 = vrot.slane %v3527_v21, 4  ;;  %v3503_v24 = vrot.slane %v3502_v22, 4 }
 0x388   : > { %3480 = vst [vmem:[%s6284_s13 + $0x8] sm:$0xff] %v3476_v44  ;;  %v3534_v25 = vsel %vm362_vm0, %v3512_v23, 0.0 }
 0x389   : > { %v3498_v47 = vrot.slane %v3497_v6, 2  ;;  %v3529_v26 = vadd.f32 %v3528_v10, %v3527_v21  ;;  %v3504_v27 = vadd.f32 %v3503_v24, %v3502_v22  ;;  %v3535_v7 = vrot.slane %v3534_v25, 4 }
 0x38b   : > { %v3499_v28 = vadd.f32 %v3498_v47, %v3497_v6  ;;  %v3530_v5 = vrot.slane %v3529_v26, 2  ;;  %v3505_v30 = vrot.slane %v3504_v27, 2  ;;  %v3536_v29 = vadd.f32 %v3535_v7, %v3534_v25 }
 0x38d   : > { %v3531_v32 = vadd.f32 %v3530_v5, %v3529_v26  ;;  %v3506_v36 = vadd.f32 %v3505_v30, %v3504_v27  ;;  %v3537_v55 = vrot.slane %v3536_v29, 2  ;;  %v3500_v41 = vrot.slane %v3499_v28, 1 }
 0x38f   : > { %v3532_v56 = vrot.slane %v3531_v32, 1  ;;  %v3507_v11 = vrot.slane %v3506_v36, 1  ;;  %v3538_v12 = vadd.f32 %v3537_v55, %v3536_v29  ;;  %v3501_v45 = vadd.f32 %v3500_v41, %v3499_v28 }
 0x391   : > { %v3533_v43 = vadd.f32 %v3532_v56, %v3531_v32  ;;  %v3539_v61 = vrot.slane %v3538_v12, 1  ;;  %v3508_v46 = vadd.f32 %v3507_v11, %v3506_v36 }
 0x393   : > { %v3540_v49 = vadd.f32 %v3539_v61, %v3538_v12  ;;  %v3544_v51 = vsel %vm3541_vm2, %v3501_v45, %v3533_v43 }
 0x395   : > { %v3545_v53 = vsel %vm3541_vm2, %v3508_v46, %v3540_v49 }
 0x396   : > { %v3551_v52 = vcombine.low %v3544_v51, %v3545_v53 }
 0x398   : > { %v3565_v57 = vrot.slane %v3551_v52, %v3557_v33 }
 0x39a   : > { %v3566_v58 = vcombine.low %v3558_v54, %v3565_v57 }
 0x39c   : > { %3568 = vst [vmem:[%s291_s17] sm:$0xff] %v3566_v58 }
 0x39d PF: > { %s18_s24 = sadd.s32 1, %s4919_s24  }
 0x39e   : > { %p15_p4 = scmp.ge.s32.totalorder %s18_s24, 4  }
 0x3a0   :  { %17 = sbr.rel (!%p15_p4) target bundleno = 1 (0x1), region = 90 }

// kernel: model_forward.17
= control target key start
LH: loop header
LB: loop body
LE: loop exit
PB: predicated region body
PF: predicated region fallthrough
CT: control target
= control target key end

     0   :  { %8 = vsyncpa [#allocation3], 0  ;;  %s1048_s0 = inlined_call_operand.vmem [shape: f32[2,4,512], index: 0, kind: input, shape index: {}]   ;;  %s1049_s1 = inlined_call_operand.vmem [shape: bf16[512,128], index: 1, kind: input, shape index: {}]   ;;  %s1050_s2 = inlined_call_operand.vmem [shape: f32[1,128], index: 2, kind: input, shape index: {}]   ;;  %s1051_s3 = inlined_call_operand.hbm [shape: f32[2,1,128], index: 3, kind: output, shape index: {}]  }
   0x1   :  { %10 = vsyncpa [#allocation3 + $0x1], 0  ;;  %s862_s12 = smov 0   ;;  %s864_s13 = smov 0  }
   0x2   :  { %s866_s14 = smov 0   ;;  %s868_s15 = smov 0  }
   0x3 LB: > { %s883_s16 = sadd.s32 4294967295, %s839_s15   ;;  %s620_s17 = sadd.s32 4294967294, %s839_s15   ;;  %s839_s15 = sphi %s868_s15, %s1057_s15   ;;  %s835_s14 = sphi %s866_s14, %s1056_s14   ;;  %s831_s13 = sphi %s864_s13, %s1055_s13   ;;  %s827_s12 = sphi %s862_s12, %s1054_s12  }
   0x4   : > { %s887_s18 = sadd.s32 1, %s839_s15   ;;  %s91_s19 = sadd.s32 1, %s835_s14 }
   0x5   : > { %s88_s20 = ssub.s32 %s839_s15, %s887_s18  ;;  %p101_p0 = scmp.ne.s32.totalorder %s835_s14, %s831_s13 }
   0x6   : > { %p89_p1 = scmp.eq.s32.totalorder %s88_s20, 0  ;;  %p102_p2 = scmp.eq.s32.totalorder %s883_s16, 1 }
   0x7   : > { %p107_p3 = scmp.ne.s32.totalorder %s831_s13, %s827_s12  ;;  %p108_p4 = scmp.eq.s32.totalorder %s620_s17, 1 }
   0x8   : > { %s898_s21 = scalar_select %p89_p1, %s835_s14, %s91_s19  }
   0x9   : > { %p900_p5 = por %p102_p2, %p101_p0  ;;  %p904_p6 = por %p108_p4, %p107_p3 }
   0xa   : > { %p623_p7 = scmp.ge.s32.totalorder %s839_s15, 1  ;;  %p140_p8 = scmp.lt.s32.totalorder %s839_s15, 3 }
   0xc   : > { %p141_p9 = pnand %p623_p7, %p140_p8 }
   0xd   : > { %p163_p10 = scmp.lt.s32.totalorder (!%p141_p9), %s883_s16, 1  ;;  %s161_s17 = sand.u32 (!%p141_p9), 1, %s831_s13  }
   0xe   : > { %144 = sbr.rel (%p141_p9) target bundleno = 267 (0x10b), region = 32  ;;  %s658_s24 = sshll.u32 (!%p141_p9), %s883_s16, 4 }
   0xf   : > { %s563_s29 = scalar_lea.hbm (!%p141_p9), %s1051_s3, %s658_s24  ;;  %s553_s30 = scalar_lea.sflag (!%p141_p9), [#allocation3], %s161_s17 }
  0x13   : > { %v745_v0 = vld [vmem:[%s1049_s1 + $0x78] sm:$0xff]   ;;  %v749_v4 = vld [vmem:[%s1049_s1 + $0x70] sm:$0xff]   ;;  %v753_v8 = vld [vmem:[%s1049_s1 + $0x68] sm:$0xff]   ;;  %s164_s7 = scalar_select %p163_p10, %s883_s16, 1  ;;  %vm177_vm0 = vcmask 1043456  }
  0x14   : > { %v746_v1 = vld [vmem:[%s1049_s1 + $0xf8] sm:$0xff]   ;;  %662 = vmatprep.subr.bf16.mxu0 %v745_v0  ;;  %v750_v5 = vld [vmem:[%s1049_s1 + $0xf0] sm:$0xff]   ;;  %v754_v9 = vld [vmem:[%s1049_s1 + $0xe8] sm:$0xff]   ;;  %s841_s16 = smov [#allocation2]  }
  0x15   : > { %v747_v2 = vld [vmem:[%s1049_s1 + $0x38] sm:$0xff]   ;;  %684 = vmatprep.subr.bf16.mxu1 %v746_v1  ;;  %v751_v6 = vld [vmem:[%s1049_s1 + $0x30] sm:$0xff]   ;;  %v755_v10 = vld [vmem:[%s1049_s1 + $0x28] sm:$0xff]   ;;  %s661_s25 = sshll.u32 %s164_s7, 4  ;;  %s783_s5 = sshll.u32 %s841_s16, 4  ;;  %s784_s5 = int_to_ptr.vmem [resolvable:$false] %s783_s5 }
  0x16   : > { %v748_v3 = vld [vmem:[%s1049_s1 + $0xb8] sm:$0xff]   ;;  %663 = vmatpush3.bf16.msra.mxu0 %v747_v2  ;;  %v752_v7 = vld [vmem:[%s1049_s1 + $0xb0] sm:$0xff]   ;;  %v756_v11 = vld [vmem:[%s1049_s1 + $0xa8] sm:$0xff]   ;;  %s167_s8 = scalar_lea.vmem %s1048_s0, %s661_s25  ;;  %s162_s25 = scalar_lea.vmem [#allocation2], %s161_s17 }
  0x17   : > { %685 = vmatpush3.bf16.msra.mxu1 %v748_v3  ;;  %664 = vmatprep.subr.bf16.mxu0 %v749_v4  ;;  %v757_v12 = vld [vmem:[%s1049_s1 + $0x60] sm:$0xff]   ;;  %v761_v16 = vld [vmem:[%s1049_s1 + $0x58] sm:$0xff]   ;;  %v765_v20 = vld [vmem:[%s1049_s1 + $0x50] sm:$0xff]   ;;  %s565_s26 = sshll.u32 %s162_s25, 4  ;;  %s785_s6 = scalar_lea.vmem %s784_s5, 32  ;;  %s566_s26 = int_to_ptr.vmem [resolvable:$true] %s565_s26 }
  0x18   : > { %686 = vmatprep.subr.bf16.mxu1 %v750_v5  ;;  %v758_v13 = vld [vmem:[%s1049_s1 + $0xe0] sm:$0xff]   ;;  %v762_v17 = vld [vmem:[%s1049_s1 + $0xd8] sm:$0xff]   ;;  %v766_v21 = vld [vmem:[%s1049_s1 + $0xd0] sm:$0xff]   ;;  %s779_s4 = scalar_lea.vmem %s566_s26, 16  ;;  %p786_p0 = scmp.lt.s32.totalorder %s566_s26, %s784_s5 }
  0x19   : > { %v759_v14 = vld [vmem:[%s1049_s1 + $0x20] sm:$0xff]   ;;  %v763_v18 = vld [vmem:[%s1049_s1 + $0x18] sm:$0xff]   ;;  %v767_v22 = vld [vmem:[%s1049_s1 + $0x10] sm:$0xff]   ;;  %p780_p11 = scmp.ne.s32.totalorder %s566_s26, %s779_s4  ;;  %p787_p1 = scmp.lt.s32.totalorder %s785_s6, %s779_s4 }
  0x1a   : > { %665 = vmatpush3.bf16.msra.mxu0 %v751_v6  ;;  %v760_v15 = vld [vmem:[%s1049_s1 + $0xa0] sm:$0xff]   ;;  %v764_v19 = vld [vmem:[%s1049_s1 + $0x98] sm:$0xff]   ;;  %v768_v23 = vld [vmem:[%s1049_s1 + $0x90] sm:$0xff]  }
  0x1b   : > { %687 = vmatpush3.bf16.msra.mxu1 %v752_v7  ;;  %666 = vmatprep.subr.bf16.mxu0 %v753_v8  ;;  %v769_v24 = vld [vmem:[%s1049_s1 + $0x48] sm:$0xff]   ;;  %v773_v28 = vld [vmem:[%s1049_s1 + $0x40] sm:$0xff]   ;;  %p781_p12 = pnand %p780_p11, %p900_p5  ;;  %p788_p2 = por %p787_p1, %p786_p0 }
  0x1c   : > { %688 = vmatprep.subr.bf16.mxu1 %v754_v9  ;;  %v770_v25 = vld [vmem:[%s1049_s1 + $0xc8] sm:$0xff]   ;;  %v774_v29 = vld [vmem:[%s1049_s1 + $0xc0] sm:$0xff]  }
  0x1d   : > { %v771_v26 = vld [vmem:[%s1049_s1 + $0x8] sm:$0xff]   ;;  %v775_v30 = vld [vmem:[%s1049_s1] sm:$0xff]   ;;  %p782_p13 = pneg %p781_p12 }
  0x1e   : > { %667 = vmatpush3.bf16.msra.mxu0 %v755_v10  ;;  %v772_v27 = vld [vmem:[%s1049_s1 + $0x88] sm:$0xff]   ;;  %v776_v31 = vld [vmem:[%s1049_s1 + $0x80] sm:$0xff]  }
  0x1f   : > { %689 = vmatpush3.bf16.msra.mxu1 %v756_v11  ;;  %668 = vmatprep.subr.bf16.mxu0 %v757_v12  ;;  %v169_v32 = vld [vmem:[%s167_s8] sm:$0xff]  ;;  %v170_v33 = vld [vmem:[%s167_s8 + $0x8] sm:$0xff]  ;;  %p789_p3 = pnand %p788_p2, %p782_p13 }
  0x20   : > { %690 = vmatprep.subr.bf16.mxu1 %v758_v13  ;;  %v173_v34 = vcombine.high %v169_v32, %v169_v32  ;;  %v174_v35 = vcombine.high %v170_v33, %v170_v33  ;;  %v178_v36 = vsel %vm177_vm0, %v169_v32, 0.0  ;;  %v192_v37 = vsel %vm177_vm0, %v170_v33, 0.0  ;;  %v278_v10 = vld [vmem:[%s1050_s2] sm:$0x1] }
  0x21   : > { %v179_v38 = vrot.slane %v178_v36, 4  ;;  %v193_v39 = vrot.slane %v192_v37, 4 }
  0x22   : > { %669 = vmatpush3.bf16.msra.mxu0 %v759_v14  ;;  %v185_v40 = vsel %vm177_vm0, %v173_v34, 0.0  ;;  %v199_v41 = vsel %vm177_vm0, %v174_v35, 0.0 }
  0x23   : > { %691 = vmatpush3.bf16.msra.mxu1 %v760_v15  ;;  %670 = vmatprep.subr.bf16.mxu0 %v761_v16  ;;  %v186_v42 = vrot.slane %v185_v40, 4  ;;  %v200_v43 = vrot.slane %v199_v41, 4  ;;  %v180_v44 = vadd.f32 %v179_v38, %v178_v36  ;;  %v194_v45 = vadd.f32 %v193_v39, %v192_v37 }
  0x24   : > { %692 = vmatprep.subr.bf16.mxu1 %v762_v17 }
  0x25   : > { %v187_v46 = vadd.f32 %v186_v42, %v185_v40  ;;  %v201_v47 = vadd.f32 %v200_v43, %v199_v41  ;;  %v181_v48 = vrot.slane %v180_v44, 2  ;;  %v195_v49 = vrot.slane %v194_v45, 2 }
  0x26   : > { %671 = vmatpush3.bf16.msra.mxu0 %v763_v18 }
  0x27   : > { %693 = vmatpush3.bf16.msra.mxu1 %v764_v19  ;;  %672 = vmatprep.subr.bf16.mxu0 %v765_v20  ;;  %v188_v50 = vrot.slane %v187_v46, 2  ;;  %v202_v51 = vrot.slane %v201_v47, 2  ;;  %v182_v52 = vadd.f32 %v181_v48, %v180_v44  ;;  %v196_v53 = vadd.f32 %v195_v49, %v194_v45 }
  0x28   : > { %694 = vmatprep.subr.bf16.mxu1 %v766_v21 }
  0x29   : > { %v189_v54 = vadd.f32 %v188_v50, %v187_v46  ;;  %v203_v55 = vadd.f32 %v202_v51, %v201_v47  ;;  %v183_v56 = vrot.slane %v182_v52, 1  ;;  %v197_v57 = vrot.slane %v196_v53, 1 }
  0x2a   : > { %673 = vmatpush3.bf16.msra.mxu0 %v767_v22 }
  0x2b   : > { %695 = vmatpush3.bf16.msra.mxu1 %v768_v23  ;;  %674 = vmatprep.subr.bf16.mxu0 %v769_v24  ;;  %v190_v58 = vrot.slane %v189_v54, 1  ;;  %v204_v59 = vrot.slane %v203_v55, 1  ;;  %v184_v60 = vadd.f32 %v183_v56, %v182_v52  ;;  %v198_v61 = vadd.f32 %v197_v57, %v196_v53 }
  0x2c   : > { %696 = vmatprep.subr.bf16.mxu1 %v770_v25 }
  0x2d   : > { %v191_v62 = vadd.f32 %v190_v58, %v189_v54  ;;  %v205_v63 = vadd.f32 %v204_v59, %v203_v55  ;;  %v206_v0 = vmul.f32 0.015625, %v184_v60  ;;  %v208_v1 = vmul.f32 0.015625, %v198_v61 }
  0x2e   : > { %675 = vmatpush3.bf16.msra.mxu0 %v771_v26 }
  0x2f   : > { %697 = vmatpush3.bf16.msra.mxu1 %v772_v27  ;;  %676 = vmatprep.subr.bf16.mxu0 %v773_v28  ;;  %v207_v2 = vmul.f32 0.015625, %v191_v62  ;;  %v209_v3 = vmul.f32 0.015625, %v205_v63  ;;  %v210_v4 = vpack.c.bf16 %v206_v0, %v206_v0  ;;  %v212_v5 = vpack.c.bf16 %v208_v1, %v208_v1 }
  0x30   : > { %698 = vmatprep.subr.bf16.mxu1 %v774_v29 }
  0x31   : > { %v211_v6 = vpack.c.bf16 %v207_v2, %v207_v2  ;;  %v213_v7 = vpack.c.bf16 %v209_v3, %v209_v3 }
  0x32   : > { %677 = vmatpush3.bf16.msra.mxu0 %v775_v30 }
  0x33   : > { %699 = vmatpush3.bf16.msra.mxu1 %v776_v31  ;;  %503 = vmatprep.mubr.bf16.mxu0 %v211_v6 }
  0x34   : > { %543 = vmatprep.mubr.bf16.mxu1 %v213_v7 }
  0x35   : > { %504 = vmatmul.mubr.bf16.vlgmr.msra.gmra.mxu0 %v210_v4 }
  0x36   : > { %544 = vmatmul.mubr.bf16.vlgmr.msra.gmra.mxu1 %v212_v5 }
  0xf5   : > { %v678_v8 = vpop.f32.mrf.mxu0 }
  0xf6   : > { %v700_v9 = vpop.f32.mrf.mxu1 }
  0xf7   : > { %v679_v11 = vpop.f32.mrf.mxu0 }
  0xf8   : > { %v701_v12 = vpop.f32.mrf.mxu1  ;;  %v680_v13 = vadd.f32 %v679_v11, %v678_v8 }
  0xf9   : > { %v681_v14 = vpop.f32.mrf.mxu0  ;;  %v702_v17 = vadd.f32 %v701_v12, %v700_v9 }
  0xfa   : > { %v703_v15 = vpop.f32.mrf.mxu1  ;;  %v506_v16 = vadd.f32 %v680_v13, %v278_v10 }
  0xfb   : > { %v682_v18 = vpop.f32.mrf.mxu0 }
  0xfc   : > { %v704_v19 = vpop.f32.mrf.mxu1  ;;  %v546_v20 = vadd.f32 %v702_v17, %v506_v16 }
  0xfe   : > { %551 = vst [vmem:[%s162_s25] sm:$0x1] %v546_v20 }
  0xff   : > { %792 = shalt.err (!%p789_p3)
}
 0x100   : > { %s793_s8 = scalar_lea.hbm %s563_s29, 16  ;;  %s797_s10 = scalar_lea.hbm %s1051_s3, 32 }
 0x101   : > { %p794_p4 = scmp.ne.s32.totalorder %s563_s29, %s793_s8  ;;  %p798_p9 = scmp.lt.s32.totalorder %s563_s29, %s1051_s3 }
 0x102   : > { %p799_p10 = scmp.lt.s32.totalorder %s797_s10, %s793_s8 }
 0x103   : > { %p795_p7 = pnand %p794_p4, %p900_p5 }
 0x104   : > { %p800_p11 = por %p799_p10, %p798_p9 }
 0x105   : > { %p796_p8 = pneg %p795_p7 }
 0x107   : > { %p801_p12 = pnand %p800_p11, %p796_p8 }
 0x109   : > { %804 = shalt.err (!%p801_p12)
}
 0x10a   : > { %706 = dma.vmem_to_hbm [thread:$0]  (%p900_p5), %s566_s26, 16, %s563_s29, %s553_s30  }
 0x10b PF: > { %p712_p13 = scmp.ge.s32.totalorder %s839_s15, 2  ;;  %s577_s19 = sand.u32 1, %s827_s12  }
 0x10c   : > { %s578_s20 = scalar_lea.sflag [#allocation3], %s577_s19 }
 0x10d   : > { %p709_p0 = pnand %p712_p13, %p904_p6 }
 0x10f   : > { %p710_p1 = pneg %p709_p0 }
 0x111   : > { %822 = dma.done.wait (%p710_p1), %s578_s20, 16  }
 0x112   : > { %824 = vsyncadd (%p710_p1), %s578_s20, 4294967280  ;;  %p13_p2 = scmp.ge.s32.totalorder %s887_s18, 4   ;;  %s1054_s12 = smov %s831_s13 }
 0x113   : > { %s1055_s13 = smov %s835_s14  ;;  %s1056_s14 = smov %s898_s21 }
 0x114   : > { %s1057_s15 = smov %s887_s18  ;;  %15 = sbr.rel (!%p13_p2) target bundleno = 3 (0x3), region = 67 }
 0x119   :  { %582 = vsyncpa [#allocation3], 1 }
 0x11a   :  { %584 = vsyncpa [#allocation3 + $0x1], 1 }

</bundles_post_ra>
